<compile_context>
chip_gen: v5e
topology: v5e:2x2
jax: 0.10.0
libtpu: 0.0.40
codegen_flags: <defaults>
</compile_context>

<pallas_src>
import functools
import math

import jax
import jax.numpy as jnp
from jax.experimental import pallas as pl
from jax.experimental.pallas import tpu as pltpu

NUM_TOKENS = 49          # 7 x 7 tokens per stage (matches .view(-1, 49, 1024))
TOKEN_DIM = 1024         # hard-coded in the module's forward (view(..., 1024))
TOKENS_PAD = 56          # 49 rounded up to the 8-sublane multiple (VMEM layout only)


def _proj_kernel(group, s3_ref, s4_ref, w_ref, b_ref, o_ref):
    """One chunk of `group` batch elements per grid step.

    s3_ref, s4_ref : (G, 49, C)       activations in native dtype (cast to bf16 here)
    w_ref          : (C, Ppad) bf16   projection weight (torch W.T, lane-padded)
    b_ref          : (1, Ppad) f32    projection bias (lane-padded)
    o_ref          : (G, 2, 49, Ppad) output; axis 1 indexes {stage3, stage4}
    """
    w = w_ref[...]
    # Hoist the bias broadcast out of the loop (JAX does not CSE broadcast_in_dim).
    bias = jnp.broadcast_to(b_ref[...], (NUM_TOKENS, w.shape[1]))

    # Static unrolled loop over the batch chunk.  Each dot is a 2-D (49, C)@(C, P)
    # MXU matmul with f32 accumulation; each store hits a full (49, Ppad) minor
    # slab addressed only through major block dims (g, stage): aligned, unmasked,
    # lane-dense — no sublane-offset relayout.
    for g in range(group):
        x3 = s3_ref[g].astype(jnp.bfloat16)   # cast in VMEM, no extra HBM pass
        x4 = s4_ref[g].astype(jnp.bfloat16)
        y3 = jnp.dot(x3, w, preferred_element_type=jnp.float32) + bias
        y4 = jnp.dot(x4, w, preferred_element_type=jnp.float32) + bias
        o_ref[g, 0] = y3.astype(o_ref.dtype)
        o_ref[g, 1] = y4.astype(o_ref.dtype)


def _vmem_capacity_bytes():
    """Physical VMEM of the current TPU generation (conservative fallback: v7x)."""
    try:
        info = pltpu.get_tpu_info()
        cap = getattr(info, "vmem_capacity_bytes", None)
        if cap:
            return int(cap)
    except Exception:
        pass
    return 64 * 1024 * 1024


def _choose_config(batch, in_itemsize, out_itemsize, c, p_pad):
    """Pick batch-chunk size G and vmem_limit_bytes, generation-aware.

    v5e/v6e (128 MiB VMEM) can take large chunks; v7x (64 MiB) must stay smaller.
    Always keep >= 2 grid steps when batch >= 2 so the 'parallel' grid axis can be
    sharded across both v7x TensorCores (irrelevant but harmless on v5e/v6e).
    """
    cap = _vmem_capacity_bytes()
    vmem_limit = max(32 * 1024 * 1024, min(96 * 1024 * 1024, (cap * 3) // 4))
    budget = int(vmem_limit * 0.7)
    weight_bytes = c * p_pad * 2 * 2                      # bf16, double-buffered
    for g in (32, 16, 8, 4, 2, 1):
        if batch % g != 0:
            continue
        if batch // g < 2 and batch > 1:
            continue                                      # keep >= 2 grid steps
        in_bytes = 2 * g * TOKENS_PAD * c * in_itemsize * 2   # 2 stages, 2 buffers
        out_bytes = g * 2 * TOKENS_PAD * p_pad * out_itemsize * 2
        scratch = 2 * 1024 * 1024                         # temps / headroom
        if weight_bytes + in_bytes + out_bytes + scratch <= budget:
            return g, vmem_limit
    return 1, vmem_limit


def multilevel_swin_projection(stage3, stage4, w_t, b, *, out_dtype=jnp.float32):
    """stage3/stage4: (B, 7, 7, C) NHWC (or (B, 49, C)). w_t: (C, P) = torch W.T. b: (P,).

    Returns (B, 2*49, P) in out_dtype, matching
        projection(cat([stage3.view(-1,49,C), stage4.view(-1,49,C)], dim=1)).
    """
    B = stage3.shape[0]
    C = w_t.shape[0]
    P = w_t.shape[1]

    # Free contiguous reshapes (no HBM copy).
    s3 = stage3.reshape(B, NUM_TOKENS, C)
    s4 = stage4.reshape(B, NUM_TOKENS, C)

    # Lane-dense output: pad P to a multiple of 128 (zeros), slice off in glue.
    p_pad = ((P + 127) // 128) * 128
    w_bf = w_t.astype(jnp.bfloat16)        # weight is tiny; one-off cast is negligible
    b_f32 = b.astype(jnp.float32)
    if p_pad != P:
        w_bf = jnp.pad(w_bf, ((0, 0), (0, p_pad - P)))
        b_f32 = jnp.pad(b_f32, (0, p_pad - P))
    b2 = b_f32.reshape(1, p_pad)

    in_itemsize = jnp.dtype(s3.dtype).itemsize
    out_itemsize = jnp.dtype(out_dtype).itemsize
    G, vmem_limit = _choose_config(B, in_itemsize, out_itemsize, C, p_pad)
    steps = B // G

    cost = pl.CostEstimate(
        flops=2 * B * 2 * NUM_TOKENS * C * p_pad,
        transcendentals=0,
        bytes_accessed=(s3.size + s4.size) * in_itemsize
        + w_bf.size * 2 + b2.size * 4
        + B * 2 * NUM_TOKENS * p_pad * out_itemsize,
    )

    out = pl.pallas_call(
        functools.partial(_proj_kernel, G),
        out_shape=jax.ShapeDtypeStruct((B, 2, NUM_TOKENS, p_pad), out_dtype),
        grid=(steps,),
        in_specs=[
            pl.BlockSpec((G, NUM_TOKENS, C), lambda i: (i, 0, 0)),
            pl.BlockSpec((G, NUM_TOKENS, C), lambda i: (i, 0, 0)),
            pl.BlockSpec((C, p_pad), lambda i: (0, 0)),
            pl.BlockSpec((1, p_pad), lambda i: (0, 0)),
        ],
        out_specs=pl.BlockSpec((G, 2, NUM_TOKENS, p_pad), lambda i: (i, 0, 0, 0)),
        compiler_params=pltpu.CompilerParams(
            dimension_semantics=("parallel",),
            vmem_limit_bytes=vmem_limit,
        ),
        cost_estimate=cost,
    )(s3, s4, w_bf, b2)

    # (B, 2, 49, Ppad) -> (B, 98, Ppad): contiguous, identical to torch.cat(dim=1).
    out = out.reshape(B, 2 * NUM_TOKENS, p_pad)
    if p_pad != P:
        out = out[:, :, :P]
    return out


def _init_linear_params(key, in_dim, out_dim):
    """Deterministic stand-in for nn.Linear default init (uniform ±1/sqrt(fan_in))."""
    kw, kb = jax.random.split(key)
    bound = 1.0 / math.sqrt(in_dim)
    w = jax.random.uniform(kw, (out_dim, in_dim), jnp.float32, -bound, bound)
    b = jax.random.uniform(kb, (out_dim,), jnp.float32, -bound, bound)
    return w, b


if __name__ == "__main__":
    key = jax.random.PRNGKey(0)
    k3, k4, kp = jax.random.split(key, 3)

    B = 4          # -> G=2 batches/step, 2 "parallel" grid steps (feeds both v7x TCs)
    PROJ_DIM = 256

    # Synthetic stand-ins for the hooked swin_b stage outputs: (B, 7, 7, 1024) NHWC.
    stage3 = jax.random.normal(k3, (B, 7, 7, TOKEN_DIM), jnp.float32)
    stage4 = jax.random.normal(k4, (B, 7, 7, TOKEN_DIM), jnp.float32)

    # nn.Linear(token_dim, proj_dim): torch weight is (P, C); kernel takes W.T.
    w, b = _init_linear_params(kp, TOKEN_DIM, PROJ_DIM)
    w_t = w.T  # (C, P)

    # bf16 output is the perf-recommended config; pass out_dtype=jnp.float32 for a
    # dtype-faithful match of the torch module.
    out = multilevel_swin_projection(stage3, stage4, w_t, b, out_dtype=jnp.bfloat16)
    out = jax.block_until_ready(out)
    out_f32 = out.astype(jnp.float32)

    # Reference 1: bf16-rounded matmul inputs, f32 math (matches kernel numerics).
    s3b = stage3.reshape(B, NUM_TOKENS, TOKEN_DIM).astype(jnp.bfloat16).astype(jnp.float32)
    s4b = stage4.reshape(B, NUM_TOKENS, TOKEN_DIM).astype(jnp.bfloat16).astype(jnp.float32)
    wtb = w_t.astype(jnp.bfloat16).astype(jnp.float32)
    ref_bf = jnp.concatenate([s3b, s4b], axis=1) @ wtb + b            # (B, 98, P)

    # Reference 2: pure-f32 reference of the module's forward (post-backbone).
    concat = jnp.concatenate(
        [stage3.reshape(B, NUM_TOKENS, TOKEN_DIM),
         stage4.reshape(B, NUM_TOKENS, TOKEN_DIM)], axis=1)           # (B, 98, 1024)
    ref_f32 = concat @ w_t + b                                        # (B, 98, 256)

    assert out.shape == (B, 2 * NUM_TOKENS, PROJ_DIM), out.shape
    assert out.dtype == jnp.bfloat16, out.dtype
    assert jnp.allclose(out_f32, ref_bf, rtol=2e-2, atol=2e-2), \
        "mismatch vs bf16-consistent reference"
    assert jnp.allclose(out_f32, ref_f32, rtol=5e-2, atol=5e-2), \
        "mismatch vs f32 reference"

    print("KERNEL_OK")
</pallas_src>

<mosaic_0001>
module attributes {stable_mosaic.version = 11 : i64} {
  func.func @_proj_kernel(%arg0: i32, %arg1: memref<2x49x1024xf32, #tpu.memory_space<vmem>>, %arg2: memref<2x49x1024xf32, #tpu.memory_space<vmem>>, %arg3: memref<1024x256xbf16, #tpu.memory_space<vmem>>, %arg4: memref<1x256xf32, #tpu.memory_space<vmem>>, %arg5: memref<2x2x49x256xbf16, #tpu.memory_space<vmem>>) attributes {dimension_semantics = [#tpu.dimension_semantics<parallel>], iteration_bounds = array<i64: 2>, scalar_prefetch = 0 : i64, scratch_operands = 0 : i64, tpu.core_type = #tpu.core_type<tc>, window_params = [{transform_indices = @transform_0, window_bounds = array<i64: 2, 49, 1024>}, {transform_indices = @transform_1, window_bounds = array<i64: 2, 49, 1024>}, {pipeline_mode = #tpu.pipeline_mode<synchronous>, transform_indices = @transform_2, window_bounds = array<i64: 1024, 256>}, {pipeline_mode = #tpu.pipeline_mode<synchronous>, transform_indices = @transform_3, window_bounds = array<i64: 1, 256>}, {transform_indices = @transform_4, window_bounds = array<i64: 2, 2, 49, 256>}]} {
    %c0 = arith.constant 0 : index
    %c0_0 = arith.constant 0 : index
    %0 = vector.load %arg3[%c0, %c0_0] : memref<1024x256xbf16, #tpu.memory_space<vmem>>, vector<1024x256xbf16>
    %c0_1 = arith.constant 0 : index
    %c0_2 = arith.constant 0 : index
    %1 = vector.load %arg4[%c0_1, %c0_2] : memref<1x256xf32, #tpu.memory_space<vmem>>, vector<1x256xf32>
    %2 = vector.shape_cast %1 : vector<1x256xf32> to vector<1x256xf32>
    %3 = vector.broadcast %2 : vector<1x256xf32> to vector<49x256xf32>
    %c0_3 = arith.constant 0 : index
    %c0_4 = arith.constant 0 : index
    %c0_5 = arith.constant 0 : index
    %4 = vector.load %arg1[%c0_3, %c0_4, %c0_5] : memref<2x49x1024xf32, #tpu.memory_space<vmem>>, vector<1x49x1024xf32>
    %5 = vector.shape_cast %4 : vector<1x49x1024xf32> to vector<49x1024xf32>
    %6 = arith.truncf %5 : vector<49x1024xf32> to vector<49x1024xbf16>
    %c0_6 = arith.constant 0 : index
    %c0_7 = arith.constant 0 : index
    %c0_8 = arith.constant 0 : index
    %7 = vector.load %arg2[%c0_6, %c0_7, %c0_8] : memref<2x49x1024xf32, #tpu.memory_space<vmem>>, vector<1x49x1024xf32>
    %8 = vector.shape_cast %7 : vector<1x49x1024xf32> to vector<49x1024xf32>
    %9 = arith.truncf %8 : vector<49x1024xf32> to vector<49x1024xbf16>
    %cst = arith.constant dense<0.000000e+00> : vector<49x256xf32>
    %10 = tpu.matmul %6, %0, %cst {dimension_numbers = #tpu.dot_dimension_numbers<[1], [0], [0], [1], [0, 0, 1, 1], [], []>} : vector<49x1024xbf16>, vector<1024x256xbf16>, vector<49x256xf32> -> vector<49x256xf32>
    %11 = arith.addf %10, %3 : vector<49x256xf32>
    %cst_9 = arith.constant dense<0.000000e+00> : vector<49x256xf32>
    %12 = tpu.matmul %9, %0, %cst_9 {dimension_numbers = #tpu.dot_dimension_numbers<[1], [0], [0], [1], [0, 0, 1, 1], [], []>} : vector<49x1024xbf16>, vector<1024x256xbf16>, vector<49x256xf32> -> vector<49x256xf32>
    %13 = arith.addf %12, %3 : vector<49x256xf32>
    %14 = arith.truncf %11 : vector<49x256xf32> to vector<49x256xbf16>
    %c0_10 = arith.constant 0 : index
    %c0_11 = arith.constant 0 : index
    %c0_12 = arith.constant 0 : index
    %c0_13 = arith.constant 0 : index
    %15 = vector.load %arg5[%c0_10, %c0_11, %c0_12, %c0_13] : memref<2x2x49x256xbf16, #tpu.memory_space<vmem>>, vector<1x1x49x256xbf16>
    %16 = vector.shape_cast %15 : vector<1x1x49x256xbf16> to vector<49x256xbf16>
    %17 = vector.shape_cast %14 : vector<49x256xbf16> to vector<1x1x49x256xbf16>
    tpu.vector_store %arg5[%c0_10, %c0_11, %c0_12, %c0_13], %17 {strides = array<i32>} : memref<2x2x49x256xbf16, #tpu.memory_space<vmem>>, vector<1x1x49x256xbf16>,
    %18 = arith.truncf %13 : vector<49x256xf32> to vector<49x256xbf16>
    %c0_14 = arith.constant 0 : index
    %c1 = arith.constant 1 : index
    %c0_15 = arith.constant 0 : index
    %c0_16 = arith.constant 0 : index
    %19 = vector.load %arg5[%c0_14, %c1, %c0_15, %c0_16] : memref<2x2x49x256xbf16, #tpu.memory_space<vmem>>, vector<1x1x49x256xbf16>
    %20 = vector.shape_cast %19 : vector<1x1x49x256xbf16> to vector<49x256xbf16>
    %21 = vector.shape_cast %18 : vector<49x256xbf16> to vector<1x1x49x256xbf16>
    tpu.vector_store %arg5[%c0_14, %c1, %c0_15, %c0_16], %21 {strides = array<i32>} : memref<2x2x49x256xbf16, #tpu.memory_space<vmem>>, vector<1x1x49x256xbf16>,
    %c1_17 = arith.constant 1 : index
    %c0_18 = arith.constant 0 : index
    %c0_19 = arith.constant 0 : index
    %22 = vector.load %arg1[%c1_17, %c0_18, %c0_19] : memref<2x49x1024xf32, #tpu.memory_space<vmem>>, vector<1x49x1024xf32>
    %23 = vector.shape_cast %22 : vector<1x49x1024xf32> to vector<49x1024xf32>
    %24 = arith.truncf %23 : vector<49x1024xf32> to vector<49x1024xbf16>
    %c1_20 = arith.constant 1 : index
    %c0_21 = arith.constant 0 : index
    %c0_22 = arith.constant 0 : index
    %25 = vector.load %arg2[%c1_20, %c0_21, %c0_22] : memref<2x49x1024xf32, #tpu.memory_space<vmem>>, vector<1x49x1024xf32>
    %26 = vector.shape_cast %25 : vector<1x49x1024xf32> to vector<49x1024xf32>
    %27 = arith.truncf %26 : vector<49x1024xf32> to vector<49x1024xbf16>
    %cst_23 = arith.constant dense<0.000000e+00> : vector<49x256xf32>
    %28 = tpu.matmul %24, %0, %cst_23 {dimension_numbers = #tpu.dot_dimension_numbers<[1], [0], [0], [1], [0, 0, 1, 1], [], []>} : vector<49x1024xbf16>, vector<1024x256xbf16>, vector<49x256xf32> -> vector<49x256xf32>
    %29 = arith.addf %28, %3 : vector<49x256xf32>
    %cst_24 = arith.constant dense<0.000000e+00> : vector<49x256xf32>
    %30 = tpu.matmul %27, %0, %cst_24 {dimension_numbers = #tpu.dot_dimension_numbers<[1], [0], [0], [1], [0, 0, 1, 1], [], []>} : vector<49x1024xbf16>, vector<1024x256xbf16>, vector<49x256xf32> -> vector<49x256xf32>
    %31 = arith.addf %30, %3 : vector<49x256xf32>
    %32 = arith.truncf %29 : vector<49x256xf32> to vector<49x256xbf16>
    %c1_25 = arith.constant 1 : index
    %c0_26 = arith.constant 0 : index
    %c0_27 = arith.constant 0 : index
    %c0_28 = arith.constant 0 : index
    %33 = vector.load %arg5[%c1_25, %c0_26, %c0_27, %c0_28] : memref<2x2x49x256xbf16, #tpu.memory_space<vmem>>, vector<1x1x49x256xbf16>
    %34 = vector.shape_cast %33 : vector<1x1x49x256xbf16> to vector<49x256xbf16>
    %35 = vector.shape_cast %32 : vector<49x256xbf16> to vector<1x1x49x256xbf16>
    tpu.vector_store %arg5[%c1_25, %c0_26, %c0_27, %c0_28], %35 {strides = array<i32>} : memref<2x2x49x256xbf16, #tpu.memory_space<vmem>>, vector<1x1x49x256xbf16>,
    %36 = arith.truncf %31 : vector<49x256xf32> to vector<49x256xbf16>
    %c1_29 = arith.constant 1 : index
    %c1_30 = arith.constant 1 : index
    %c0_31 = arith.constant 0 : index
    %c0_32 = arith.constant 0 : index
    %37 = vector.load %arg5[%c1_29, %c1_30, %c0_31, %c0_32] : memref<2x2x49x256xbf16, #tpu.memory_space<vmem>>, vector<1x1x49x256xbf16>
    %38 = vector.shape_cast %37 : vector<1x1x49x256xbf16> to vector<49x256xbf16>
    %39 = vector.shape_cast %36 : vector<49x256xbf16> to vector<1x1x49x256xbf16>
    tpu.vector_store %arg5[%c1_29, %c1_30, %c0_31, %c0_32], %39 {strides = array<i32>} : memref<2x2x49x256xbf16, #tpu.memory_space<vmem>>, vector<1x1x49x256xbf16>,
    return
  }
  func.func @transform_0(%arg0: i32) -> (i32, i32, i32) {
    %c0_i32 = arith.constant 0 : i32
    %c0_i32_0 = arith.constant 0 : i32
    %c0_i32_1 = arith.constant 0 : i32
    return %arg0, %c0_i32, %c0_i32_0 : i32, i32, i32
  }
  func.func @transform_1(%arg0: i32) -> (i32, i32, i32) {
    %c0_i32 = arith.constant 0 : i32
    %c0_i32_0 = arith.constant 0 : i32
    %c0_i32_1 = arith.constant 0 : i32
    return %arg0, %c0_i32, %c0_i32_0 : i32, i32, i32
  }
  func.func @transform_2(%arg0: i32) -> (i32, i32) {
    %c0_i32 = arith.constant 0 : i32
    %c0_i32_0 = arith.constant 0 : i32
    %c0_i32_1 = arith.constant 0 : i32
    return %c0_i32, %c0_i32_0 : i32, i32
  }
  func.func @transform_3(%arg0: i32) -> (i32, i32) {
    %c0_i32 = arith.constant 0 : i32
    %c0_i32_0 = arith.constant 0 : i32
    %c0_i32_1 = arith.constant 0 : i32
    return %c0_i32, %c0_i32_0 : i32, i32
  }
  func.func @transform_4(%arg0: i32) -> (i32, i32, i32, i32) {
    %c0_i32 = arith.constant 0 : i32
    %c0_i32_0 = arith.constant 0 : i32
    %c0_i32_1 = arith.constant 0 : i32
    %c0_i32_2 = arith.constant 0 : i32
    return %arg0, %c0_i32, %c0_i32_0, %c0_i32_1 : i32, i32, i32, i32
  }
}

</mosaic_0001>

<bundles_post_ra>
// kernel: tpu_custom_call.1
= control target key start
LH: loop header
LB: loop body
LE: loop exit
PB: predicated region body
PF: predicated region fallthrough
CT: control target
= control target key end

     0   :  { %s4127_s15 = smov 0   ;;  %s6990_s0 = inlined_call_operand.vmem [shape: f32[4,49,1024], index: 0, kind: input, shape index: {}]   ;;  %s6991_s1 = inlined_call_operand.vmem [shape: f32[4,49,1024], index: 1, kind: input, shape index: {}]   ;;  %s6992_s2 = inlined_call_operand.vmem [shape: bf16[1024,256], index: 2, kind: input, shape index: {}]   ;;  %s6993_s3 = inlined_call_operand.vmem [shape: f32[1,256], index: 3, kind: input, shape index: {}]   ;;  %s6994_s4 = inlined_call_operand.vmem [shape: bf16[4,2,49,256], index: 4, kind: output, shape index: {}]  }
   0x1 LB: > { %s3295_s16 = sadd.s32 4294967295, %s4100_s15   ;;  %p3299_p0 = scmp.ge.s32.totalorder %s4100_s15, 1  ;;  %s4100_s15 = sphi %s4127_s15, %s14_s15  }
   0x2   : > { %p176_p1 = scmp.lt.s32.totalorder %s4100_s15, 3 }
   0x4   : > { %p177_p2 = pnand %p3299_p0, %p176_p1 }
   0x6   : > { %180 = sbr.rel (%p177_p2) target bundleno = 1196 (0x4ac), region = 36 }
   0xb   : > { %v3364_v0 = vld [vmem:[%s6992_s2 + $0x70] sm:$0xf]  ;;  %v3971_v1 = vld [vmem:[%s6992_s2 + $0x74] sm:$0xf0]  ;;  %v3356_v11 = vld [vmem:[%s6992_s2 + $0x60] sm:$0xf] }
   0xc   : > { %v3428_v2 = vld [vmem:[%s6992_s2 + $0xf0] sm:$0xf]  ;;  %v4144_v3 = vor.u32 %v3971_v1, %v3364_v0  ;;  %v3987_v4 = vld [vmem:[%s6992_s2 + $0xf4] sm:$0xf0]  ;;  %v3969_v13 = vld [vmem:[%s6992_s2 + $0x64] sm:$0xf0] }
   0xd   : > { %v3492_v5 = vld [vmem:[%s6992_s2 + $0x170] sm:$0xf]  ;;  %v4003_v6 = vld [vmem:[%s6992_s2 + $0x174] sm:$0xf0]  ;;  %v4155_v7 = vor.u32 %v3987_v4, %v3428_v2  ;;  %v3420_v14 = vld [vmem:[%s6992_s2 + $0xe0] sm:$0xf]  ;;  %v4182_v16 = vor.u32 %v3969_v13, %v3356_v11 }
   0xe   : > { %7309 = vst [vmem:[#allocation2_spill] sm:$0xff] %v4144_v3  ;;  %v4157_v8 = vor.u32 %v4003_v6, %v3492_v5  ;;  %v3556_v9 = vld [vmem:[%s6992_s2 + $0x1f0] sm:$0xf]  ;;  %v4019_v10 = vld [vmem:[%s6992_s2 + $0x1f4] sm:$0xf0]  ;;  %1181 = vmatpush.bf16.msra.mxu0 %v4144_v3  ;;  %s3300_s5 = sshll.u32 %s3295_s16, 1 }
   0xf   : > { %7310 = vst [vmem:[#allocation3_spill] sm:$0xff] %v4155_v7  ;;  %v4169_v12 = vor.u32 %v4019_v10, %v3556_v9  ;;  %v3985_v15 = vld [vmem:[%s6992_s2 + $0xe4] sm:$0xf0]  ;;  %1209 = vmatpush.bf16.msra.mxu1 %v4155_v7  ;;  %v3484_v18 = vld [vmem:[%s6992_s2 + $0x160] sm:$0xf]  ;;  %p211_p3 = scmp.lt.s32.totalorder %s3300_s5, 3 }
  0x10   : > { %7311 = vst [vmem:[#allocation4_spill] sm:$0xff] %v4157_v8  ;;  %1237 = vmatpush.bf16.msra.mxu2 %v4157_v8  ;;  %v4184_v17 = vor.u32 %v3985_v15, %v3420_v14  ;;  %v4001_v19 = vld [vmem:[%s6992_s2 + $0x164] sm:$0xf0]  ;;  %v3548_v20 = vld [vmem:[%s6992_s2 + $0x1e0] sm:$0xf]  ;;  %vm2090_vm0 = vcmask 1040384  }
  0x11   : > { %7312 = vst [vmem:[#allocation5_spill] sm:$0xff] %v4169_v12  ;;  %1265 = vmatpush.bf16.msra.mxu3 %v4169_v12  ;;  %v4196_v21 = vor.u32 %v4001_v19, %v3484_v18  ;;  %v4017_v22 = vld [vmem:[%s6992_s2 + $0x1e4] sm:$0xf0]  ;;  %v3348_v23 = vld [vmem:[%s6992_s2 + $0x50] sm:$0xf]  ;;  %s7905_s5 = smov (!%p211_p3, %s3300_s5), 3 }
  0x12   : > { %7313 = vst [vmem:[#allocation6_spill] sm:$0xff] %v4182_v16  ;;  %v3967_v24 = vld [vmem:[%s6992_s2 + $0x54] sm:$0xf0]  ;;  %v4207_v25 = vor.u32 %v4017_v22, %v3548_v20  ;;  %v3412_v26 = vld [vmem:[%s6992_s2 + $0xd0] sm:$0xf]  ;;  %1182 = vmatpush.bf16.msra.mxu0 %v4182_v16  ;;  %s4084_s27 = smul.u32 448, %s7905_s5 }
  0x13   : > { %7314 = vst [vmem:[#allocation7_spill] sm:$0xff] %v4184_v17  ;;  %v3983_v27 = vld [vmem:[%s6992_s2 + $0xd4] sm:$0xf0]  ;;  %v3476_v28 = vld [vmem:[%s6992_s2 + $0x150] sm:$0xf]  ;;  %v4219_v29 = vor.u32 %v3967_v24, %v3348_v23  ;;  %1210 = vmatpush.bf16.msra.mxu1 %v4184_v17  ;;  %vm2093_vm2 = vcmask 1044484  }
  0x14   : > { %7315 = vst [vmem:[#allocation8_spill] sm:$0xff] %v4196_v21  ;;  %v3999_v30 = vld [vmem:[%s6992_s2 + $0x154] sm:$0xf0]  ;;  %v3540_v31 = vld [vmem:[%s6992_s2 + $0x1d0] sm:$0xf]  ;;  %1238 = vmatpush.bf16.msra.mxu2 %v4196_v21  ;;  %v4232_v33 = vor.u32 %v3983_v27, %v3412_v26  ;;  %s4444_s14 = scalar_lea.vmem %s6990_s0, %s4084_s27  ;;  %s5600_s19 = scalar_lea.vmem %s6991_s1, %s4084_s27 }
  0x15   : > { %7316 = vst [vmem:[#allocation9_spill] sm:$0xff] %v4207_v25  ;;  %v4015_v32 = vld [vmem:[%s6992_s2 + $0x1d4] sm:$0xf0]  ;;  %v4234_v34 = vor.u32 %v3999_v30, %v3476_v28  ;;  %v3340_v35 = vld [vmem:[%s6992_s2 + $0x40] sm:$0xf]  ;;  %1266 = vmatpush.bf16.msra.mxu3 %v4207_v25  ;;  %s4085_s27 = smul.u32 112, %s7905_s5 }
  0x16   : > { %7317 = vst [vmem:[#allocation10_spill] sm:$0xff] %v4219_v29  ;;  %v3965_v36 = vld [vmem:[%s6992_s2 + $0x44] sm:$0xf0]  ;;  %v3404_v37 = vld [vmem:[%s6992_s2 + $0xc0] sm:$0xf]  ;;  %v4246_v38 = vor.u32 %v4015_v32, %v3540_v31  ;;  %1183 = vmatpush.bf16.msra.mxu0 %v4219_v29 }
  0x17   : > { %7318 = vst [vmem:[#allocation11_spill] sm:$0xff] %v4232_v33  ;;  %v3981_v39 = vld [vmem:[%s6992_s2 + $0xc4] sm:$0xf0]  ;;  %v3468_v40 = vld [vmem:[%s6992_s2 + $0x140] sm:$0xf]  ;;  %v4264_v44 = vor.u32 %v3965_v36, %v3340_v35  ;;  %1211 = vmatpush.bf16.msra.mxu1 %v4232_v33  ;;  %s5815_s21 = scalar_lea.vmem %s6994_s4, %s4085_s27 }
  0x18   : > { %7319 = vst [vmem:[#allocation12_spill] sm:$0xff] %v4234_v34  ;;  %v3997_v41 = vld [vmem:[%s6992_s2 + $0x144] sm:$0xf0]  ;;  %v3532_v42 = vld [vmem:[%s6992_s2 + $0x1c0] sm:$0xf]  ;;  %1239 = vmatpush.bf16.msra.mxu2 %v4234_v34  ;;  %v4268_v45 = vor.u32 %v3981_v39, %v3404_v37 }
  0x19   : > { %7320 = vst [vmem:[#allocation13_spill] sm:$0xff] %v4246_v38  ;;  %v4013_v43 = vld [vmem:[%s6992_s2 + $0x1c4] sm:$0xf0]  ;;  %v4270_v46 = vor.u32 %v3997_v41, %v3468_v40  ;;  %v3332_v47 = vld [vmem:[%s6992_s2 + $0x30] sm:$0xf]  ;;  %1267 = vmatpush.bf16.msra.mxu3 %v4246_v38 }
  0x1a   : > { %7321 = vst [vmem:[#allocation14_spill] sm:$0xff] %v4264_v44  ;;  %v3963_v48 = vld [vmem:[%s6992_s2 + $0x34] sm:$0xf0]  ;;  %v3396_v49 = vld [vmem:[%s6992_s2 + $0xb0] sm:$0xf]  ;;  %v4282_v50 = vor.u32 %v4013_v43, %v3532_v42  ;;  %1184 = vmatpush.bf16.msra.mxu0 %v4264_v44 }
  0x1b   : > { %7322 = vst [vmem:[#allocation15_spill] sm:$0xff] %v4268_v45  ;;  %v3979_v51 = vld [vmem:[%s6992_s2 + $0xb4] sm:$0xf0]  ;;  %v3460_v52 = vld [vmem:[%s6992_s2 + $0x130] sm:$0xf]  ;;  %v4300_v56 = vor.u32 %v3963_v48, %v3332_v47  ;;  %1212 = vmatpush.bf16.msra.mxu1 %v4268_v45 }
  0x1c   : > { %7323 = vst [vmem:[#allocation16_spill] sm:$0xff] %v4270_v46  ;;  %v3995_v53 = vld [vmem:[%s6992_s2 + $0x134] sm:$0xf0]  ;;  %v3524_v54 = vld [vmem:[%s6992_s2 + $0x1b0] sm:$0xf]  ;;  %1240 = vmatpush.bf16.msra.mxu2 %v4270_v46  ;;  %v4304_v57 = vor.u32 %v3979_v51, %v3396_v49 }
  0x1d   : > { %7324 = vst [vmem:[#allocation17_spill] sm:$0xff] %v4282_v50  ;;  %v4011_v55 = vld [vmem:[%s6992_s2 + $0x1b4] sm:$0xf0]  ;;  %v4306_v58 = vor.u32 %v3995_v53, %v3460_v52  ;;  %v3324_v59 = vld [vmem:[%s6992_s2 + $0x20] sm:$0xf]  ;;  %1268 = vmatpush.bf16.msra.mxu3 %v4282_v50 }
  0x1e   : > { %7325 = vst [vmem:[#allocation18_spill] sm:$0xff] %v4300_v56  ;;  %v3961_v60 = vld [vmem:[%s6992_s2 + $0x24] sm:$0xf0]  ;;  %v3388_v61 = vld [vmem:[%s6992_s2 + $0xa0] sm:$0xf]  ;;  %v4318_v62 = vor.u32 %v4011_v55, %v3524_v54  ;;  %1185 = vmatpush.bf16.msra.mxu0 %v4300_v56 }
  0x1f   : > { %7326 = vst [vmem:[#allocation19_spill] sm:$0xff] %v4304_v57  ;;  %v3977_v63 = vld [vmem:[%s6992_s2 + $0xa4] sm:$0xf0]  ;;  %v3452_v0 = vld [vmem:[%s6992_s2 + $0x120] sm:$0xf]  ;;  %v4336_v5 = vor.u32 %v3961_v60, %v3324_v59  ;;  %1213 = vmatpush.bf16.msra.mxu1 %v4304_v57 }
  0x20   : > { %7327 = vst [vmem:[#allocation20_spill] sm:$0xff] %v4306_v58  ;;  %v3993_v1 = vld [vmem:[%s6992_s2 + $0x124] sm:$0xf0]  ;;  %v3516_v2 = vld [vmem:[%s6992_s2 + $0x1a0] sm:$0xf]  ;;  %1241 = vmatpush.bf16.msra.mxu2 %v4306_v58  ;;  %v4346_v10 = vor.u32 %v3977_v63, %v3388_v61 }
  0x21   : > { %7328 = vst [vmem:[#allocation21_spill] sm:$0xff] %v4318_v62  ;;  %v4009_v4 = vld [vmem:[%s6992_s2 + $0x1a4] sm:$0xf0]  ;;  %v3316_v6 = vld [vmem:[%s6992_s2 + $0x10] sm:$0xf]  ;;  %v4348_v11 = vor.u32 %v3993_v1, %v3452_v0  ;;  %1269 = vmatpush.bf16.msra.mxu3 %v4318_v62  ;;  %v365_v61 = vld [vmem:[%s4444_s14] sm:$0xff] }
  0x22   : > { %7329 = vst [vmem:[#allocation22_spill] sm:$0xff] %v4336_v5  ;;  %v3959_v9 = vld [vmem:[%s6992_s2 + $0x14] sm:$0xf0]  ;;  %v3380_v13 = vld [vmem:[%s6992_s2 + $0x90] sm:$0xf]  ;;  %v4360_v18 = vor.u32 %v4009_v4, %v3516_v2  ;;  %1186 = vmatpush.bf16.msra.mxu0 %v4336_v5  ;;  %v373_v63 = vld [vmem:[%s4444_s14 + $0x40] sm:$0xff] }
  0x23   : > { %7330 = vst [vmem:[#allocation23_spill] sm:$0xff] %v4346_v10  ;;  %v3975_v14 = vld [vmem:[%s6992_s2 + $0x94] sm:$0xf0]  ;;  %v3444_v15 = vld [vmem:[%s6992_s2 + $0x110] sm:$0xf]  ;;  %v4377_v24 = vor.u32 %v3959_v9, %v3316_v6  ;;  %1214 = vmatpush.bf16.msra.mxu1 %v4346_v10  ;;  %v366_v0 = vld [vmem:[%s4444_s14 + $0x8] sm:$0xff]  ;;  %v4469_v4 = vpack.c.bf16 %v373_v63, %v365_v61 }
  0x24   : > { %7331 = vst [vmem:[#allocation24_spill] sm:$0xff] %v4348_v11  ;;  %v3991_v19 = vld [vmem:[%s6992_s2 + $0x114] sm:$0xf0]  ;;  %v3508_v20 = vld [vmem:[%s6992_s2 + $0x190] sm:$0xf]  ;;  %1242 = vmatpush.bf16.msra.mxu2 %v4348_v11  ;;  %v4390_v30 = vor.u32 %v3975_v14, %v3380_v13  ;;  %v374_v6 = vld [vmem:[%s4444_s14 + $0x48] sm:$0xff] }
  0x25   : > { %7332 = vst [vmem:[#allocation25_spill] sm:$0xff] %v4360_v18  ;;  %v4007_v22 = vld [vmem:[%s6992_s2 + $0x194] sm:$0xf0]  ;;  %v3308_v23 = vld [vmem:[%s6992_s2] sm:$0xf]  ;;  %v4392_v31 = vor.u32 %v3991_v19, %v3444_v15  ;;  %1270 = vmatpush.bf16.msra.mxu3 %v4360_v18  ;;  %v367_v9 = vld [vmem:[%s4444_s14 + $0x10] sm:$0xff]  ;;  %v4477_v15 = vpack.c.bf16 %v374_v6, %v366_v0 }
  0x26   : > { %7333 = vst [vmem:[#allocation26_spill] sm:$0xff] %v4377_v24  ;;  %v3957_v26 = vld [vmem:[%s6992_s2 + $0x4] sm:$0xf0]  ;;  %v3372_v27 = vld [vmem:[%s6992_s2 + $0x80] sm:$0xf]  ;;  %v4403_v36 = vor.u32 %v4007_v22, %v3508_v20  ;;  %1187 = vmatpush.bf16.msra.mxu0 %v4377_v24  ;;  %v375_v13 = vld [vmem:[%s4444_s14 + $0x50] sm:$0xff] }
  0x27   : > { %v3973_v28 = vld [vmem:[%s6992_s2 + $0x84] sm:$0xf0]  ;;  %7334 = vst [vmem:[#allocation27_spill] sm:$0xff] %v4390_v30  ;;  %v3436_v32 = vld [vmem:[%s6992_s2 + $0x100] sm:$0xf]  ;;  %v4422_v43 = vor.u32 %v3957_v26, %v3308_v23  ;;  %1215 = vmatpush.bf16.msra.mxu1 %v4390_v30  ;;  %v4479_v19 = vpack.c.bf16 %v375_v13, %v367_v9  ;;  %v368_v20 = vld [vmem:[%s4444_s14 + $0x18] sm:$0xff] }
  0x28   : > { %7335 = vst [vmem:[#allocation28_spill] sm:$0xff] %v4392_v31  ;;  %v3989_v35 = vld [vmem:[%s6992_s2 + $0x104] sm:$0xf0]  ;;  %v3500_v37 = vld [vmem:[%s6992_s2 + $0x180] sm:$0xf]  ;;  %1243 = vmatpush.bf16.msra.mxu2 %v4392_v31  ;;  %v4435_v51 = vor.u32 %v3973_v28, %v3372_v27  ;;  %v376_v22 = vld [vmem:[%s4444_s14 + $0x58] sm:$0xff] }
  0x29   : > { %7336 = vst [vmem:[#allocation29_spill] sm:$0xff] %v4403_v36  ;;  %v4005_v39 = vld [vmem:[%s6992_s2 + $0x184] sm:$0xf0]  ;;  %v3748_v40 = vld [vmem:[%s6992_s2 + $0x370] sm:$0xf]  ;;  %v4437_v52 = vor.u32 %v3989_v35, %v3436_v32  ;;  %1271 = vmatpush.bf16.msra.mxu3 %v4403_v36  ;;  %v4488_v26 = vpack.c.bf16 %v376_v22, %v368_v20 }
  0x2a   : > { %v4067_v41 = vld [vmem:[%s6992_s2 + $0x374] sm:$0xf0]  ;;  %v3812_v42 = vld [vmem:[%s6992_s2 + $0x3f0] sm:$0xf]  ;;  %7337 = vst [vmem:[#allocation30_spill] sm:$0xff] %v4422_v43  ;;  %v4459_v60 = vor.u32 %v4005_v39, %v3500_v37  ;;  %1188 = vmatpush.bf16.msra.mxu0 %v4422_v43 }
  0x2b   : > { %v4083_v47 = vld [vmem:[%s6992_s2 + $0x3f4] sm:$0xf0]  ;;  %v3620_v48 = vld [vmem:[%s6992_s2 + $0x270] sm:$0xf]  ;;  %7338 = vst [vmem:[#allocation31_spill] sm:$0xff] %v4435_v51  ;;  %v4464_v1 = vor.u32 %v4067_v41, %v3748_v40  ;;  %1216 = vmatpush.bf16.msra.mxu1 %v4435_v51 }
  0x2c   : > { %v4035_v49 = vld [vmem:[%s6992_s2 + $0x274] sm:$0xf0]  ;;  %7339 = vst [vmem:[#allocation32_spill] sm:$0xff] %v4437_v52  ;;  %v3684_v53 = vld [vmem:[%s6992_s2 + $0x2f0] sm:$0xf]  ;;  %v4474_v14 = vor.u32 %v4083_v47, %v3812_v42  ;;  %1244 = vmatpush.bf16.msra.mxu2 %v4437_v52 }
  0x2d   : > { %v4051_v54 = vld [vmem:[%s6992_s2 + $0x2f4] sm:$0xf0]  ;;  %v3740_v55 = vld [vmem:[%s6992_s2 + $0x360] sm:$0xf]  ;;  %v4065_v59 = vld [vmem:[%s6992_s2 + $0x364] sm:$0xf0]  ;;  %v4490_v27 = vor.u32 %v4035_v49, %v3620_v48  ;;  %1272 = vmatpush.bf16.msra.mxu3 %v4459_v60  ;;  %1189 = vmatmul.bf16.vlgmr.msra.gmra.mxu0 %v4469_v4 }
  0x2e   : > { %7340 = vst [vmem:[#allocation33_spill] sm:$0xff] %v4459_v60  ;;  %v3804_v2 = vld [vmem:[%s6992_s2 + $0x3e0] sm:$0xf]  ;;  %v4081_v23 = vld [vmem:[%s6992_s2 + $0x3e4] sm:$0xf0]  ;;  %v4494_v28 = vor.u32 %v4051_v54, %v3684_v53  ;;  %v4496_v32 = vor.u32 %v4065_v59, %v3740_v55  ;;  %1217 = vmatmul.bf16.vlgmr.msra.gmra.mxu1 %v4477_v15 }
  0x2f   : > { %7341 = vst [vmem:[#allocation34_spill] sm:$0xff] %v4464_v1  ;;  %v3612_v35 = vld [vmem:[%s6992_s2 + $0x260] sm:$0xf]  ;;  %v4033_v37 = vld [vmem:[%s6992_s2 + $0x264] sm:$0xf0]  ;;  %v4509_v40 = vor.u32 %v4081_v23, %v3804_v2  ;;  %1245 = vmatmul.bf16.vlgmr.msra.gmra.mxu2 %v4479_v19  ;;  %1293 = vmatpush.bf16.msrb.mxu0 %v4490_v27 }
  0x30   : > { %7342 = vst [vmem:[#allocation35_spill] sm:$0xff] %v4474_v14  ;;  %1349 = vmatpush.bf16.msrb.mxu2 %v4464_v1  ;;  %v3676_v39 = vld [vmem:[%s6992_s2 + $0x2e0] sm:$0xf]  ;;  %v4049_v41 = vld [vmem:[%s6992_s2 + $0x2e4] sm:$0xf0]  ;;  %1273 = vmatmul.bf16.vlgmr.msra.gmra.mxu3 %v4488_v26  ;;  %v4530_v53 = vor.u32 %v4033_v37, %v3612_v35 }
  0x31   : > { %7343 = vst [vmem:[#allocation36_spill] sm:$0xff] %v4490_v27  ;;  %1377 = vmatpush.bf16.msrb.mxu3 %v4474_v14  ;;  %v3732_v42 = vld [vmem:[%s6992_s2 + $0x350] sm:$0xf]  ;;  %v4063_v47 = vld [vmem:[%s6992_s2 + $0x354] sm:$0xf0]  ;;  %1321 = vmatpush.bf16.msrb.mxu1 %v4494_v28  ;;  %v4534_v54 = vor.u32 %v4049_v41, %v3676_v39  ;;  %v381_v23 = vld [vmem:[%s4444_s14 + $0x80] sm:$0xff] }
  0x32   : > { %7344 = vst [vmem:[#allocation37_spill] sm:$0xff] %v4494_v28  ;;  %v3796_v48 = vld [vmem:[%s6992_s2 + $0x3d0] sm:$0xf]  ;;  %v4079_v49 = vld [vmem:[%s6992_s2 + $0x3d4] sm:$0xf0]  ;;  %v4536_v55 = vor.u32 %v4063_v47, %v3732_v42  ;;  %v389_v35 = vld [vmem:[%s4444_s14 + $0xc0] sm:$0xff] }
  0x33   : > { %7345 = vst [vmem:[#allocation38_spill] sm:$0xff] %v4496_v32  ;;  %v3604_v59 = vld [vmem:[%s6992_s2 + $0x250] sm:$0xf]  ;;  %v4031_v61 = vld [vmem:[%s6992_s2 + $0x254] sm:$0xf0]  ;;  %v4548_v0 = vor.u32 %v4079_v49, %v3796_v48  ;;  %1294 = vmatpush.bf16.msrb.mxu0 %v4530_v53  ;;  %v382_v48 = vld [vmem:[%s4444_s14 + $0x88] sm:$0xff] }
  0x34   : > { %7346 = vst [vmem:[#allocation39_spill] sm:$0xff] %v4509_v40  ;;  %1350 = vmatpush.bf16.msrb.mxu2 %v4496_v32  ;;  %v3668_v63 = vld [vmem:[%s6992_s2 + $0x2d0] sm:$0xf]  ;;  %v4047_v2 = vld [vmem:[%s6992_s2 + $0x2d4] sm:$0xf0]  ;;  %v4566_v22 = vor.u32 %v4031_v61, %v3604_v59  ;;  %v390_v49 = vld [vmem:[%s4444_s14 + $0xc8] sm:$0xff] }
  0x35   : > { %7347 = vst [vmem:[#allocation40_spill] sm:$0xff] %v4530_v53  ;;  %1378 = vmatpush.bf16.msrb.mxu3 %v4509_v40  ;;  %v3724_v6 = vld [vmem:[%s6992_s2 + $0x340] sm:$0xf]  ;;  %v4061_v9 = vld [vmem:[%s6992_s2 + $0x344] sm:$0xf0]  ;;  %1322 = vmatpush.bf16.msrb.mxu1 %v4534_v54  ;;  %v4572_v37 = vor.u32 %v4047_v2, %v3668_v63  ;;  %v379_v14 = vld [vmem:[%s4444_s14 + $0x70] sm:$0xff] }
  0x36   : > { %7348 = vst [vmem:[#allocation41_spill] sm:$0xff] %v4534_v54  ;;  %v3788_v13 = vld [vmem:[%s6992_s2 + $0x3c0] sm:$0xf]  ;;  %v4077_v20 = vld [vmem:[%s6992_s2 + $0x3c4] sm:$0xf0]  ;;  %v4574_v39 = vor.u32 %v4061_v9, %v3724_v6  ;;  %v383_v6 = vld [vmem:[%s4444_s14 + $0x90] sm:$0xff] }
  0x37   : > { %7349 = vst [vmem:[#allocation42_spill] sm:$0xff] %v4536_v55  ;;  %v3596_v41 = vld [vmem:[%s6992_s2 + $0x240] sm:$0xf]  ;;  %v4029_v42 = vld [vmem:[%s6992_s2 + $0x244] sm:$0xf0]  ;;  %v4588_v59 = vor.u32 %v4077_v20, %v3788_v13  ;;  %v391_v20 = vld [vmem:[%s4444_s14 + $0xd0] sm:$0xff]  ;;  %1295 = vmatpush.bf16.msrb.mxu0 %v4566_v22 }
  0x38   : > { %7350 = vst [vmem:[#allocation43_spill] sm:$0xff] %v4548_v0  ;;  %1351 = vmatpush.bf16.msrb.mxu2 %v4536_v55  ;;  %v3660_v47 = vld [vmem:[%s6992_s2 + $0x2c0] sm:$0xf]  ;;  %v4045_v61 = vld [vmem:[%s6992_s2 + $0x2c4] sm:$0xf0]  ;;  %v392_v55 = vld [vmem:[%s4444_s14 + $0xd8] sm:$0xff]  ;;  %v4610_v54 = vor.u32 %v4029_v42, %v3596_v41  ;;  %v4627_v42 = vpack.c.bf16 %v389_v35, %v381_v23  ;;  %v4643_v23 = vpack.c.bf16 %v391_v20, %v383_v6 }
  0x39   : > { %7351 = vst [vmem:[#allocation44_spill] sm:$0xff] %v4566_v22  ;;  %1379 = vmatpush.bf16.msrb.mxu3 %v4548_v0  ;;  %v3716_v63 = vld [vmem:[%s6992_s2 + $0x330] sm:$0xf]  ;;  %v4059_v2 = vld [vmem:[%s6992_s2 + $0x334] sm:$0xf0]  ;;  %1323 = vmatpush.bf16.msrb.mxu1 %v4572_v37  ;;  %v4614_v53 = vor.u32 %v4045_v61, %v3660_v47 }
  0x3a   : > { %7352 = vst [vmem:[#allocation45_spill] sm:$0xff] %v4572_v37  ;;  %v3780_v9 = vld [vmem:[%s6992_s2 + $0x3b0] sm:$0xf]  ;;  %v4075_v13 = vld [vmem:[%s6992_s2 + $0x3b4] sm:$0xf0]  ;;  %v4616_v40 = vor.u32 %v4059_v2, %v3716_v63 }
  0x3b   : > { %7353 = vst [vmem:[#allocation46_spill] sm:$0xff] %v4574_v39  ;;  %v384_v0 = vld [vmem:[%s4444_s14 + $0x98] sm:$0xff]  ;;  %v3588_v32 = vld [vmem:[%s6992_s2 + $0x230] sm:$0xf]  ;;  %v4630_v47 = vor.u32 %v4075_v13, %v3780_v9  ;;  %v3708_v63 = vld [vmem:[%s6992_s2 + $0x320] sm:$0xf]  ;;  %1296 = vmatpush.bf16.msrb.mxu0 %v4610_v54 }
  0x3c   : > { %7354 = vst [vmem:[#allocation47_spill] sm:$0xff] %v4588_v59  ;;  %1352 = vmatpush.bf16.msrb.mxu2 %v4574_v39  ;;  %v4027_v28 = vld [vmem:[%s6992_s2 + $0x234] sm:$0xf0]  ;;  %v3652_v41 = vld [vmem:[%s6992_s2 + $0x2b0] sm:$0xf]  ;;  %v4641_v39 = vpack.c.bf16 %v390_v49, %v382_v48  ;;  %v4651_v13 = vpack.c.bf16 %v392_v55, %v384_v0 }
  0x3d   : > { %7355 = vst [vmem:[#allocation48_spill] sm:$0xff] %v4610_v54  ;;  %1380 = vmatpush.bf16.msrb.mxu3 %v4588_v59  ;;  %v4043_v61 = vld [vmem:[%s6992_s2 + $0x2b4] sm:$0xf0]  ;;  %v4057_v2 = vld [vmem:[%s6992_s2 + $0x324] sm:$0xf0]  ;;  %v4654_v59 = vor.u32 %v4027_v28, %v3588_v32  ;;  %1324 = vmatpush.bf16.msrb.mxu1 %v4614_v53 }
  0x3e   : > { %7356 = vst [vmem:[#allocation49_spill] sm:$0xff] %v4614_v53  ;;  %v3772_v35 = vld [vmem:[%s6992_s2 + $0x3a0] sm:$0xf]  ;;  %v4073_v9 = vld [vmem:[%s6992_s2 + $0x3a4] sm:$0xf0]  ;;  %v4658_v48 = vor.u32 %v4043_v61, %v3652_v41  ;;  %v4660_v49 = vor.u32 %v4057_v2, %v3708_v63  ;;  %1194 = vmatmul.bf16.gmra.mxu0 %v4627_v42  ;;  %1222 = vmatmul.bf16.gmra.mxu1 %v4641_v39 }
  0x3f   : > { %7357 = vst [vmem:[#allocation50_spill] sm:$0xff] %v4616_v40  ;;  %v3580_v6 = vld [vmem:[%s6992_s2 + $0x220] sm:$0xf]  ;;  %v4025_v55 = vld [vmem:[%s6992_s2 + $0x224] sm:$0xf0]  ;;  %v4670_v28 = vor.u32 %v4073_v9, %v3772_v35  ;;  %1250 = vmatmul.bf16.gmra.mxu2 %v4643_v23  ;;  %1297 = vmatpush.bf16.msrb.mxu0 %v4654_v59 }
  0x40   : > { %7358 = vst [vmem:[#allocation51_spill] sm:$0xff] %v4630_v47  ;;  %1353 = vmatpush.bf16.msrb.mxu2 %v4616_v40  ;;  %v3644_v32 = vld [vmem:[%s6992_s2 + $0x2a0] sm:$0xf]  ;;  %v4041_v0 = vld [vmem:[%s6992_s2 + $0x2a4] sm:$0xf0]  ;;  %1278 = vmatmul.bf16.gmra.mxu3 %v4651_v13  ;;  %v4682_v20 = vor.u32 %v4025_v55, %v3580_v6  ;;  %v407_v40 = vld [vmem:[%s4444_s14 + $0x150] sm:$0xff] }
  0x41   : > { %7359 = vst [vmem:[#allocation52_spill] sm:$0xff] %v4654_v59  ;;  %1381 = vmatpush.bf16.msrb.mxu3 %v4630_v47  ;;  %v3700_v41 = vld [vmem:[%s6992_s2 + $0x310] sm:$0xf]  ;;  %v4055_v61 = vld [vmem:[%s6992_s2 + $0x314] sm:$0xf0]  ;;  %1325 = vmatpush.bf16.msrb.mxu1 %v4658_v48  ;;  %v4695_v2 = vor.u32 %v4041_v0, %v3644_v32 }
  0x42   : > { %7360 = vst [vmem:[#allocation53_spill] sm:$0xff] %v4658_v48  ;;  %v3764_v63 = vld [vmem:[%s6992_s2 + $0x390] sm:$0xf]  ;;  %v4697_v35 = vor.u32 %v4055_v61, %v3700_v41  ;;  %v4071_v9 = vld [vmem:[%s6992_s2 + $0x394] sm:$0xf0] }
  0x43   : > { %7361 = vst [vmem:[#allocation54_spill] sm:$0xff] %v4660_v49  ;;  %v3572_v6 = vld [vmem:[%s6992_s2 + $0x210] sm:$0xf]  ;;  %v4023_v55 = vld [vmem:[%s6992_s2 + $0x214] sm:$0xf0]  ;;  %v4709_v48 = vor.u32 %v4071_v9, %v3764_v63  ;;  %1298 = vmatpush.bf16.msrb.mxu0 %v4682_v20 }
  0x44   : > { %7362 = vst [vmem:[#allocation55_spill] sm:$0xff] %v4670_v28  ;;  %1354 = vmatpush.bf16.msrb.mxu2 %v4660_v49  ;;  %v3636_v32 = vld [vmem:[%s6992_s2 + $0x290] sm:$0xf]  ;;  %v4039_v0 = vld [vmem:[%s6992_s2 + $0x294] sm:$0xf0] }
  0x45   : > { %7363 = vst [vmem:[#allocation56_spill] sm:$0xff] %v4682_v20  ;;  %1382 = vmatpush.bf16.msrb.mxu3 %v4670_v28  ;;  %v3692_v41 = vld [vmem:[%s6992_s2 + $0x300] sm:$0xf]  ;;  %v4053_v61 = vld [vmem:[%s6992_s2 + $0x304] sm:$0xf0]  ;;  %v4730_v28 = vor.u32 %v4023_v55, %v3572_v6  ;;  %1326 = vmatpush.bf16.msrb.mxu1 %v4695_v2  ;;  %v4734_v49 = vor.u32 %v4039_v0, %v3636_v32  ;;  %v399_v20 = vld [vmem:[%s4444_s14 + $0x110] sm:$0xff] }
  0x46   : > { %7364 = vst [vmem:[#allocation57_spill] sm:$0xff] %v4695_v2  ;;  %v3756_v63 = vld [vmem:[%s6992_s2 + $0x380] sm:$0xf]  ;;  %v4069_v9 = vld [vmem:[%s6992_s2 + $0x384] sm:$0xf0]  ;;  %v4736_v59 = vor.u32 %v4053_v61, %v3692_v41  ;;  %v4773_v22 = vpack.c.bf16 %v407_v40, %v399_v20 }
  0x47   : > { %7365 = vst [vmem:[#allocation58_spill] sm:$0xff] %v4697_v35  ;;  %v3564_v47 = vld [vmem:[%s6992_s2 + $0x200] sm:$0xf]  ;;  %v4021_v6 = vld [vmem:[%s6992_s2 + $0x204] sm:$0xf0]  ;;  %v4745_v55 = vor.u32 %v4069_v9, %v3756_v63  ;;  %1299 = vmatpush.bf16.msrb.mxu0 %v4730_v28  ;;  %v400_v63 = vld [vmem:[%s4444_s14 + $0x118] sm:$0xff] }
  0x48   : > { %7366 = vst [vmem:[#allocation59_spill] sm:$0xff] %v4709_v48  ;;  %1355 = vmatpush.bf16.msrb.mxu2 %v4697_v35  ;;  %v3628_v32 = vld [vmem:[%s6992_s2 + $0x280] sm:$0xf]  ;;  %v4037_v0 = vld [vmem:[%s6992_s2 + $0x284] sm:$0xf0]  ;;  %v4760_v53 = vor.u32 %v4021_v6, %v3564_v47  ;;  %v408_v9 = vld [vmem:[%s4444_s14 + $0x158] sm:$0xff] }
  0x49   : > { %7367 = vst [vmem:[#allocation60_spill] sm:$0xff] %v4730_v28  ;;  %1383 = vmatpush.bf16.msrb.mxu3 %v4709_v48  ;;  %v397_v41 = vld [vmem:[%s4444_s14 + $0x100] sm:$0xff]  ;;  %v398_v35 = vld [vmem:[%s4444_s14 + $0x108] sm:$0xff]  ;;  %1327 = vmatpush.bf16.msrb.mxu1 %v4734_v49  ;;  %v4766_v48 = vor.u32 %v4037_v0, %v3628_v32  ;;  %v4775_v27 = vpack.c.bf16 %v408_v9, %v400_v63  ;;  %v4002_v47 = vld [vmem:[%s6992_s2 + $0x174] sm:$0xf] }
  0x4a   : > { %7368 = vst [vmem:[#allocation61_spill] sm:$0xff] %v4734_v49  ;;  %v405_v61 = vld [vmem:[%s4444_s14 + $0x140] sm:$0xff]  ;;  %v406_v2 = vld [vmem:[%s4444_s14 + $0x148] sm:$0xff]  ;;  %v3494_v40 = vld [vmem:[%s6992_s2 + $0x178] sm:$0xf0] }
  0x4b   : > { %7369 = vst [vmem:[#allocation62_spill] sm:$0xff] %v4736_v59  ;;  %v4768_v54 = vpack.c.bf16 %v405_v61, %v397_v41  ;;  %v4771_v37 = vpack.c.bf16 %v406_v2, %v398_v35  ;;  %1300 = vmatpush.bf16.msrb.mxu0 %v4760_v53  ;;  %v4018_v20 = vld [vmem:[%s6992_s2 + $0x1f4] sm:$0xf]  ;;  %v4792_v2 = vor.u32 %v4002_v47, %v3494_v40  ;;  %v3558_v35 = vld [vmem:[%s6992_s2 + $0x1f8] sm:$0xf0]  ;;  %v378_v49 = vld [vmem:[%s4444_s14 + $0x68] sm:$0xff] }
  0x4c   : > { %7370 = vst [vmem:[#allocation63_spill] sm:$0xff] %v4745_v55  ;;  %1356 = vmatpush.bf16.msrb.mxu2 %v4736_v59  ;;  %v3970_v6 = vld [vmem:[%s6992_s2 + $0x74] sm:$0xf]  ;;  %v3366_v32 = vld [vmem:[%s6992_s2 + $0x78] sm:$0xf0]  ;;  %v4803_v0 = vor.u32 %v4018_v20, %v3558_v35  ;;  %v370_v59 = vld [vmem:[%s4444_s14 + $0x28] sm:$0xff] }
  0x4d   : > { %7371 = vst [vmem:[#allocation64_spill] sm:$0xff] %v4760_v53  ;;  %1384 = vmatpush.bf16.msrb.mxu3 %v4745_v55  ;;  %1328 = vmatpush.bf16.msrb.mxu1 %v4766_v48  ;;  %v4805_v41 = vor.u32 %v3970_v6, %v3366_v32  ;;  %v3986_v61 = vld [vmem:[%s6992_s2 + $0xf4] sm:$0xf]  ;;  %v3430_v63 = vld [vmem:[%s6992_s2 + $0xf8] sm:$0xf0] }
  0x4e   : > { %7372 = vst [vmem:[#allocation65_spill] sm:$0xff] %v4766_v48  ;;  %1199 = vmatmul.bf16.gmra.mxu0 %v4768_v54  ;;  %1227 = vmatmul.bf16.gmra.mxu1 %v4771_v37  ;;  %v4000_v9 = vld [vmem:[%s6992_s2 + $0x164] sm:$0xf]  ;;  %v4817_v47 = vor.u32 %v3986_v61, %v3430_v63  ;;  %v3486_v40 = vld [vmem:[%s6992_s2 + $0x168] sm:$0xf0]  ;;  %v371_v28 = vld [vmem:[%s4444_s14 + $0x30] sm:$0xff] }
  0x4f   : > { %1255 = vmatmul.bf16.gmra.mxu2 %v4773_v22  ;;  %7373 = vst [vmem:[#allocation66_spill] sm:$0xff] %v4792_v2  ;;  %v4016_v20 = vld [vmem:[%s6992_s2 + $0x1e4] sm:$0xf]  ;;  %v3550_v35 = vld [vmem:[%s6992_s2 + $0x1e8] sm:$0xf0]  ;;  %1405 = vmatpush.bf16.msra.mxu0 %v4805_v41  ;;  %v4830_v6 = vor.u32 %v4000_v9, %v3486_v40 }
  0x50   : > { %1283 = vmatmul.bf16.gmra.mxu3 %v4775_v27  ;;  %7374 = vst [vmem:[#allocation67_spill] sm:$0xff] %v4803_v0  ;;  %1461 = vmatpush.bf16.msra.mxu2 %v4792_v2  ;;  %v4832_v32 = vor.u32 %v4016_v20, %v3550_v35  ;;  %v3968_v61 = vld [vmem:[%s6992_s2 + $0x64] sm:$0xf]  ;;  %v3358_v63 = vld [vmem:[%s6992_s2 + $0x68] sm:$0xf0] }
  0x51   : > { %7375 = vst [vmem:[#allocation68_spill] sm:$0xff] %v4805_v41  ;;  %1489 = vmatpush.bf16.msra.mxu3 %v4803_v0  ;;  %v3984_v2 = vld [vmem:[%s6992_s2 + $0xe4] sm:$0xf]  ;;  %1433 = vmatpush.bf16.msra.mxu1 %v4817_v47  ;;  %v4844_v41 = vor.u32 %v3968_v61, %v3358_v63  ;;  %v3422_v9 = vld [vmem:[%s6992_s2 + $0xe8] sm:$0xf0] }
  0x52   : > { %7376 = vst [vmem:[#allocation69_spill] sm:$0xff] %v4817_v47  ;;  %v4849_v40 = vor.u32 %v3984_v2, %v3422_v9  ;;  %v413_v20 = vld [vmem:[%s4444_s14 + $0x180] sm:$0x1]  ;;  %v414_v35 = vld [vmem:[%s4444_s14 + $0x188] sm:$0x1] }
  0x53   : > { %7377 = vst [vmem:[#allocation70_spill] sm:$0xff] %v4830_v6  ;;  %v415_v0 = vld [vmem:[%s4444_s14 + $0x190] sm:$0x1]  ;;  %1406 = vmatpush.bf16.msra.mxu0 %v4844_v41  ;;  %v416_v48 = vld [vmem:[%s4444_s14 + $0x198] sm:$0x1]  ;;  %v4859_v61 = vpack.c.bf16 %v413_v20, %v413_v20  ;;  %v4861_v63 = vpack.c.bf16 %v414_v35, %v414_v35 }
  0x54   : > { %7378 = vst [vmem:[#allocation71_spill] sm:$0xff] %v4832_v32  ;;  %1462 = vmatpush.bf16.msra.mxu2 %v4830_v6  ;;  %v4863_v47 = vpack.c.bf16 %v415_v0, %v415_v0  ;;  %v4865_v2 = vpack.c.bf16 %v416_v48, %v416_v48  ;;  %v3998_v9 = vld [vmem:[%s6992_s2 + $0x154] sm:$0xf]  ;;  %v3478_v20 = vld [vmem:[%s6992_s2 + $0x158] sm:$0xf0] }
  0x55   : > { %7379 = vst [vmem:[#allocation72_spill] sm:$0xff] %v4844_v41  ;;  %1490 = vmatpush.bf16.msra.mxu3 %v4832_v32  ;;  %1434 = vmatpush.bf16.msra.mxu1 %v4849_v40  ;;  %v4014_v48 = vld [vmem:[%s6992_s2 + $0x1d4] sm:$0xf]  ;;  %v4880_v0 = vor.u32 %v3998_v9, %v3478_v20  ;;  %v3542_v35 = vld [vmem:[%s6992_s2 + $0x1d8] sm:$0xf0] }
  0x56   : > { %7380 = vst [vmem:[#allocation73_spill] sm:$0xff] %v4849_v40  ;;  %v3966_v40 = vld [vmem:[%s6992_s2 + $0x54] sm:$0xf]  ;;  %v3350_v41 = vld [vmem:[%s6992_s2 + $0x58] sm:$0xf0]  ;;  %v4891_v32 = vor.u32 %v4014_v48, %v3542_v35 }
  0x57   : > { %7381 = vst [vmem:[#allocation74_spill] sm:$0xff] %v4880_v0  ;;  %v4893_v6 = vor.u32 %v3966_v40, %v3350_v41  ;;  %v3982_v9 = vld [vmem:[%s6992_s2 + $0xd4] sm:$0xf]  ;;  %v3414_v20 = vld [vmem:[%s6992_s2 + $0xd8] sm:$0xf0] }
  0x58   : > { %7382 = vst [vmem:[#allocation75_spill] sm:$0xff] %v4891_v32  ;;  %v3996_v53 = vld [vmem:[%s6992_s2 + $0x144] sm:$0xf]  ;;  %1463 = vmatpush.bf16.msra.mxu2 %v4880_v0  ;;  %v4905_v55 = vor.u32 %v3982_v9, %v3414_v20  ;;  %v3470_v41 = vld [vmem:[%s6992_s2 + $0x148] sm:$0xf0] }
  0x59   : > { %7383 = vst [vmem:[#allocation76_spill] sm:$0xff] %v4893_v6  ;;  %v4012_v40 = vld [vmem:[%s6992_s2 + $0x1c4] sm:$0xf]  ;;  %v3534_v48 = vld [vmem:[%s6992_s2 + $0x1c8] sm:$0xf0]  ;;  %1491 = vmatpush.bf16.msra.mxu3 %v4891_v32  ;;  %1407 = vmatpush.bf16.msra.mxu0 %v4893_v6  ;;  %v4918_v35 = vor.u32 %v3996_v53, %v3470_v41 }
  0x5a   : > { %7384 = vst [vmem:[#allocation77_spill] sm:$0xff] %v4905_v55  ;;  %v4920_v9 = vor.u32 %v4012_v40, %v3534_v48  ;;  %v3964_v20 = vld [vmem:[%s6992_s2 + $0x44] sm:$0xf]  ;;  %v3342_v0 = vld [vmem:[%s6992_s2 + $0x48] sm:$0xf0]  ;;  %1435 = vmatpush.bf16.msra.mxu1 %v4905_v55 }
  0x5b   : > { %7385 = vst [vmem:[#allocation78_spill] sm:$0xff] %v4918_v35  ;;  %v3980_v32 = vld [vmem:[%s6992_s2 + $0xc4] sm:$0xf]  ;;  %v4932_v53 = vor.u32 %v3964_v20, %v3342_v0  ;;  %v3406_v41 = vld [vmem:[%s6992_s2 + $0xc8] sm:$0xf0]  ;;  %v372_v0 = vld [vmem:[%s4444_s14 + $0x38] sm:$0xff] }
  0x5c   : > { %7386 = vst [vmem:[#allocation79_spill] sm:$0xff] %v4920_v9  ;;  %v4937_v40 = vor.u32 %v3980_v32, %v3406_v41  ;;  %v369_v48 = vld [vmem:[%s4444_s14 + $0x20] sm:$0xff]  ;;  %1464 = vmatpush.bf16.msra.mxu2 %v4918_v35  ;;  %v380_v20 = vld [vmem:[%s4444_s14 + $0x78] sm:$0xff]  ;;  %v4953_v32 = vpack.c.bf16 %v378_v49, %v370_v59  ;;  %v4955_v41 = vpack.c.bf16 %v379_v14, %v371_v28  ;;  %v4010_v14 = vld [vmem:[%s6992_s2 + $0x1b4] sm:$0xf] }
  0x5d   : > { %7387 = vst [vmem:[#allocation80_spill] sm:$0xff] %v4932_v53  ;;  %v377_v6 = vld [vmem:[%s4444_s14 + $0x60] sm:$0xff]  ;;  %1492 = vmatpush.bf16.msra.mxu3 %v4920_v9  ;;  %1408 = vmatpush.bf16.msra.mxu0 %v4932_v53  ;;  %v4957_v1 = vpack.c.bf16 %v380_v20, %v372_v0  ;;  %v3462_v59 = vld [vmem:[%s6992_s2 + $0x138] sm:$0xf0]  ;;  %v386_v35 = vld [vmem:[%s4444_s14 + $0xa8] sm:$0xff] }
  0x5e   : > { %1204 = vmatmul.bf16.gmra.mxu0 %v4859_v61  ;;  %1232 = vmatmul.bf16.gmra.mxu1 %v4861_v63  ;;  %7388 = vst [vmem:[#allocation81_spill] sm:$0xff] %v4937_v40  ;;  %v4951_v55 = vpack.c.bf16 %v377_v6, %v369_v48  ;;  %v3526_v28 = vld [vmem:[%s6992_s2 + $0x1b8] sm:$0xf0]  ;;  %v3962_v6 = vld [vmem:[%s6992_s2 + $0x34] sm:$0xf] }
  0x5f   : > { %1260 = vmatmul.bf16.gmra.mxu2 %v4863_v47  ;;  %1436 = vmatpush.bf16.msra.mxu1 %v4937_v40  ;;  %7390 = vst [vmem:[#allocation83_spill] sm:$0xff] %v4953_v32  ;;  %v3994_v40 = vld [vmem:[%s6992_s2 + $0x134] sm:$0xf]  ;;  %v3334_v48 = vld [vmem:[%s6992_s2 + $0x38] sm:$0xf0]  ;;  %v4983_v0 = vor.u32 %v4010_v14, %v3526_v28 }
  0x60   : > { %1288 = vmatmul.bf16.gmra.mxu3 %v4865_v2  ;;  %7389 = vst [vmem:[#allocation82_spill] sm:$0xff] %v4951_v55  ;;  %v4972_v49 = vor.u32 %v3994_v40, %v3462_v59  ;;  %v4985_v20 = vor.u32 %v3962_v6, %v3334_v48  ;;  %v3978_v40 = vld [vmem:[%s6992_s2 + $0xb4] sm:$0xf]  ;;  %v3398_v59 = vld [vmem:[%s6992_s2 + $0xb8] sm:$0xf0] }
  0x61   : > { %7391 = vst [vmem:[#allocation84_spill] sm:$0xff] %v4955_v41  ;;  %v3992_v53 = vld [vmem:[%s6992_s2 + $0x124] sm:$0xf]  ;;  %v4997_v9 = vor.u32 %v3978_v40, %v3398_v59  ;;  %v3454_v14 = vld [vmem:[%s6992_s2 + $0x128] sm:$0xf0]  ;;  %1493 = vmatpush.bf16.msra.mxu3 %v4983_v0 }
  0x62   : > { %7392 = vst [vmem:[#allocation85_spill] sm:$0xff] %v4957_v1  ;;  %1465 = vmatpush.bf16.msra.mxu2 %v4972_v49  ;;  %v4008_v28 = vld [vmem:[%s6992_s2 + $0x1a4] sm:$0xf]  ;;  %v3518_v6 = vld [vmem:[%s6992_s2 + $0x1a8] sm:$0xf0]  ;;  %1409 = vmatpush.bf16.msra.mxu0 %v4985_v20  ;;  %v5010_v48 = vor.u32 %v3992_v53, %v3454_v14 }
  0x63   : > { %7393 = vst [vmem:[#allocation86_spill] sm:$0xff] %v4972_v49  ;;  %v5012_v40 = vor.u32 %v4008_v28, %v3518_v6  ;;  %v3960_v59 = vld [vmem:[%s6992_s2 + $0x24] sm:$0xf]  ;;  %v3326_v49 = vld [vmem:[%s6992_s2 + $0x28] sm:$0xf0]  ;;  %1437 = vmatpush.bf16.msra.mxu1 %v4997_v9 }
  0x64   : > { %7394 = vst [vmem:[#allocation87_spill] sm:$0xff] %v4983_v0  ;;  %v3976_v0 = vld [vmem:[%s6992_s2 + $0xa4] sm:$0xf]  ;;  %v5024_v53 = vor.u32 %v3960_v59, %v3326_v49  ;;  %v3390_v14 = vld [vmem:[%s6992_s2 + $0xa8] sm:$0xf0]  ;;  %v388_v49 = vld [vmem:[%s4444_s14 + $0xb8] sm:$0xff] }
  0x65   : > { %7395 = vst [vmem:[#allocation88_spill] sm:$0xff] %v4985_v20  ;;  %v5029_v28 = vor.u32 %v3976_v0, %v3390_v14  ;;  %v385_v6 = vld [vmem:[%s4444_s14 + $0xa0] sm:$0xff]  ;;  %1494 = vmatpush.bf16.msra.mxu3 %v5012_v40  ;;  %v396_v59 = vld [vmem:[%s4444_s14 + $0xf8] sm:$0xff]  ;;  %vm2091_vm1 = vsmask.f32 256 }
  0x66   : > { %7396 = vst [vmem:[#allocation89_spill] sm:$0xff] %v4997_v9  ;;  %v393_v20 = vld [vmem:[%s4444_s14 + $0xe0] sm:$0xff]  ;;  %1466 = vmatpush.bf16.msra.mxu2 %v5010_v48  ;;  %1410 = vmatpush.bf16.msra.mxu0 %v5024_v53  ;;  %vm2094_vm3 = vsmask.f32 4352  ;;  %vm2092_vm4 = vmand %vm2090_vm0, %vm2091_vm1 }
  0x67   : > { %7397 = vst [vmem:[#allocation90_spill] sm:$0xff] %v5010_v48  ;;  %1438 = vmatpush.bf16.msra.mxu1 %v5029_v28  ;;  %v5043_v9 = vpack.c.bf16 %v393_v20, %v385_v6  ;;  %v3958_v20 = vld [vmem:[%s6992_s2 + $0x14] sm:$0xf]  ;;  %v3318_v6 = vld [vmem:[%s6992_s2 + $0x18] sm:$0xf0]  ;;  %v402_v48 = vld [vmem:[%s4444_s14 + $0x128] sm:$0xff] }
  0x68   : > { %7398 = vst [vmem:[#allocation91_spill] sm:$0xff] %v5012_v40  ;;  %vm2095_vm5 = vmand %vm2093_vm2, %vm2094_vm3 }
  0x69   : > { %7399 = vst [vmem:[#allocation92_spill] sm:$0xff] %v5024_v53  ;;  %v3988_v53 = vld [vmem:[%s6992_s2 + $0x104] sm:$0xf]  ;;  %vm5932_vm6 = vmor %vm2095_vm5, %vm2092_vm4 }
  0x6a   : > { %7400 = vst [vmem:[#allocation93_spill] sm:$0xff] %v5029_v28  ;;  %v3990_v28 = vld [vmem:[%s6992_s2 + $0x114] sm:$0xf] }
  0x6b   : > { %7401 = vst [vmem:[#allocation94_spill] sm:$0xff] %v5043_v9 }
  0x6e   : > { %1301 = vmatmul.bf16.vlgmr.msrb.gmra.mxu0 %v4951_v55  ;;  %1329 = vmatmul.bf16.vlgmr.msrb.gmra.mxu1 %v4953_v32  ;;  %v395_v32 = vld [vmem:[%s4444_s14 + $0xf0] sm:$0xff]  ;;  %v5049_v55 = vpack.c.bf16 %v396_v59, %v388_v49  ;;  %v5077_v59 = vor.u32 %v3958_v20, %v3318_v6  ;;  %v3502_v20 = vld [vmem:[%s6992_s2 + $0x188] sm:$0xf0] }
  0x6f   : > { %1357 = vmatmul.bf16.vlgmr.msrb.gmra.mxu2 %v4955_v41  ;;  %v387_v41 = vld [vmem:[%s4444_s14 + $0xb0] sm:$0xff] }
  0x70   : > { %1385 = vmatmul.bf16.vlgmr.msrb.gmra.mxu3 %v4957_v1  ;;  %v394_v1 = vld [vmem:[%s4444_s14 + $0xe8] sm:$0xff]  ;;  %v5047_v14 = vpack.c.bf16 %v395_v32, %v387_v41  ;;  %7404 = vst [vmem:[#allocation97_spill] sm:$0xff] %v5049_v55  ;;  %v3510_v41 = vld [vmem:[%s6992_s2 + $0x198] sm:$0xf0]  ;;  %1411 = vmatpush.bf16.msra.mxu0 %v5077_v59 }
  0x71   : > { %v5045_v0 = vpack.c.bf16 %v394_v1, %v386_v35  ;;  %v3446_v1 = vld [vmem:[%s6992_s2 + $0x118] sm:$0xf0]  ;;  %v4006_v35 = vld [vmem:[%s6992_s2 + $0x194] sm:$0xf]  ;;  %7407 = vst [vmem:[#allocation100_spill] sm:$0xff] %v5077_v59  ;;  %v409_v59 = vld [vmem:[%s4444_s14 + $0x160] sm:$0xff] }
  0x72   : > { %7403 = vst [vmem:[#allocation96_spill] sm:$0xff] %v5047_v14  ;;  %v5064_v32 = vor.u32 %v3990_v28, %v3446_v1  ;;  %v5075_v49 = vor.u32 %v4006_v35, %v3510_v41  ;;  %v3974_v28 = vld [vmem:[%s6992_s2 + $0x94] sm:$0xf]  ;;  %v3382_v1 = vld [vmem:[%s6992_s2 + $0x98] sm:$0xf0] }
  0x73   : > { %7402 = vst [vmem:[#allocation95_spill] sm:$0xff] %v5045_v0  ;;  %v5089_v40 = vor.u32 %v3974_v28, %v3382_v1  ;;  %v3438_v35 = vld [vmem:[%s6992_s2 + $0x108] sm:$0xf0]  ;;  %v4004_v41 = vld [vmem:[%s6992_s2 + $0x184] sm:$0xf] }
  0x74   : > { %7405 = vst [vmem:[#allocation98_spill] sm:$0xff] %v5064_v32  ;;  %1467 = vmatpush.bf16.msra.mxu2 %v5064_v32  ;;  %1495 = vmatpush.bf16.msra.mxu3 %v5075_v49  ;;  %v5102_v6 = vor.u32 %v3988_v53, %v3438_v35  ;;  %v5104_v28 = vor.u32 %v4004_v41, %v3502_v20  ;;  %v3956_v1 = vld [vmem:[%s6992_s2 + $0x4] sm:$0xf]  ;;  %v3310_v32 = vld [vmem:[%s6992_s2 + $0x8] sm:$0xf0] }
  0x75   : > { %7406 = vst [vmem:[#allocation99_spill] sm:$0xff] %v5075_v49  ;;  %v3972_v49 = vld [vmem:[%s6992_s2 + $0x84] sm:$0xf]  ;;  %1439 = vmatpush.bf16.msra.mxu1 %v5089_v40  ;;  %v5116_v53 = vor.u32 %v3956_v1, %v3310_v32  ;;  %v3374_v35 = vld [vmem:[%s6992_s2 + $0x88] sm:$0xf0]  ;;  %v404_v32 = vld [vmem:[%s4444_s14 + $0x138] sm:$0xff] }
  0x76   : > { %7408 = vst [vmem:[#allocation101_spill] sm:$0xff] %v5089_v40  ;;  %v5121_v41 = vor.u32 %v3972_v49, %v3374_v35  ;;  %v401_v20 = vld [vmem:[%s4444_s14 + $0x120] sm:$0xff]  ;;  %v412_v1 = vld [vmem:[%s4444_s14 + $0x178] sm:$0xff] }
  0x77   : > { %7409 = vst [vmem:[#allocation102_spill] sm:$0xff] %v5102_v6  ;;  %1412 = vmatpush.bf16.msra.mxu0 %v5116_v53  ;;  %v5135_v40 = vpack.c.bf16 %v409_v59, %v401_v20  ;;  %v4066_v59 = vld [vmem:[%s6992_s2 + $0x374] sm:$0xf] }
  0x78   : > { %7410 = vst [vmem:[#allocation103_spill] sm:$0xff] %v5104_v28  ;;  %1468 = vmatpush.bf16.msra.mxu2 %v5102_v6  ;;  %1496 = vmatpush.bf16.msra.mxu3 %v5104_v28  ;;  %v4034_v20 = vld [vmem:[%s6992_s2 + $0x274] sm:$0xf]  ;;  %v419_v28 = vld [vmem:[%s4444_s14 + $0x1b0] sm:$0x1] }
  0x79   : > { %7411 = vst [vmem:[#allocation104_spill] sm:$0xff] %v5116_v53  ;;  %1440 = vmatpush.bf16.msra.mxu1 %v5121_v41  ;;  %v418_v53 = vld [vmem:[%s4444_s14 + $0x1a8] sm:$0x1] }
  0x7a   : > { %7412 = vst [vmem:[#allocation105_spill] sm:$0xff] %v5121_v41 }
  0x7b   : > { %7413 = vst [vmem:[#allocation106_spill] sm:$0xff] %v5135_v40 }
  0x7e   : > { %1306 = vmatmul.bf16.gmra.mxu0 %v5043_v9  ;;  %1334 = vmatmul.bf16.gmra.mxu1 %v5045_v0  ;;  %v411_v0 = vld [vmem:[%s4444_s14 + $0x170] sm:$0xff]  ;;  %v5141_v9 = vpack.c.bf16 %v412_v1, %v404_v32  ;;  %v3622_v32 = vld [vmem:[%s6992_s2 + $0x278] sm:$0xf0] }
  0x7f   : > { %1362 = vmatmul.bf16.gmra.mxu2 %v5047_v14  ;;  %v403_v14 = vld [vmem:[%s4444_s14 + $0x130] sm:$0xff]  ;;  %v5169_v41 = vor.u32 %v4034_v20, %v3622_v32  ;;  %v4064_v20 = vld [vmem:[%s6992_s2 + $0x364] sm:$0xf]  ;;  %v3742_v32 = vld [vmem:[%s6992_s2 + $0x368] sm:$0xf0] }
  0x80   : > { %1390 = vmatmul.bf16.gmra.mxu3 %v5049_v55  ;;  %v410_v55 = vld [vmem:[%s4444_s14 + $0x168] sm:$0xff]  ;;  %v5139_v35 = vpack.c.bf16 %v411_v0, %v403_v14  ;;  %7416 = vst [vmem:[#allocation109_spill] sm:$0xff] %v5141_v9  ;;  %v3814_v14 = vld [vmem:[%s6992_s2 + $0x3f8] sm:$0xf0] }
  0x81   : > { %v5137_v49 = vpack.c.bf16 %v410_v55, %v402_v48  ;;  %v3750_v55 = vld [vmem:[%s6992_s2 + $0x378] sm:$0xf0]  ;;  %v4082_v48 = vld [vmem:[%s6992_s2 + $0x3f4] sm:$0xf]  ;;  %7419 = vst [vmem:[#allocation112_spill] sm:$0xff] %v5169_v41  ;;  %1517 = vmatpush.bf16.msrb.mxu0 %v5169_v41 }
  0x82   : > { %7415 = vst [vmem:[#allocation108_spill] sm:$0xff] %v5139_v35  ;;  %v5156_v0 = vor.u32 %v4066_v59, %v3750_v55  ;;  %v5167_v1 = vor.u32 %v4082_v48, %v3814_v14  ;;  %v417_v59 = vld [vmem:[%s4444_s14 + $0x1a0] sm:$0x1]  ;;  %v4050_v55 = vld [vmem:[%s6992_s2 + $0x2f4] sm:$0xf] }
  0x83   : > { %7414 = vst [vmem:[#allocation107_spill] sm:$0xff] %v5137_v49  ;;  %v3686_v48 = vld [vmem:[%s6992_s2 + $0x2f8] sm:$0xf0]  ;;  %v4080_v41 = vld [vmem:[%s6992_s2 + $0x3e4] sm:$0xf] }
  0x84   : > { %7417 = vst [vmem:[#allocation110_spill] sm:$0xff] %v5156_v0  ;;  %1573 = vmatpush.bf16.msrb.mxu2 %v5156_v0  ;;  %1601 = vmatpush.bf16.msrb.mxu3 %v5167_v1  ;;  %v5181_v14 = vor.u32 %v4050_v55, %v3686_v48  ;;  %v3806_v0 = vld [vmem:[%s6992_s2 + $0x3e8] sm:$0xf0]  ;;  %v4032_v55 = vld [vmem:[%s6992_s2 + $0x264] sm:$0xf] }
  0x85   : > { %7418 = vst [vmem:[#allocation111_spill] sm:$0xff] %v5167_v1  ;;  %v5192_v1 = vor.u32 %v4064_v20, %v3742_v32  ;;  %v3614_v48 = vld [vmem:[%s6992_s2 + $0x268] sm:$0xf0]  ;;  %v5206_v6 = vor.u32 %v4080_v41, %v3806_v0  ;;  %v420_v32 = vld [vmem:[%s4444_s14 + $0x1b8] sm:$0x1] }
  0x86   : > { %7420 = vst [vmem:[#allocation113_spill] sm:$0xff] %v5181_v14  ;;  %1545 = vmatpush.bf16.msrb.mxu1 %v5181_v14  ;;  %v5208_v20 = vor.u32 %v4032_v55, %v3614_v48  ;;  %v4048_v41 = vld [vmem:[%s6992_s2 + $0x2e4] sm:$0xf]  ;;  %v3678_v0 = vld [vmem:[%s6992_s2 + $0x2e8] sm:$0xf0] }
  0x87   : > { %7421 = vst [vmem:[#allocation114_spill] sm:$0xff] %v5192_v1  ;;  %v4078_v55 = vld [vmem:[%s6992_s2 + $0x3d4] sm:$0xf] }
  0x88   : > { %7422 = vst [vmem:[#allocation115_spill] sm:$0xff] %v5206_v6  ;;  %1574 = vmatpush.bf16.msrb.mxu2 %v5192_v1  ;;  %1602 = vmatpush.bf16.msrb.mxu3 %v5206_v6 }
  0x89   : > { %7423 = vst [vmem:[#allocation116_spill] sm:$0xff] %v5208_v20  ;;  %1518 = vmatpush.bf16.msrb.mxu0 %v5208_v20 }
  0x8e   : > { %1311 = vmatmul.bf16.gmra.mxu0 %v5135_v40  ;;  %1339 = vmatmul.bf16.gmra.mxu1 %v5137_v49  ;;  %v5218_v49 = vpack.c.bf16 %v419_v28, %v419_v28  ;;  %v5220_v40 = vpack.c.bf16 %v420_v32, %v420_v32  ;;  %v4062_v28 = vld [vmem:[%s6992_s2 + $0x354] sm:$0xf]  ;;  %v3798_v32 = vld [vmem:[%s6992_s2 + $0x3d8] sm:$0xf0] }
  0x8f   : > { %1367 = vmatmul.bf16.gmra.mxu2 %v5139_v35  ;;  %v5216_v35 = vpack.c.bf16 %v418_v53, %v418_v53  ;;  %v3734_v53 = vld [vmem:[%s6992_s2 + $0x358] sm:$0xf0] }
  0x90   : > { %1395 = vmatmul.bf16.gmra.mxu3 %v5141_v9  ;;  %v5212_v9 = vpack.c.bf16 %v417_v59, %v417_v59  ;;  %7424 = vst [vmem:[#allocation117_spill] sm:$0xff] %v5218_v49  ;;  %v5229_v59 = vor.u32 %v4048_v41, %v3678_v0  ;;  %v5244_v48 = vor.u32 %v4062_v28, %v3734_v53  ;;  %v4030_v41 = vld [vmem:[%s6992_s2 + $0x254] sm:$0xf]  ;;  %v3606_v0 = vld [vmem:[%s6992_s2 + $0x258] sm:$0xf0] }
  0x91   : > { %7425 = vst [vmem:[#allocation118_spill] sm:$0xff] %v5220_v40  ;;  %v5257_v20 = vor.u32 %v4030_v41, %v3606_v0  ;;  %v5265_v28 = vld [vmem:[%s6993_s3] sm:$0x3]  ;;  %v4046_v53 = vld [vmem:[%s6992_s2 + $0x2d4] sm:$0xf] }
  0x92   : > { %7426 = vst [vmem:[#allocation119_spill] sm:$0xff] %v5229_v59  ;;  %1546 = vmatpush.bf16.msrb.mxu1 %v5229_v59  ;;  %v5255_v59 = vor.u32 %v4078_v55, %v3798_v32  ;;  %1575 = vmatpush.bf16.msrb.mxu2 %v5244_v48  ;;  %v3670_v55 = vld [vmem:[%s6992_s2 + $0x2d8] sm:$0xf0]  ;;  %v4060_v41 = vld [vmem:[%s6992_s2 + $0x344] sm:$0xf]  ;;  %v5296_v6 = vperm.slane %v5265_v28, 0 }
  0x93   : > { %7427 = vst [vmem:[#allocation120_spill] sm:$0xff] %v5244_v48  ;;  %1519 = vmatpush.bf16.msrb.mxu0 %v5257_v20  ;;  %v5273_v32 = vor.u32 %v4046_v53, %v3670_v55  ;;  %v3726_v0 = vld [vmem:[%s6992_s2 + $0x348] sm:$0xf0]  ;;  %v4028_v53 = vld [vmem:[%s6992_s2 + $0x244] sm:$0xf] }
  0x94   : > { %7428 = vst [vmem:[#allocation121_spill] sm:$0xff] %v5255_v59  ;;  %1603 = vmatpush.bf16.msrb.mxu3 %v5255_v59  ;;  %v5284_v59 = vor.u32 %v4060_v41, %v3726_v0  ;;  %v3790_v48 = vld [vmem:[%s6992_s2 + $0x3c8] sm:$0xf0] }
  0x95   : > { %7429 = vst [vmem:[#allocation122_spill] sm:$0xff] %v5257_v20  ;;  %v4076_v20 = vld [vmem:[%s6992_s2 + $0x3c4] sm:$0xf]  ;;  %v3598_v55 = vld [vmem:[%s6992_s2 + $0x248] sm:$0xf0] }
  0x96   : > { %7430 = vst [vmem:[#allocation123_spill] sm:$0xff] %v5265_v28  ;;  %1547 = vmatpush.bf16.msrb.mxu1 %v5273_v32  ;;  %v5299_v1 = vor.u32 %v4076_v20, %v3790_v48  ;;  %v5301_v41 = vor.u32 %v4028_v53, %v3598_v55  ;;  %1576 = vmatpush.bf16.msrb.mxu2 %v5284_v59  ;;  %v4044_v28 = vld [vmem:[%s6992_s2 + $0x2c4] sm:$0xf]  ;;  %v3662_v20 = vld [vmem:[%s6992_s2 + $0x2c8] sm:$0xf0] }
  0x97   : > { %7431 = vst [vmem:[#allocation124_spill] sm:$0xff] %v5273_v32  ;;  %v5314_v53 = vor.u32 %v4044_v28, %v3662_v20  ;;  %v4058_v55 = vld [vmem:[%s6992_s2 + $0x334] sm:$0xf] }
  0x98   : > { %7432 = vst [vmem:[#allocation125_spill] sm:$0xff] %v5284_v59  ;;  %1604 = vmatpush.bf16.msrb.mxu3 %v5299_v1  ;;  %1520 = vmatpush.bf16.msrb.mxu0 %v5301_v41 }
  0x99   : > { %7433 = vst [vmem:[#allocation126_spill] sm:$0xff] %v5296_v6 }
  0x9a   : > { %7434 = vst [vmem:[#allocation127_spill] sm:$0xff] %v5299_v1  ;;  %1548 = vmatpush.bf16.msrb.mxu1 %v5314_v53 }
  0x9b   : > { %7435 = vst [vmem:[#allocation128_spill] sm:$0xff] %v5301_v41 }
  0x9c   : > { %7436 = vst [vmem:[#allocation129_spill] sm:$0xff] %v5314_v53 }
  0x9e   : > { %1316 = vmatmul.bf16.gmra.mxu0 %v5212_v9  ;;  %1344 = vmatmul.bf16.gmra.mxu1 %v5216_v35 }
  0x9f   : > { %1372 = vmatmul.bf16.gmra.mxu2 %v5218_v49 }
  0xa0   : > { %1400 = vmatmul.bf16.gmra.mxu3 %v5220_v40 }
  0xaa   : > { %v1190_v0 = vpop.f32.mrf.mxu0 }
  0xab   : > { %v1191_v14 = vadd.f32 %v1190_v0, %v5296_v6  ;;  %v1218_v40 = vpop.f32.mrf.mxu1 }
  0xad   : > { %v1219_v48 = vadd.f32 %v1218_v40, %v1191_v14  ;;  %v3718_v40 = vld [vmem:[%s6992_s2 + $0x338] sm:$0xf0] }
  0xae   : > { %1413 = vmatmul.bf16.vlgmr.msra.gmra.mxu0 %v4469_v4  ;;  %1441 = vmatmul.bf16.vlgmr.msra.gmra.mxu1 %v4477_v15  ;;  %v4074_v4 = vld [vmem:[%s6992_s2 + $0x3b4] sm:$0xf]  ;;  %v5329_v14 = vor.u32 %v4058_v55, %v3718_v40  ;;  %v3782_v15 = vld [vmem:[%s6992_s2 + $0x3b8] sm:$0xf0] }
  0xaf   : > { %1469 = vmatmul.bf16.vlgmr.msra.gmra.mxu2 %v4479_v19  ;;  %v4026_v19 = vld [vmem:[%s6992_s2 + $0x234] sm:$0xf]  ;;  %v5340_v0 = vor.u32 %v4074_v4, %v3782_v15 }
  0xb0   : > { %1497 = vmatmul.bf16.vlgmr.msra.gmra.mxu3 %v4488_v26  ;;  %7437 = vst [vmem:[#allocation130_spill] sm:$0xff] %v5329_v14  ;;  %v3590_v26 = vld [vmem:[%s6992_s2 + $0x238] sm:$0xf0]  ;;  %1577 = vmatpush.bf16.msrb.mxu2 %v5329_v14  ;;  %v4042_v4 = vld [vmem:[%s6992_s2 + $0x2b4] sm:$0xf] }
  0xb1   : > { %7438 = vst [vmem:[#allocation131_spill] sm:$0xff] %v5340_v0  ;;  %v5342_v20 = vor.u32 %v4026_v19, %v3590_v26  ;;  %1605 = vmatpush.bf16.msrb.mxu3 %v5340_v0  ;;  %v4056_v26 = vld [vmem:[%s6992_s2 + $0x324] sm:$0xf] }
  0xb2   : > { %v1246_v28 = vpop.f32.mrf.mxu2  ;;  %v1192_v40 = vpop.f32.mrf.mxu0 }
  0xb3   : > { %7439 = vst [vmem:[#allocation132_spill] sm:$0xff] %v5342_v20  ;;  %v1247_v53 = vadd.f32 %v1246_v28, %v1219_v48  ;;  %v1274_v55 = vpop.f32.mrf.mxu3  ;;  %v1193_v41 = vadd.f32 %v1192_v40, %v5296_v6  ;;  %v1220_v1 = vpop.f32.mrf.mxu1  ;;  %1521 = vmatpush.bf16.msrb.mxu0 %v5342_v20  ;;  %v3654_v48 = vld [vmem:[%s6992_s2 + $0x2b8] sm:$0xf0]  ;;  %v4072_v28 = vld [vmem:[%s6992_s2 + $0x3a4] sm:$0xf] }
  0xb4   : > { %v5356_v19 = vor.u32 %v4042_v4, %v3654_v48  ;;  %v3582_v40 = vld [vmem:[%s6992_s2 + $0x228] sm:$0xf0] }
  0xb5   : > { %v5348_v59 = vadd.f32 %v1274_v55, %v1247_v53  ;;  %v1221_v15 = vadd.f32 %v1220_v1, %v1193_v41  ;;  %v3710_v53 = vld [vmem:[%s6992_s2 + $0x328] sm:$0xf0]  ;;  %v4024_v41 = vld [vmem:[%s6992_s2 + $0x224] sm:$0xf] }
  0xb6   : > { %v5367_v55 = vor.u32 %v4056_v26, %v3710_v53  ;;  %v3774_v1 = vld [vmem:[%s6992_s2 + $0x3a8] sm:$0xf0]  ;;  %1549 = vmatpush.bf16.msrb.mxu1 %v5356_v19  ;;  %v5381_v48 = vor.u32 %v4024_v41, %v3582_v40 }
  0xb7   : > { %v5379_v4 = vor.u32 %v4072_v28, %v3774_v1  ;;  %v4040_v28 = vld [vmem:[%s6992_s2 + $0x2a4] sm:$0xf]  ;;  %v3646_v1 = vld [vmem:[%s6992_s2 + $0x2a8] sm:$0xf0] }
  0xb8   : > { %1578 = vmatpush.bf16.msrb.mxu2 %v5367_v55  ;;  %1522 = vmatpush.bf16.msrb.mxu0 %v5381_v48  ;;  %v5396_v40 = vor.u32 %v4040_v28, %v3646_v1 }
  0xb9   : > { %1606 = vmatpush.bf16.msrb.mxu3 %v5379_v4 }
  0xba   : > { %v1248_v26 = vpop.f32.mrf.mxu2  ;;  %7440 = vst [vmem:[#allocation133_spill] sm:$0xff] %v5396_v40  ;;  %1550 = vmatpush.bf16.msrb.mxu1 %v5396_v40 }
  0xbb   : > { %v1249_v53 = vadd.f32 %v1248_v26, %v1221_v15  ;;  %v1276_v20 = vpop.f32.mrf.mxu3  ;;  %v1195_v0 = vpop.f32.mrf.mxu0 }
  0xbc   : > { %v1196_v14 = vadd.f32 %v1195_v0, %v5296_v6  ;;  %v1223_v32 = vpop.f32.mrf.mxu1  ;;  %v4054_v0 = vld [vmem:[%s6992_s2 + $0x314] sm:$0xf] }
  0xbd   : > { %v5387_v49 = vadd.f32 %v1276_v20, %v1249_v53 }
  0xbe   : > { %v1224_v41 = vadd.f32 %v1223_v32, %v1196_v14  ;;  %1418 = vmatmul.bf16.gmra.mxu0 %v4627_v42  ;;  %1446 = vmatmul.bf16.gmra.mxu1 %v4641_v39  ;;  %v3702_v32 = vld [vmem:[%s6992_s2 + $0x318] sm:$0xf0]  ;;  %v4070_v42 = vld [vmem:[%s6992_s2 + $0x394] sm:$0xf] }
  0xbf   : > { %1474 = vmatmul.bf16.gmra.mxu2 %v4643_v23  ;;  %v5411_v14 = vor.u32 %v4054_v0, %v3702_v32  ;;  %v3766_v39 = vld [vmem:[%s6992_s2 + $0x398] sm:$0xf0]  ;;  %v4022_v23 = vld [vmem:[%s6992_s2 + $0x214] sm:$0xf] }
  0xc0   : > { %1502 = vmatmul.bf16.gmra.mxu3 %v4651_v13  ;;  %v3574_v13 = vld [vmem:[%s6992_s2 + $0x218] sm:$0xf0]  ;;  %v5422_v15 = vor.u32 %v4070_v42, %v3766_v39  ;;  %v4038_v42 = vld [vmem:[%s6992_s2 + $0x294] sm:$0xf]  ;;  %v4052_v39 = vld [vmem:[%s6992_s2 + $0x304] sm:$0xf] }
  0xc1   : > { %v5424_v26 = vor.u32 %v4022_v23, %v3574_v13  ;;  %1579 = vmatpush.bf16.msrb.mxu2 %v5411_v14 }
  0xc2   : > { %v1251_v20 = vpop.f32.mrf.mxu2  ;;  %7441 = vst [vmem:[#allocation134_spill] sm:$0xff] %v5422_v15  ;;  %1607 = vmatpush.bf16.msrb.mxu3 %v5422_v15 }
  0xc3   : > { %7442 = vst [vmem:[#allocation135_spill] sm:$0xff] %v5424_v26  ;;  %v1252_v53 = vadd.f32 %v1251_v20, %v1224_v41  ;;  %v1279_v28 = vpop.f32.mrf.mxu3  ;;  %v1197_v1 = vpop.f32.mrf.mxu0  ;;  %1523 = vmatpush.bf16.msrb.mxu0 %v5424_v26  ;;  %v3638_v41 = vld [vmem:[%s6992_s2 + $0x298] sm:$0xf0]  ;;  %v3694_v20 = vld [vmem:[%s6992_s2 + $0x308] sm:$0xf0] }
  0xc4   : > { %v1198_v0 = vadd.f32 %v1197_v1, %v5296_v6  ;;  %v1225_v32 = vpop.f32.mrf.mxu1  ;;  %v5441_v13 = vor.u32 %v4038_v42, %v3638_v41  ;;  %v5452_v1 = vor.u32 %v4052_v39, %v3694_v20  ;;  %v4036_v39 = vld [vmem:[%s6992_s2 + $0x284] sm:$0xf]  ;;  %v3630_v20 = vld [vmem:[%s6992_s2 + $0x288] sm:$0xf0] }
  0xc5   : > { %v5430_v40 = vadd.f32 %v1279_v28, %v1252_v53  ;;  %v4068_v53 = vld [vmem:[%s6992_s2 + $0x384] sm:$0xf]  ;;  %v3758_v28 = vld [vmem:[%s6992_s2 + $0x388] sm:$0xf0] }
  0xc6   : > { %v1226_v23 = vadd.f32 %v1225_v32, %v1198_v0  ;;  %7443 = vst [vmem:[#allocation136_spill] sm:$0xff] %v5441_v13  ;;  %v5454_v26 = vor.u32 %v4068_v53, %v3758_v28  ;;  %v4020_v0 = vld [vmem:[%s6992_s2 + $0x204] sm:$0xf]  ;;  %v3566_v32 = vld [vmem:[%s6992_s2 + $0x208] sm:$0xf0]  ;;  %1551 = vmatpush.bf16.msrb.mxu1 %v5441_v13  ;;  %1580 = vmatpush.bf16.msrb.mxu2 %v5452_v1 }
  0xc7   : > { %7444 = vst [vmem:[#allocation137_spill] sm:$0xff] %v5452_v1  ;;  %v5463_v42 = vor.u32 %v4020_v0, %v3566_v32  ;;  %v5475_v32 = vor.u32 %v4036_v39, %v3630_v20 }
  0xc8   : > { %7445 = vst [vmem:[#allocation138_spill] sm:$0xff] %v5454_v26  ;;  %1608 = vmatpush.bf16.msrb.mxu3 %v5454_v26 }
  0xc9   : > { %7446 = vst [vmem:[#allocation139_spill] sm:$0xff] %v5463_v42  ;;  %1524 = vmatpush.bf16.msrb.mxu0 %v5463_v42 }
  0xca   : > { %v1253_v41 = vpop.f32.mrf.mxu2  ;;  %1685 = vmatpush.bf16.msra.mxu2 %v4157_v8  ;;  %7447 = vst [vmem:[#allocation140_spill] sm:$0xff] %v5475_v32  ;;  %1552 = vmatpush.bf16.msrb.mxu1 %v5475_v32 }
  0xcb   : > { %v1254_v53 = vadd.f32 %v1253_v41, %v1226_v23  ;;  %v1281_v28 = vpop.f32.mrf.mxu3  ;;  %v1200_v0 = vpop.f32.mrf.mxu0 }
  0xcc   : > { %1713 = vmatpush.bf16.msra.mxu3 %v4169_v12  ;;  %v1201_v42 = vadd.f32 %v1200_v0, %v5296_v6  ;;  %v1228_v26 = vpop.f32.mrf.mxu1 }
  0xcd   : > { %1629 = vmatpush.bf16.msra.mxu0 %v4144_v3  ;;  %v5480_v1 = vadd.f32 %v1281_v28, %v1254_v53 }
  0xce   : > { %v1229_v13 = vadd.f32 %v1228_v26, %v1201_v42  ;;  %1423 = vmatmul.bf16.gmra.mxu0 %v4768_v54  ;;  %1657 = vmatpush.bf16.msra.mxu1 %v4155_v7  ;;  %v468_v7 = vld [vmem:[%s5600_s19 + $0x78] sm:$0xff] }
  0xcf   : > { %1451 = vmatmul.bf16.gmra.mxu1 %v4771_v37  ;;  %1479 = vmatmul.bf16.gmra.mxu2 %v4773_v22 }
  0xd0   : > { %1507 = vmatmul.bf16.gmra.mxu3 %v4775_v27  ;;  %1686 = vmatpush.bf16.msra.mxu2 %v4196_v21  ;;  %v467_v21 = vld [vmem:[%s5600_s19 + $0x70] sm:$0xff] }
  0xd1   : > { %1714 = vmatpush.bf16.msra.mxu3 %v4207_v25  ;;  %1630 = vmatpush.bf16.msra.mxu0 %v4182_v16  ;;  %v458_v16 = vld [vmem:[%s5600_s19 + $0x28] sm:$0xff]  ;;  %v459_v25 = vld [vmem:[%s5600_s19 + $0x30] sm:$0xff] }
  0xd2   : > { %v1256_v23 = vpop.f32.mrf.mxu2  ;;  %1658 = vmatpush.bf16.msra.mxu1 %v4184_v17  ;;  %v457_v17 = vld [vmem:[%s5600_s19 + $0x20] sm:$0xff] }
  0xd3   : > { %v1257_v26 = vadd.f32 %v1256_v23, %v1229_v13  ;;  %v1284_v42 = vpop.f32.mrf.mxu3  ;;  %v1202_v54 = vpop.f32.mrf.mxu0 }
  0xd4   : > { %v1203_v41 = vadd.f32 %v1202_v54, %v5296_v6  ;;  %v1230_v39 = vpop.f32.mrf.mxu1  ;;  %1687 = vmatpush.bf16.msra.mxu2 %v4234_v34 }
  0xd5   : > { %v5494_v22 = vadd.f32 %v1284_v42, %v1257_v26  ;;  %1715 = vmatpush.bf16.msra.mxu3 %v4246_v38  ;;  %1631 = vmatpush.bf16.msra.mxu0 %v4219_v29 }
  0xd6   : > { %v1231_v27 = vadd.f32 %v1230_v39, %v1203_v41  ;;  %1659 = vmatpush.bf16.msra.mxu1 %v4232_v33 }
  0xd8   : > { %1688 = vmatpush.bf16.msra.mxu2 %v4270_v46 }
  0xd9   : > { %1716 = vmatpush.bf16.msra.mxu3 %v4282_v50  ;;  %1632 = vmatpush.bf16.msra.mxu0 %v4264_v44 }
  0xda   : > { %v1258_v37 = vpop.f32.mrf.mxu2  ;;  %1660 = vmatpush.bf16.msra.mxu1 %v4268_v45  ;;  %v7524_v45 = vld [vmem:[#allocation99_spill] sm:$0xff] }
  0xdb   : > { %v1259_v13 = vadd.f32 %v1258_v37, %v1231_v27  ;;  %v1286_v20 = vpop.f32.mrf.mxu3  ;;  %v1205_v53 = vpop.f32.mrf.mxu0 }
  0xdc   : > { %v1206_v28 = vadd.f32 %v1205_v53, %v5296_v6  ;;  %v1233_v0 = vpop.f32.mrf.mxu1  ;;  %1689 = vmatpush.bf16.msra.mxu2 %v4306_v58  ;;  %v7448_v53 = vld [vmem:[#allocation82_spill] sm:$0xff]  ;;  %v7522_v58 = vld [vmem:[#allocation93_spill] sm:$0xff] }
  0xdd   : > { %v5505_v23 = vadd.f32 %v1286_v20, %v1259_v13  ;;  %1717 = vmatpush.bf16.msra.mxu3 %v4318_v62  ;;  %1633 = vmatpush.bf16.msra.mxu0 %v4300_v56  ;;  %v494_v56 = vld [vmem:[%s5600_s19 + $0x148] sm:$0xff]  ;;  %v495_v62 = vld [vmem:[%s5600_s19 + $0x150] sm:$0xff] }
  0xde   : > { %v1234_v26 = vadd.f32 %v1233_v0, %v1206_v28  ;;  %1428 = vmatmul.bf16.gmra.mxu0 %v4859_v61  ;;  %1661 = vmatpush.bf16.msra.mxu1 %v4304_v57  ;;  %v7449_v28 = vld [vmem:[#allocation83_spill] sm:$0xff]  ;;  %v7450_v0 = vld [vmem:[#allocation84_spill] sm:$0xff] }
  0xdf   : > { %1456 = vmatmul.bf16.gmra.mxu1 %v4861_v63  ;;  %1484 = vmatmul.bf16.gmra.mxu2 %v4863_v47  ;;  %v486_v57 = vld [vmem:[%s5600_s19 + $0x108] sm:$0xff] }
  0xe0   : > { %1512 = vmatmul.bf16.gmra.mxu3 %v4865_v2  ;;  %1690 = vmatpush.bf16.msra.mxu2 %v4348_v11  ;;  %v5715_v44 = vpack.c.bf16 %v494_v56, %v486_v57  ;;  %v7533_v56 = vld [vmem:[#allocation104_spill] sm:$0xff]  ;;  %v7534_v57 = vld [vmem:[#allocation105_spill] sm:$0xff] }
  0xe1   : > { %1718 = vmatpush.bf16.msra.mxu3 %v4360_v18  ;;  %1634 = vmatpush.bf16.msra.mxu0 %v4336_v5 }
  0xe2   : > { %v1261_v42 = vpop.f32.mrf.mxu2  ;;  %1662 = vmatpush.bf16.msra.mxu1 %v4346_v10 }
  0xe3   : > { %v1262_v54 = vadd.f32 %v1261_v42, %v1234_v26  ;;  %v1289_v41 = vpop.f32.mrf.mxu3  ;;  %v1207_v61 = vpop.f32.mrf.mxu0  ;;  %v7451_v26 = vld [vmem:[#allocation85_spill] sm:$0xff]  ;;  %v7452_v42 = vld [vmem:[#allocation34_spill] sm:$0xff] }
  0xe4   : > { %v1235_v39 = vpop.f32.mrf.mxu1  ;;  %1691 = vmatpush.bf16.msra.mxu2 %v4392_v31  ;;  %v7505_v31 = vld [vmem:[#allocation76_spill] sm:$0xff] }
  0xe5   : > { %v5519_v63 = vadd.f32 %v1289_v41, %v1262_v54  ;;  %1719 = vmatpush.bf16.msra.mxu3 %v4403_v36  ;;  %1635 = vmatpush.bf16.msra.mxu0 %v4377_v24  ;;  %v7453_v54 = vld [vmem:[#allocation35_spill] sm:$0xff]  ;;  %v7454_v41 = vld [vmem:[#allocation36_spill] sm:$0xff]  ;;  %v7455_v39 = vld [vmem:[#allocation37_spill] sm:$0xff] }
  0xe6   : > { %1663 = vmatpush.bf16.msra.mxu1 %v4390_v30  ;;  %v472_v30 = vld [vmem:[%s5600_s19 + $0x98] sm:$0xff]  ;;  %v7504_v36 = vld [vmem:[#allocation75_spill] sm:$0xff] }
  0xe7   : > { %v480_v24 = vld [vmem:[%s5600_s19 + $0xd8] sm:$0xff] }
  0xe8   : > { %1692 = vmatpush.bf16.msra.mxu2 %v4437_v52  ;;  %v7503_v52 = vld [vmem:[#allocation74_spill] sm:$0xff]  ;;  %v5670_v11 = vpack.c.bf16 %v480_v24, %v472_v30  ;;  %v7516_v30 = vld [vmem:[#allocation87_spill] sm:$0xff] }
  0xe9   : > { %1720 = vmatpush.bf16.msra.mxu3 %v4459_v60  ;;  %1636 = vmatpush.bf16.msra.mxu0 %v4422_v43  ;;  %v478_v43 = vld [vmem:[%s5600_s19 + $0xc8] sm:$0xff]  ;;  %v479_v60 = vld [vmem:[%s5600_s19 + $0xd0] sm:$0xff]  ;;  %v7515_v24 = vld [vmem:[#allocation86_spill] sm:$0xff] }
  0xea   : > { %v1263_v47 = vpop.f32.mrf.mxu2  ;;  %1664 = vmatpush.bf16.msra.mxu1 %v4435_v51 }
  0xeb   : > { %v1291_v2 = vpop.f32.mrf.mxu3  ;;  %v1302_v27 = vpop.f32.mrf.mxu0 }
  0xec   : > { %v1303_v37 = vadd.f32 %v1302_v27, %v5348_v59  ;;  %v1330_v13 = vpop.f32.mrf.mxu1 }
  0xee   : > { %v1331_v20 = vadd.f32 %v1330_v13, %v1303_v37  ;;  %1525 = vmatmul.bf16.vlgmr.msrb.gmra.mxu0 %v7448_v53  ;;  %v7456_v13 = vld [vmem:[#allocation38_spill] sm:$0xff] }
  0xef   : > { %1553 = vmatmul.bf16.vlgmr.msrb.gmra.mxu1 %v7449_v28  ;;  %1581 = vmatmul.bf16.vlgmr.msrb.gmra.mxu2 %v7450_v0  ;;  %v7457_v28 = vld [vmem:[#allocation39_spill] sm:$0xff]  ;;  %v7458_v0 = vld [vmem:[#allocation40_spill] sm:$0xff] }
  0xf0   : > { %1609 = vmatmul.bf16.vlgmr.msrb.gmra.mxu3 %v7451_v26  ;;  %1797 = vmatpush.bf16.msrb.mxu2 %v7452_v42  ;;  %v7464_v42 = vld [vmem:[#allocation46_spill] sm:$0xff] }
  0xf1   : > { %1825 = vmatpush.bf16.msrb.mxu3 %v7453_v54  ;;  %1741 = vmatpush.bf16.msrb.mxu0 %v7454_v41  ;;  %v7459_v54 = vld [vmem:[#allocation41_spill] sm:$0xff]  ;;  %v7460_v41 = vld [vmem:[#allocation42_spill] sm:$0xff] }
  0xf2   : > { %v1358_v61 = vpop.f32.mrf.mxu2  ;;  %1769 = vmatpush.bf16.msrb.mxu1 %v7455_v39  ;;  %v7461_v39 = vld [vmem:[#allocation43_spill] sm:$0xff] }
  0xf3   : > { %v1359_v59 = vadd.f32 %v1358_v61, %v1331_v20  ;;  %v1386_v47 = vpop.f32.mrf.mxu3  ;;  %v1304_v2 = vpop.f32.mrf.mxu0  ;;  %v7462_v20 = vld [vmem:[#allocation44_spill] sm:$0xff] }
  0xf4   : > { %v1305_v27 = vadd.f32 %v1304_v2, %v5387_v49  ;;  %v1332_v37 = vpop.f32.mrf.mxu1  ;;  %1798 = vmatpush.bf16.msrb.mxu2 %v7456_v13  ;;  %v7463_v49 = vld [vmem:[#allocation45_spill] sm:$0xff] }
  0xf5   : > { %v5539_v53 = vadd.f32 %v1386_v47, %v1359_v59  ;;  %1826 = vmatpush.bf16.msrb.mxu3 %v7457_v28  ;;  %1742 = vmatpush.bf16.msrb.mxu0 %v7458_v0  ;;  %v7484_v0 = vld [vmem:[#allocation62_spill] sm:$0xff] }
  0xf6   : > { %v1333_v26 = vadd.f32 %v1332_v37, %v1305_v27  ;;  %1770 = vmatpush.bf16.msrb.mxu1 %v7459_v54  ;;  %v7465_v37 = vld [vmem:[#allocation47_spill] sm:$0xff]  ;;  %v7467_v54 = vld [vmem:[#allocation94_spill] sm:$0xff] }
  0xf7   : > { %7510 = vst [vmem:[#allocation94_spill] sm:$0xff] %v5670_v11 }
  0xf8   : > { %1799 = vmatpush.bf16.msrb.mxu2 %v7460_v41  ;;  %v7466_v41 = vld [vmem:[#allocation48_spill] sm:$0xff] }
  0xf9   : > { %1827 = vmatpush.bf16.msrb.mxu3 %v7461_v39  ;;  %1743 = vmatpush.bf16.msrb.mxu0 %v7462_v20  ;;  %v7468_v20 = vld [vmem:[#allocation49_spill] sm:$0xff] }
  0xfa   : > { %v1360_v61 = vpop.f32.mrf.mxu2  ;;  %1771 = vmatpush.bf16.msrb.mxu1 %v7463_v49  ;;  %v7469_v49 = vld [vmem:[#allocation95_spill] sm:$0xff] }
  0xfb   : > { %v1361_v2 = vadd.f32 %v1360_v61, %v1333_v26  ;;  %v1388_v13 = vpop.f32.mrf.mxu3  ;;  %v1307_v59 = vpop.f32.mrf.mxu0  ;;  %v7470_v26 = vld [vmem:[#allocation96_spill] sm:$0xff]  ;;  %v7471_v61 = vld [vmem:[#allocation97_spill] sm:$0xff] }
  0xfc   : > { %v1308_v47 = vadd.f32 %v1307_v59, %v5430_v40  ;;  %v1335_v28 = vpop.f32.mrf.mxu1  ;;  %1800 = vmatpush.bf16.msrb.mxu2 %v7464_v42  ;;  %v7472_v40 = vld [vmem:[#allocation50_spill] sm:$0xff]  ;;  %v7473_v59 = vld [vmem:[#allocation51_spill] sm:$0xff]  ;;  %v7479_v42 = vld [vmem:[#allocation57_spill] sm:$0xff]  ;;  %7527 = vst [vmem:[#allocation96_spill] sm:$0xff] %v5715_v44 }
  0xfd   : > { %v5550_v27 = vadd.f32 %v1388_v13, %v1361_v2  ;;  %1828 = vmatpush.bf16.msrb.mxu3 %v7465_v37  ;;  %1744 = vmatpush.bf16.msrb.mxu0 %v7466_v41  ;;  %v7474_v13 = vld [vmem:[#allocation52_spill] sm:$0xff]  ;;  %v7475_v37 = vld [vmem:[#allocation53_spill] sm:$0xff] }
  0xfe   : > { %v1336_v39 = vadd.f32 %v1335_v28, %v1308_v47  ;;  %1530 = vmatmul.bf16.gmra.mxu0 %v7467_v54  ;;  %1772 = vmatpush.bf16.msrb.mxu1 %v7468_v20 }
  0xff   : > { %1558 = vmatmul.bf16.gmra.mxu1 %v7469_v49  ;;  %1586 = vmatmul.bf16.gmra.mxu2 %v7470_v26  ;;  %v7476_v49 = vld [vmem:[#allocation54_spill] sm:$0xff] }
 0x100   : > { %1614 = vmatmul.bf16.gmra.mxu3 %v7471_v61  ;;  %1801 = vmatpush.bf16.msrb.mxu2 %v7472_v40  ;;  %v7477_v61 = vld [vmem:[#allocation55_spill] sm:$0xff]  ;;  %v7478_v40 = vld [vmem:[#allocation56_spill] sm:$0xff] }
 0x101   : > { %1829 = vmatpush.bf16.msrb.mxu3 %v7473_v59  ;;  %1745 = vmatpush.bf16.msrb.mxu0 %v7474_v13  ;;  %v7480_v13 = vld [vmem:[#allocation58_spill] sm:$0xff] }
 0x102   : > { %v1363_v2 = vpop.f32.mrf.mxu2  ;;  %1773 = vmatpush.bf16.msrb.mxu1 %v7475_v37  ;;  %v7481_v37 = vld [vmem:[#allocation59_spill] sm:$0xff] }
 0x103   : > { %v1364_v28 = vadd.f32 %v1363_v2, %v1336_v39  ;;  %v1391_v47 = vpop.f32.mrf.mxu3  ;;  %v1309_v54 = vpop.f32.mrf.mxu0  ;;  %v7482_v39 = vld [vmem:[#allocation60_spill] sm:$0xff] }
 0x104   : > { %v1310_v20 = vadd.f32 %v1309_v54, %v5480_v1  ;;  %v1337_v41 = vpop.f32.mrf.mxu1  ;;  %1802 = vmatpush.bf16.msrb.mxu2 %v7476_v49  ;;  %v7483_v1 = vld [vmem:[#allocation61_spill] sm:$0xff] }
 0x105   : > { %v5565_v26 = vadd.f32 %v1391_v47, %v1364_v28  ;;  %1830 = vmatpush.bf16.msrb.mxu3 %v7477_v61  ;;  %1746 = vmatpush.bf16.msrb.mxu0 %v7478_v40 }
 0x106   : > { %v1338_v59 = vadd.f32 %v1337_v41, %v1310_v20  ;;  %1774 = vmatpush.bf16.msrb.mxu1 %v7479_v42  ;;  %v7485_v20 = vld [vmem:[#allocation63_spill] sm:$0xff]  ;;  %v7487_v42 = vld [vmem:[#allocation106_spill] sm:$0xff] }
 0x108   : > { %1803 = vmatpush.bf16.msrb.mxu2 %v7480_v13  ;;  %v7486_v13 = vld [vmem:[#allocation64_spill] sm:$0xff] }
 0x109   : > { %1831 = vmatpush.bf16.msrb.mxu3 %v7481_v37  ;;  %1747 = vmatpush.bf16.msrb.mxu0 %v7482_v39  ;;  %v7488_v39 = vld [vmem:[#allocation65_spill] sm:$0xff] }
 0x10a   : > { %v1365_v2 = vpop.f32.mrf.mxu2  ;;  %1775 = vmatpush.bf16.msrb.mxu1 %v7483_v1  ;;  %v7489_v1 = vld [vmem:[#allocation107_spill] sm:$0xff] }
 0x10b   : > { %v1366_v54 = vadd.f32 %v1365_v2, %v1338_v59  ;;  %v1393_v49 = vpop.f32.mrf.mxu3  ;;  %v1312_v28 = vpop.f32.mrf.mxu0  ;;  %v7490_v59 = vld [vmem:[#allocation108_spill] sm:$0xff]  ;;  %v7491_v2 = vld [vmem:[#allocation109_spill] sm:$0xff] }
 0x10c   : > { %v1313_v47 = vadd.f32 %v1312_v28, %v5494_v22  ;;  %v1340_v61 = vpop.f32.mrf.mxu1  ;;  %1804 = vmatpush.bf16.msrb.mxu2 %v7484_v0 }
 0x10d   : > { %v5576_v41 = vadd.f32 %v1393_v49, %v1366_v54  ;;  %1832 = vmatpush.bf16.msrb.mxu3 %v7485_v20  ;;  %1748 = vmatpush.bf16.msrb.mxu0 %v7486_v13 }
 0x10e   : > { %v1341_v37 = vadd.f32 %v1340_v61, %v1313_v47  ;;  %1535 = vmatmul.bf16.gmra.mxu0 %v7487_v42  ;;  %1776 = vmatpush.bf16.msrb.mxu1 %v7488_v39 }
 0x10f   : > { %1563 = vmatmul.bf16.gmra.mxu1 %v7489_v1  ;;  %1591 = vmatmul.bf16.gmra.mxu2 %v7490_v59 }
 0x110   : > { %1619 = vmatmul.bf16.gmra.mxu3 %v7491_v2 }
 0x112   : > { %v1368_v22 = vpop.f32.mrf.mxu2 }
 0x113   : > { %v1369_v28 = vadd.f32 %v1368_v22, %v1341_v37  ;;  %v1396_v0 = vpop.f32.mrf.mxu3  ;;  %v1314_v49 = vpop.f32.mrf.mxu0 }
 0x114   : > { %v1315_v54 = vadd.f32 %v1314_v49, %v5505_v23  ;;  %v1342_v20 = vpop.f32.mrf.mxu1  ;;  %v7492_v23 = vld [vmem:[#allocation117_spill] sm:$0xff]  ;;  %v462_v49 = vld [vmem:[%s5600_s19 + $0x48] sm:$0xff] }
 0x115   : > { %v5586_v40 = vadd.f32 %v1396_v0, %v1369_v28  ;;  %v7493_v0 = vld [vmem:[#allocation118_spill] sm:$0xff] }
 0x116   : > { %v1343_v61 = vadd.f32 %v1342_v20, %v1315_v54  ;;  %v455_v54 = vld [vmem:[%s5600_s19 + $0x10] sm:$0xff] }
 0x11a   : > { %v1370_v47 = vpop.f32.mrf.mxu2 }
 0x11b   : > { %v1371_v42 = vadd.f32 %v1370_v47, %v1343_v61  ;;  %v1398_v39 = vpop.f32.mrf.mxu3  ;;  %v1317_v13 = vpop.f32.mrf.mxu0  ;;  %v463_v61 = vld [vmem:[%s5600_s19 + $0x50] sm:$0xff]  ;;  %v456_v47 = vld [vmem:[%s5600_s19 + $0x18] sm:$0xff] }
 0x11c   : > { %v1318_v1 = vadd.f32 %v1317_v13, %v5519_v63  ;;  %v1345_v59 = vpop.f32.mrf.mxu1  ;;  %v453_v63 = vld [vmem:[%s5600_s19] sm:$0xff] }
 0x11d   : > { %v5589_v51 = vadd.f32 %v1398_v39, %v1371_v42  ;;  %v461_v13 = vld [vmem:[%s5600_s19 + $0x40] sm:$0xff]  ;;  %v454_v39 = vld [vmem:[%s5600_s19 + $0x8] sm:$0xff]  ;;  %v464_v42 = vld [vmem:[%s5600_s19 + $0x58] sm:$0xff] }
 0x11e   : > { %v1346_v2 = vadd.f32 %v1345_v59, %v1318_v1  ;;  %1540 = vmatmul.bf16.gmra.mxu0 %v5212_v9  ;;  %v5612_v59 = vpack.c.bf16 %v461_v13, %v453_v63  ;;  %v7497_v63 = vld [vmem:[#allocation68_spill] sm:$0xff] }
 0x11f   : > { %1568 = vmatmul.bf16.gmra.mxu1 %v5216_v35  ;;  %1596 = vmatmul.bf16.gmra.mxu2 %v7492_v23 }
 0x120   : > { %1624 = vmatmul.bf16.gmra.mxu3 %v7493_v0  ;;  %v5616_v0 = vpack.c.bf16 %v462_v49, %v454_v39  ;;  %v7498_v39 = vld [vmem:[#allocation69_spill] sm:$0xff] }
 0x122   : > { %v1373_v37 = vpop.f32.mrf.mxu2 }
 0x123   : > { %v1374_v20 = vadd.f32 %v1373_v37, %v1346_v2  ;;  %v1401_v22 = vpop.f32.mrf.mxu3  ;;  %v1319_v28 = vpop.f32.mrf.mxu0  ;;  %v5618_v37 = vpack.c.bf16 %v463_v61, %v455_v54 }
 0x124   : > { %v1347_v9 = vpop.f32.mrf.mxu1  ;;  %v7495_v28 = vld [vmem:[#allocation66_spill] sm:$0xff] }
 0x125   : > { %v5602_v35 = vadd.f32 %v1401_v22, %v1374_v20  ;;  %v5622_v22 = vpack.c.bf16 %v464_v42, %v456_v47  ;;  %v7496_v9 = vld [vmem:[#allocation67_spill] sm:$0xff]  ;;  %v7499_v47 = vld [vmem:[#allocation70_spill] sm:$0xff] }
 0x126   : > { %v7500_v42 = vld [vmem:[#allocation71_spill] sm:$0xff] }
 0x127   : > { %7494 = vst [vmem:[#allocation82_spill] sm:$0xff] %v5622_v22 }
 0x12a   : > { %v1375_v1 = vpop.f32.mrf.mxu2 }
 0x12b   : > { %v1403_v2 = vpop.f32.mrf.mxu3  ;;  %v5614_v23 = vpop.f32.mrf.mxu0  ;;  %v7501_v1 = vld [vmem:[#allocation72_spill] sm:$0xff] }
 0x12c   : > { %v5620_v20 = vpop.f32.mrf.mxu1  ;;  %v7502_v2 = vld [vmem:[#allocation73_spill] sm:$0xff] }
 0x12e   : > { %1637 = vmatmul.bf16.vlgmr.msra.gmra.mxu0 %v5612_v59 }
 0x12f   : > { %1665 = vmatmul.bf16.vlgmr.msra.gmra.mxu1 %v5616_v0  ;;  %1693 = vmatmul.bf16.vlgmr.msra.gmra.mxu2 %v5618_v37 }
 0x130   : > { %1721 = vmatmul.bf16.vlgmr.msra.gmra.mxu3 %v5622_v22  ;;  %1909 = vmatpush.bf16.msra.mxu2 %v7495_v28  ;;  %v470_v28 = vld [vmem:[%s5600_s19 + $0x88] sm:$0xff] }
 0x131   : > { %1937 = vmatpush.bf16.msra.mxu3 %v7496_v9  ;;  %1853 = vmatpush.bf16.msra.mxu0 %v7497_v63  ;;  %v469_v63 = vld [vmem:[%s5600_s19 + $0x80] sm:$0xff]  ;;  %v5664_v5 = vpack.c.bf16 %v478_v43, %v470_v28  ;;  %v7514_v43 = vld [vmem:[#allocation81_spill] sm:$0xff]  ;;  %v7517_v28 = vld [vmem:[#allocation88_spill] sm:$0xff] }
 0x132   : > { %v5631_v13 = vpop.f32.mrf.mxu2  ;;  %1881 = vmatpush.bf16.msra.mxu1 %v7498_v39  ;;  %v477_v9 = vld [vmem:[%s5600_s19 + $0xc0] sm:$0xff]  ;;  %v471_v39 = vld [vmem:[%s5600_s19 + $0x90] sm:$0xff] }
 0x133   : > { %v5634_v49 = vpop.f32.mrf.mxu3  ;;  %v5636_v54 = vpop.f32.mrf.mxu0  ;;  %7508 = vst [vmem:[#allocation84_spill] sm:$0xff] %v5664_v5  ;;  %v5666_v18 = vpack.c.bf16 %v479_v60, %v471_v39 }
 0x134   : > { %v5638_v61 = vpop.f32.mrf.mxu1  ;;  %1910 = vmatpush.bf16.msra.mxu2 %v7499_v47 }
 0x135   : > { %1938 = vmatpush.bf16.msra.mxu3 %v7500_v42  ;;  %1854 = vmatpush.bf16.msra.mxu0 %v7501_v1  ;;  %v5657_v42 = vpack.c.bf16 %v477_v9, %v469_v63  ;;  %v7507_v1 = vld [vmem:[#allocation77_spill] sm:$0xff]  ;;  %7509 = vst [vmem:[#allocation85_spill] sm:$0xff] %v5666_v18  ;;  %v7513_v9 = vld [vmem:[#allocation80_spill] sm:$0xff] }
 0x136   : > { %1882 = vmatpush.bf16.msra.mxu1 %v7502_v2 }
 0x137   : > { %7506 = vst [vmem:[#allocation83_spill] sm:$0xff] %v5657_v42 }
 0x138   : > { %1911 = vmatpush.bf16.msra.mxu2 %v7503_v52 }
 0x139   : > { %1939 = vmatpush.bf16.msra.mxu3 %v7504_v36  ;;  %1855 = vmatpush.bf16.msra.mxu0 %v7505_v31  ;;  %v7511_v36 = vld [vmem:[#allocation78_spill] sm:$0xff]  ;;  %v7512_v31 = vld [vmem:[#allocation79_spill] sm:$0xff] }
 0x13a   : > { %v5655_v47 = vpop.f32.mrf.mxu2  ;;  %1883 = vmatpush.bf16.msra.mxu1 %v7507_v1  ;;  %v493_v1 = vld [vmem:[%s5600_s19 + $0x140] sm:$0xff] }
 0x13b   : > { %v5660_v2 = vpop.f32.mrf.mxu3  ;;  %v5662_v10 = vpop.f32.mrf.mxu0 }
 0x13c   : > { %v5668_v52 = vpop.f32.mrf.mxu1  ;;  %1912 = vmatpush.bf16.msra.mxu2 %v7511_v36  ;;  %v7521_v36 = vld [vmem:[#allocation92_spill] sm:$0xff] }
 0x13d   : > { %1940 = vmatpush.bf16.msra.mxu3 %v7512_v31  ;;  %1856 = vmatpush.bf16.msra.mxu0 %v7513_v9  ;;  %v7518_v31 = vld [vmem:[#allocation89_spill] sm:$0xff] }
 0x13e   : > { %1642 = vmatmul.bf16.gmra.mxu0 %v5657_v42  ;;  %1884 = vmatpush.bf16.msra.mxu1 %v7514_v43  ;;  %v7519_v43 = vld [vmem:[#allocation90_spill] sm:$0xff] }
 0x13f   : > { %1670 = vmatmul.bf16.gmra.mxu1 %v5664_v5  ;;  %1698 = vmatmul.bf16.gmra.mxu2 %v5666_v18  ;;  %v496_v18 = vld [vmem:[%s5600_s19 + $0x158] sm:$0xff]  ;;  %v7523_v5 = vld [vmem:[#allocation98_spill] sm:$0xff] }
 0x140   : > { %1726 = vmatmul.bf16.gmra.mxu3 %v5670_v11  ;;  %1913 = vmatpush.bf16.msra.mxu2 %v7515_v24  ;;  %v7520_v24 = vld [vmem:[#allocation91_spill] sm:$0xff]  ;;  %v488_v11 = vld [vmem:[%s5600_s19 + $0x118] sm:$0xff] }
 0x141   : > { %1941 = vmatpush.bf16.msra.mxu3 %v7516_v30  ;;  %1857 = vmatpush.bf16.msra.mxu0 %v7517_v28  ;;  %v485_v30 = vld [vmem:[%s5600_s19 + $0x100] sm:$0xff]  ;;  %v487_v28 = vld [vmem:[%s5600_s19 + $0x110] sm:$0xff] }
 0x142   : > { %v5682_v60 = vpop.f32.mrf.mxu2  ;;  %1885 = vmatpush.bf16.msra.mxu1 %v7518_v31  ;;  %v5717_v50 = vpack.c.bf16 %v495_v62, %v487_v28 }
 0x143   : > { %v5685_v63 = vpop.f32.mrf.mxu3  ;;  %v5687_v39 = vpop.f32.mrf.mxu0 }
 0x144   : > { %v5689_v9 = vpop.f32.mrf.mxu1  ;;  %1914 = vmatpush.bf16.msra.mxu2 %v7519_v43  ;;  %v5708_v43 = vpack.c.bf16 %v493_v1, %v485_v30  ;;  %7528 = vst [vmem:[#allocation97_spill] sm:$0xff] %v5717_v50  ;;  %v7531_v1 = vld [vmem:[#allocation102_spill] sm:$0xff]  ;;  %v7532_v30 = vld [vmem:[#allocation103_spill] sm:$0xff] }
 0x145   : > { %1942 = vmatpush.bf16.msra.mxu3 %v7520_v24  ;;  %1858 = vmatpush.bf16.msra.mxu0 %v7521_v36  ;;  %v7526_v24 = vld [vmem:[#allocation100_spill] sm:$0xff] }
 0x146   : > { %1886 = vmatpush.bf16.msra.mxu1 %v7522_v58  ;;  %7525 = vst [vmem:[#allocation95_spill] sm:$0xff] %v5708_v43 }
 0x148   : > { %1915 = vmatpush.bf16.msra.mxu2 %v7523_v5  ;;  %v5721_v5 = vpack.c.bf16 %v496_v18, %v488_v11 }
 0x149   : > { %1943 = vmatpush.bf16.msra.mxu3 %v7524_v45  ;;  %1859 = vmatpush.bf16.msra.mxu0 %v7526_v24  ;;  %v7530_v45 = vld [vmem:[#allocation101_spill] sm:$0xff] }
 0x14a   : > { %v5706_v31 = vpop.f32.mrf.mxu2  ;;  %7529 = vst [vmem:[#allocation106_spill] sm:$0xff] %v5721_v5  ;;  %1887 = vmatpush.bf16.msra.mxu1 %v7530_v45  ;;  %v503_v45 = vld [vmem:[%s5600_s19 + $0x190] sm:$0x1]  ;;  %v504_v24 = vld [vmem:[%s5600_s19 + $0x198] sm:$0x1] }
 0x14b   : > { %v5711_v36 = vpop.f32.mrf.mxu3  ;;  %v5713_v42 = vpop.f32.mrf.mxu0  ;;  %v5757_v33 = vpack.c.bf16 %v503_v45, %v503_v45  ;;  %v5761_v38 = vpack.c.bf16 %v504_v24, %v504_v24 }
 0x14c   : > { %v5719_v58 = vpop.f32.mrf.mxu1  ;;  %1916 = vmatpush.bf16.msra.mxu2 %v7531_v1  ;;  %v502_v1 = vld [vmem:[%s5600_s19 + $0x188] sm:$0x1] }
 0x14d   : > { %1944 = vmatpush.bf16.msra.mxu3 %v7532_v30  ;;  %1860 = vmatpush.bf16.msra.mxu0 %v7533_v56  ;;  %v501_v30 = vld [vmem:[%s5600_s19 + $0x180] sm:$0x1]  ;;  %v5755_v46 = vpack.c.bf16 %v502_v1, %v502_v1  ;;  %7538 = vst [vmem:[#allocation109_spill] sm:$0xff] %v5757_v33 }
 0x14e   : > { %1647 = vmatmul.bf16.gmra.mxu0 %v5708_v43  ;;  %1888 = vmatpush.bf16.msra.mxu1 %v7534_v57  ;;  %7539 = vst [vmem:[#allocation117_spill] sm:$0xff] %v5761_v38 }
 0x14f   : > { %1675 = vmatmul.bf16.gmra.mxu1 %v5715_v44  ;;  %1703 = vmatmul.bf16.gmra.mxu2 %v5717_v50  ;;  %v5746_v50 = vpack.c.bf16 %v501_v30, %v501_v30  ;;  %7537 = vst [vmem:[#allocation108_spill] sm:$0xff] %v5755_v46 }
 0x150   : > { %1731 = vmatmul.bf16.gmra.mxu3 %v5721_v5  ;;  %v7536_v5 = vld [vmem:[#allocation123_spill] sm:$0xff] }
 0x151   : > { %7535 = vst [vmem:[#allocation107_spill] sm:$0xff] %v5746_v50  ;;  %v5749_v56 = vperm.slane %v7536_v5, 1 }
 0x152   : > { %v5732_v62 = vpop.f32.mrf.mxu2 }
 0x153   : > { %v5734_v11 = vpop.f32.mrf.mxu3  ;;  %v5736_v18 = vpop.f32.mrf.mxu0  ;;  %v1415_v5 = vadd.f32 %v5614_v23, %v5749_v56  ;;  %v465_v23 = vld [vmem:[%s5600_s19 + $0x60] sm:$0xff] }
 0x154   : > { %v5738_v28 = vpop.f32.mrf.mxu1  ;;  %v5785_v12 = vpack.c.bf16 %v465_v23, %v457_v17  ;;  %v1420_v17 = vadd.f32 %v5662_v10, %v5749_v56 }
 0x155   : > { %v1443_v24 = vadd.f32 %v5620_v20, %v1415_v5 }
 0x157   : > { %v1471_v34 = vadd.f32 %v5631_v13, %v1443_v24  ;;  %v5790_v13 = vpack.c.bf16 %v467_v21, %v459_v25  ;;  %v7541_v21 = vld [vmem:[#allocation111_spill] sm:$0xff]  ;;  %v7542_v25 = vld [vmem:[#allocation112_spill] sm:$0xff] }
 0x159   : > { %v1499_v20 = vadd.f32 %v5634_v49, %v1471_v34  ;;  %v7543_v34 = vld [vmem:[#allocation113_spill] sm:$0xff] }
 0x15a   : > { %v5744_v44 = vpop.f32.mrf.mxu2 }
 0x15b   : > { %v5751_v57 = vpop.f32.mrf.mxu3  ;;  %v5753_v43 = vpop.f32.mrf.mxu0 }
 0x15c   : > { %v5759_v29 = vpop.f32.mrf.mxu1 }
 0x15e   : > { %1652 = vmatmul.bf16.gmra.mxu0 %v5746_v50 }
 0x15f   : > { %1680 = vmatmul.bf16.gmra.mxu1 %v5755_v46  ;;  %1708 = vmatmul.bf16.gmra.mxu2 %v5757_v33  ;;  %v466_v46 = vld [vmem:[%s5600_s19 + $0x68] sm:$0xff]  ;;  %v1417_v33 = vadd.f32 %v5636_v54, %v5749_v56 }
 0x160   : > { %1736 = vmatmul.bf16.gmra.mxu3 %v5761_v38  ;;  %v460_v38 = vld [vmem:[%s5600_s19 + $0x38] sm:$0xff] }
 0x161   : > { %v5792_v8 = vpack.c.bf16 %v468_v7, %v460_v38  ;;  %v1445_v22 = vadd.f32 %v5638_v61, %v1417_v33 }
 0x162   : > { %v5769_v45 = vpop.f32.mrf.mxu2 }
 0x163   : > { %v5772_v1 = vpop.f32.mrf.mxu3  ;;  %v1431_v30 = vpop.f32.mrf.mxu0 }
 0x164   : > { %v1459_v50 = vpop.f32.mrf.mxu1  ;;  %v5788_v30 = vpack.c.bf16 %v466_v46, %v458_v16  ;;  %v7540_v16 = vld [vmem:[#allocation110_spill] sm:$0xff]  ;;  %v1448_v46 = vadd.f32 %v5668_v52, %v1420_v17  ;;  %v7547_v52 = vld [vmem:[#allocation119_spill] sm:$0xff] }
 0x165   : > { %v474_v17 = vld [vmem:[%s5600_s19 + $0xa8] sm:$0xff] }
 0x16a   : > { %v1487_v3 = vpop.f32.mrf.mxu2 }
 0x16b   : > { %v1515_v5 = vpop.f32.mrf.mxu3  ;;  %v1526_v50 = vpop.f32.mrf.mxu0  ;;  %v1473_v3 = vadd.f32 %v5655_v47, %v1445_v22  ;;  %v7544_v47 = vld [vmem:[#allocation114_spill] sm:$0xff] }
 0x16c   : > { %v1554_v24 = vpop.f32.mrf.mxu1  ;;  %v1527_v54 = vadd.f32 %v1526_v50, %v1499_v20  ;;  %v7545_v5 = vld [vmem:[#allocation115_spill] sm:$0xff]  ;;  %v7546_v50 = vld [vmem:[#allocation116_spill] sm:$0xff] }
 0x16d   : > { %v1501_v38 = vadd.f32 %v5660_v2, %v1473_v3  ;;  %v1476_v2 = vadd.f32 %v5682_v60, %v1448_v46  ;;  %v481_v3 = vld [vmem:[%s5600_s19 + $0xe0] sm:$0xff] }
 0x16e   : > { %1749 = vmatmul.bf16.vlgmr.msrb.gmra.mxu0 %v5785_v12  ;;  %v1555_v7 = vadd.f32 %v1554_v24, %v1527_v54  ;;  %v473_v54 = vld [vmem:[%s5600_s19 + $0xa0] sm:$0xff] }
 0x16f   : > { %1777 = vmatmul.bf16.vlgmr.msrb.gmra.mxu1 %v5788_v30  ;;  %1805 = vmatmul.bf16.vlgmr.msrb.gmra.mxu2 %v5790_v13  ;;  %v7550_v60 = vld [vmem:[#allocation122_spill] sm:$0xff]  ;;  %v5834_v46 = vpack.c.bf16 %v481_v3, %v473_v54 }
 0x170   : > { %1833 = vmatmul.bf16.vlgmr.msrb.gmra.mxu3 %v5792_v8  ;;  %2021 = vmatpush.bf16.msrb.mxu2 %v7540_v16 }
 0x171   : > { %2049 = vmatpush.bf16.msrb.mxu3 %v7541_v21  ;;  %1965 = vmatpush.bf16.msrb.mxu0 %v7542_v25 }
 0x172   : > { %v1582_v33 = vpop.f32.mrf.mxu2  ;;  %1993 = vmatpush.bf16.msrb.mxu1 %v7543_v34 }
 0x173   : > { %v1583_v10 = vadd.f32 %v1582_v33, %v1555_v7  ;;  %v1610_v22 = vpop.f32.mrf.mxu3  ;;  %v1528_v49 = vpop.f32.mrf.mxu0  ;;  %v482_v7 = vld [vmem:[%s5600_s19 + $0xe8] sm:$0xff]  ;;  %v475_v33 = vld [vmem:[%s5600_s19 + $0xb0] sm:$0xff] }
 0x174   : > { %v1556_v61 = vpop.f32.mrf.mxu1  ;;  %2022 = vmatpush.bf16.msrb.mxu2 %v7544_v47  ;;  %v1529_v20 = vadd.f32 %v1528_v49, %v1501_v38  ;;  %v483_v38 = vld [vmem:[%s5600_s19 + $0xf0] sm:$0xff]  ;;  %v1504_v47 = vadd.f32 %v5685_v63, %v1476_v2  ;;  %v5838_v21 = vpack.c.bf16 %v482_v7, %v474_v17  ;;  %v1425_v17 = vadd.f32 %v5713_v42, %v5749_v56 }
 0x175   : > { %v1611_v23 = vadd.f32 %v1610_v22, %v1583_v10  ;;  %2050 = vmatpush.bf16.msrb.mxu3 %v7545_v5  ;;  %1966 = vmatpush.bf16.msrb.mxu0 %v7546_v50  ;;  %v7548_v10 = vld [vmem:[#allocation120_spill] sm:$0xff]  ;;  %v1422_v22 = vadd.f32 %v5687_v39, %v5749_v56  ;;  %v476_v50 = vld [vmem:[%s5600_s19 + $0xb8] sm:$0xff]  ;;  %v5840_v39 = vpack.c.bf16 %v483_v38, %v475_v33 }
 0x176   : > { %1994 = vmatpush.bf16.msrb.mxu1 %v7547_v52  ;;  %v1557_v49 = vadd.f32 %v1556_v61, %v1529_v20  ;;  %v484_v5 = vld [vmem:[%s5600_s19 + $0xf8] sm:$0xff]  ;;  %v7554_v63 = vld [vmem:[#allocation128_spill] sm:$0xff]  ;;  %v1453_v42 = vadd.f32 %v5719_v58, %v1425_v17 }
 0x177   : > { %v2077_v24 = vpack.c.bf16 %v1611_v23, %v5539_v53  ;;  %v7549_v52 = vld [vmem:[#allocation121_spill] sm:$0xff]  ;;  %v7551_v23 = vld [vmem:[#allocation124_spill] sm:$0xff]  ;;  %v5842_v20 = vpack.c.bf16 %v484_v5, %v476_v50  ;;  %v1450_v54 = vadd.f32 %v5689_v9, %v1422_v22 }
 0x178   : > { %2023 = vmatpush.bf16.msrb.mxu2 %v7548_v10  ;;  %v7555_v9 = vld [vmem:[#allocation129_spill] sm:$0xff]  ;;  %v7558_v50 = vld [vmem:[#allocation132_spill] sm:$0xff]  ;;  %v1481_v58 = vadd.f32 %v5732_v62, %v1453_v42  ;;  %v7560_v42 = vld [vmem:[#allocation135_spill] sm:$0xff] }
 0x179   : > { %2084 = vst [vmem:[%s5815_s21] sm:$0xff] %v2077_v24  ;;  %2051 = vmatpush.bf16.msrb.mxu3 %v7549_v52  ;;  %1967 = vmatpush.bf16.msrb.mxu0 %v7550_v60  ;;  %v7552_v24 = vld [vmem:[#allocation125_spill] sm:$0xff]  ;;  %v1478_v2 = vadd.f32 %v5706_v31, %v1450_v54  ;;  %v498_v54 = vld [vmem:[%s5600_s19 + $0x168] sm:$0xff] }
 0x17a   : > { %v1584_v53 = vpop.f32.mrf.mxu2  ;;  %1995 = vmatpush.bf16.msrb.mxu1 %v7551_v23  ;;  %v7553_v23 = vld [vmem:[#allocation127_spill] sm:$0xff]  ;;  %v7559_v17 = vld [vmem:[#allocation133_spill] sm:$0xff] }
 0x17b   : > { %v1585_v34 = vadd.f32 %v1584_v53, %v1557_v49  ;;  %v1612_v10 = vpop.f32.mrf.mxu3  ;;  %v1531_v25 = vpop.f32.mrf.mxu0  ;;  %v497_v53 = vld [vmem:[%s5600_s19 + $0x160] sm:$0xff] }
 0x17c   : > { %v1559_v61 = vpop.f32.mrf.mxu1  ;;  %2024 = vmatpush.bf16.msrb.mxu2 %v7552_v24  ;;  %v1532_v60 = vadd.f32 %v1531_v25, %v1504_v47  ;;  %v7557_v47 = vld [vmem:[#allocation131_spill] sm:$0xff] }
 0x17d   : > { %v1613_v3 = vadd.f32 %v1612_v10, %v1585_v34  ;;  %2052 = vmatpush.bf16.msrb.mxu3 %v7553_v23  ;;  %1968 = vmatpush.bf16.msrb.mxu0 %v7554_v63  ;;  %v7556_v34 = vld [vmem:[#allocation130_spill] sm:$0xff] }
 0x17e   : > { %1754 = vmatmul.bf16.gmra.mxu0 %v5834_v46  ;;  %1996 = vmatpush.bf16.msrb.mxu1 %v7555_v9  ;;  %v1560_v25 = vadd.f32 %v1559_v61, %v1532_v60  ;;  %v489_v60 = vld [vmem:[%s5600_s19 + $0x120] sm:$0xff]  ;;  %v490_v61 = vld [vmem:[%s5600_s19 + $0x128] sm:$0xff] }
 0x17f   : > { %v2078_v5 = vpack.c.bf16 %v1613_v3, %v5550_v27  ;;  %1782 = vmatmul.bf16.gmra.mxu1 %v5838_v21  ;;  %1810 = vmatmul.bf16.gmra.mxu2 %v5840_v39  ;;  %v1506_v27 = vadd.f32 %v5711_v36, %v1478_v2  ;;  %v491_v3 = vld [vmem:[%s5600_s19 + $0x130] sm:$0xff]  ;;  %v5883_v62 = vpack.c.bf16 %v497_v53, %v489_v60 }
 0x180   : > { %1838 = vmatmul.bf16.gmra.mxu3 %v5842_v20  ;;  %2025 = vmatpush.bf16.msrb.mxu2 %v7556_v34  ;;  %v499_v2 = vld [vmem:[%s5600_s19 + $0x170] sm:$0xff] }
 0x181   : > { %2085 = vst [vmem:[%s5815_s21 + $0x8] sm:$0xff] %v2078_v5  ;;  %2053 = vmatpush.bf16.msrb.mxu3 %v7557_v47  ;;  %1969 = vmatpush.bf16.msrb.mxu0 %v7558_v50  ;;  %v1427_v5 = vadd.f32 %v5736_v18, %v5749_v56  ;;  %v5889_v18 = vpack.c.bf16 %v499_v2, %v491_v3 }
 0x182   : > { %v1587_v31 = vpop.f32.mrf.mxu2  ;;  %1997 = vmatpush.bf16.msrb.mxu1 %v5356_v19 }
 0x183   : > { %v1588_v7 = vadd.f32 %v1587_v31, %v1560_v25  ;;  %v1615_v33 = vpop.f32.mrf.mxu3  ;;  %v1533_v38 = vpop.f32.mrf.mxu0  ;;  %v492_v31 = vld [vmem:[%s5600_s19 + $0x138] sm:$0xff]  ;;  %v1455_v60 = vadd.f32 %v5738_v28, %v1427_v5  ;;  %v7564_v28 = vld [vmem:[#allocation139_spill] sm:$0xff] }
 0x184   : > { %v1561_v10 = vpop.f32.mrf.mxu1  ;;  %v1534_v49 = vadd.f32 %v1533_v38, %v1506_v27  ;;  %2026 = vmatpush.bf16.msrb.mxu2 %v5367_v55  ;;  %v500_v27 = vld [vmem:[%s5600_s19 + $0x178] sm:$0xff] }
 0x185   : > { %v1616_v22 = vadd.f32 %v1615_v33, %v1588_v7  ;;  %2054 = vmatpush.bf16.msrb.mxu3 %v5379_v4  ;;  %1970 = vmatpush.bf16.msrb.mxu0 %v5381_v48  ;;  %v1509_v7 = vadd.f32 %v5734_v11, %v1481_v58  ;;  %v7563_v11 = vld [vmem:[#allocation138_spill] sm:$0xff]  ;;  %v1483_v58 = vadd.f32 %v5744_v44, %v1455_v60  ;;  %v508_v60 = vld [vmem:[%s5600_s19 + $0x1b8] sm:$0x1] }
 0x186   : > { %1998 = vmatpush.bf16.msrb.mxu1 %v7559_v17  ;;  %v1562_v25 = vadd.f32 %v1561_v10, %v1534_v49  ;;  %v5887_v17 = vpack.c.bf16 %v498_v54, %v490_v61  ;;  %v5891_v49 = vpack.c.bf16 %v500_v27, %v492_v31  ;;  %v1430_v61 = vadd.f32 %v5753_v43, %v5749_v56 }
 0x187   : > { %v2079_v36 = vpack.c.bf16 %v1616_v22, %v5565_v26 }
 0x188   : > { %2027 = vmatpush.bf16.msrb.mxu2 %v5411_v14  ;;  %v1458_v43 = vadd.f32 %v5759_v29, %v1430_v61 }
 0x189   : > { %2086 = vst [vmem:[%s5815_s21 + $0x10] sm:$0xff] %v2079_v36  ;;  %2055 = vmatpush.bf16.msrb.mxu3 %v5422_v15  ;;  %1971 = vmatpush.bf16.msrb.mxu0 %v7560_v42  ;;  %v7561_v36 = vld [vmem:[#allocation136_spill] sm:$0xff]  ;;  %v7562_v42 = vld [vmem:[#allocation137_spill] sm:$0xff] }
 0x18a   : > { %v1589_v26 = vpop.f32.mrf.mxu2  ;;  %1999 = vmatpush.bf16.msrb.mxu1 %v7561_v36 }
 0x18b   : > { %v1590_v33 = vadd.f32 %v1589_v26, %v1562_v25  ;;  %v1617_v38 = vpop.f32.mrf.mxu3  ;;  %v1536_v22 = vpop.f32.mrf.mxu0 }
 0x18c   : > { %v1564_v10 = vpop.f32.mrf.mxu1  ;;  %v1537_v15 = vadd.f32 %v1536_v22, %v1509_v7  ;;  %2028 = vmatpush.bf16.msrb.mxu2 %v7562_v42  ;;  %v1486_v7 = vadd.f32 %v5769_v45, %v1458_v43  ;;  %v507_v22 = vld [vmem:[%s5600_s19 + $0x1b0] sm:$0x1] }
 0x18d   : > { %v1618_v53 = vadd.f32 %v1617_v38, %v1590_v33  ;;  %2056 = vmatpush.bf16.msrb.mxu3 %v7563_v11  ;;  %1972 = vmatpush.bf16.msrb.mxu0 %v7564_v28  ;;  %v506_v38 = vld [vmem:[%s5600_s19 + $0x1a8] sm:$0x1]  ;;  %v5922_v45 = vpack.c.bf16 %v507_v22, %v507_v22 }
 0x18e   : > { %1759 = vmatmul.bf16.gmra.mxu0 %v5883_v62  ;;  %v1565_v3 = vadd.f32 %v1564_v10, %v1537_v15  ;;  %2000 = vmatpush.bf16.msrb.mxu1 %v5475_v32  ;;  %v505_v15 = vld [vmem:[%s5600_s19 + $0x1a0] sm:$0x1]  ;;  %v1514_v29 = vadd.f32 %v5772_v1, %v1486_v7  ;;  %v7565_v7 = vmov 0 }
 0x18f   : > { %v2080_v54 = vpack.c.bf16 %v1618_v53, %v5576_v41  ;;  %1787 = vmatmul.bf16.gmra.mxu1 %v5887_v17  ;;  %1815 = vmatmul.bf16.gmra.mxu2 %v5889_v18  ;;  %v1511_v41 = vadd.f32 %v5751_v57, %v1483_v58  ;;  %v5917_v57 = vpack.c.bf16 %v505_v15, %v505_v15  ;;  %v7566_v7 = vsel %vm5932_vm6, 4294967295, %v7565_v7 }
 0x190   : > { %1843 = vmatmul.bf16.gmra.mxu3 %v5891_v49  ;;  %7567 = vst [vmem:[#allocation118_spill] sm:$0xff] %v7566_v7  ;;  %v3830_v7 = vld [vmem:[%s4444_s14 + $0x1e0] sm:$0xff] }
 0x191   : > { %2087 = vst [vmem:[%s5815_s21 + $0x18] sm:$0xff] %v2080_v54 }
 0x192   : > { %v1592_v44 = vpop.f32.mrf.mxu2 }
 0x193   : > { %v1593_v2 = vadd.f32 %v1592_v44, %v1565_v3  ;;  %v1620_v5 = vpop.f32.mrf.mxu3  ;;  %v1538_v25 = vpop.f32.mrf.mxu0  ;;  %v5920_v3 = vpack.c.bf16 %v506_v38, %v506_v38  ;;  %v5924_v44 = vpack.c.bf16 %v508_v60, %v508_v60 }
 0x194   : > { %v1566_v31 = vpop.f32.mrf.mxu1  ;;  %v1539_v26 = vadd.f32 %v1538_v25, %v1511_v41 }
 0x195   : > { %v1621_v27 = vadd.f32 %v1620_v5, %v1593_v2 }
 0x196   : > { %v1567_v10 = vadd.f32 %v1566_v31, %v1539_v26 }
 0x197   : > { %v2081_v33 = vpack.c.bf16 %v1621_v27, %v5586_v40 }
 0x199   : > { %2088 = vst [vmem:[%s5815_s21 + $0x20] sm:$0xff] %v2081_v33  ;;  %v2097_v33 = vld [vmem:[%s5815_s21 + $0x30] sm:$0x11] }
 0x19a   : > { %v1594_v53 = vpop.f32.mrf.mxu2 }
 0x19b   : > { %v1595_v58 = vadd.f32 %v1594_v53, %v1567_v10  ;;  %v1622_v61 = vpop.f32.mrf.mxu3  ;;  %v1541_v54 = vpop.f32.mrf.mxu0 }
 0x19c   : > { %v1569_v40 = vpop.f32.mrf.mxu1  ;;  %v1542_v43 = vadd.f32 %v1541_v54, %v1514_v29  ;;  %v7570_v54 = vld [vmem:[#allocation5_spill] sm:$0xff] }
 0x19d   : > { %v1623_v41 = vadd.f32 %v1622_v61, %v1595_v58  ;;  %v7568_v61 = vld [vmem:[#allocation82_spill] sm:$0xff] }
 0x19e   : > { %1764 = vmatmul.bf16.gmra.mxu0 %v5917_v57  ;;  %v1570_v1 = vadd.f32 %v1569_v40, %v1542_v43  ;;  %v7571_v40 = vld [vmem:[#allocation2_spill] sm:$0xff]  ;;  %v7572_v43 = vld [vmem:[#allocation3_spill] sm:$0xff] }
 0x19f   : > { %v2082_v2 = vpack.c.bf16 %v1623_v41, %v5589_v51  ;;  %1792 = vmatmul.bf16.gmra.mxu1 %v5920_v3  ;;  %1820 = vmatmul.bf16.gmra.mxu2 %v5922_v45 }
 0x1a0   : > { %1848 = vmatmul.bf16.gmra.mxu3 %v5924_v44 }
 0x1a1   : > { %2089 = vst [vmem:[%s5815_s21 + $0x28] sm:$0xff] %v2082_v2 }
 0x1a2   : > { %v1597_v5 = vpop.f32.mrf.mxu2 }
 0x1a3   : > { %v1598_v25 = vadd.f32 %v1597_v5, %v1570_v1  ;;  %v1625_v31 = vpop.f32.mrf.mxu3  ;;  %v1543_v51 = vpop.f32.mrf.mxu0 }
 0x1a4   : > { %v1571_v27 = vpop.f32.mrf.mxu1  ;;  %v7575_v51 = vld [vmem:[#allocation6_spill] sm:$0xff] }
 0x1a5   : > { %v1626_v26 = vadd.f32 %v1625_v31, %v1598_v25  ;;  %v7574_v31 = vld [vmem:[#allocation9_spill] sm:$0xff] }
 0x1a7   : > { %v2083_v15 = vpack.c.bf16 %v1626_v26, %v5602_v35  ;;  %v7569_v35 = vld [vmem:[#allocation4_spill] sm:$0xff]  ;;  %v7576_v26 = vld [vmem:[#allocation7_spill] sm:$0xff] }
 0x1a9   : > { %v2098_v38 = vsel %vm5932_vm6, %v2083_v15, %v2097_v33  ;;  %v7577_v33 = vld [vmem:[#allocation12_spill] sm:$0xff]  ;;  %v7578_v15 = vld [vmem:[#allocation13_spill] sm:$0xff] }
 0x1aa   : > { %2099 = vst [vmem:[%s5815_s21 + $0x30] sm:$0x11] %v2098_v38  ;;  %v1599_v22 = vpop.f32.mrf.mxu2  ;;  %v7579_v38 = vld [vmem:[#allocation10_spill] sm:$0xff] }
 0x1ab   : > { %v1627_v10 = vpop.f32.mrf.mxu3  ;;  %v1638_v60 = vpop.f32.mrf.mxu0 }
 0x1ac   : > { %v1639_v53 = vadd.f32 %v1638_v60, %v5296_v6  ;;  %v1666_v29 = vpop.f32.mrf.mxu1  ;;  %v7580_v10 = vld [vmem:[#allocation11_spill] sm:$0xff] }
 0x1ae   : > { %v1667_v58 = vadd.f32 %v1666_v29, %v1639_v53  ;;  %1861 = vmatmul.bf16.vlgmr.msra.gmra.mxu0 %v5612_v59 }
 0x1af   : > { %1889 = vmatmul.bf16.vlgmr.msra.gmra.mxu1 %v5616_v0  ;;  %1917 = vmatmul.bf16.vlgmr.msra.gmra.mxu2 %v5618_v37  ;;  %v7573_v0 = vld [vmem:[#allocation8_spill] sm:$0xff] }
 0x1b0   : > { %1945 = vmatmul.bf16.vlgmr.msra.gmra.mxu3 %v7568_v61  ;;  %2351 = vmatpush.bf16.msra.mxu2 %v7569_v35 }
 0x1b1   : > { %2379 = vmatpush.bf16.msra.mxu3 %v7570_v54  ;;  %2295 = vmatpush.bf16.msra.mxu0 %v7571_v40  ;;  %v7681_v40 = vld [vmem:[#allocation99_spill] sm:$0xff] }
 0x1b2   : > { %v1694_v41 = vpop.f32.mrf.mxu2  ;;  %2323 = vmatpush.bf16.msra.mxu1 %v7572_v43 }
 0x1b3   : > { %v1695_v2 = vadd.f32 %v1694_v41, %v1667_v58  ;;  %v1722_v1 = vpop.f32.mrf.mxu3  ;;  %v1640_v5 = vpop.f32.mrf.mxu0  ;;  %v7581_v41 = vld [vmem:[#allocation16_spill] sm:$0xff] }
 0x1b4   : > { %v1641_v59 = vadd.f32 %v1640_v5, %v5296_v6  ;;  %v1668_v25 = vpop.f32.mrf.mxu1  ;;  %2352 = vmatpush.bf16.msra.mxu2 %v7573_v0  ;;  %v7583_v5 = vld [vmem:[#allocation14_spill] sm:$0xff]  ;;  %v7609_v0 = vld [vmem:[#allocation107_spill] sm:$0xff] }
 0x1b5   : > { %v5952_v37 = vadd.f32 %v1722_v1, %v1695_v2  ;;  %2380 = vmatpush.bf16.msra.mxu3 %v7574_v31  ;;  %2296 = vmatpush.bf16.msra.mxu0 %v7575_v51  ;;  %v7582_v1 = vld [vmem:[#allocation17_spill] sm:$0xff] }
 0x1b6   : > { %v1669_v27 = vadd.f32 %v1668_v25, %v1641_v59  ;;  %2324 = vmatpush.bf16.msra.mxu1 %v7576_v26  ;;  %v7584_v25 = vld [vmem:[#allocation83_spill] sm:$0xff]  ;;  %v7601_v26 = vld [vmem:[#allocation32_spill] sm:$0xff] }
 0x1b8   : > { %2353 = vmatpush.bf16.msra.mxu2 %v7577_v33 }
 0x1b9   : > { %2381 = vmatpush.bf16.msra.mxu3 %v7578_v15  ;;  %2297 = vmatpush.bf16.msra.mxu0 %v7579_v38  ;;  %v7585_v38 = vld [vmem:[#allocation15_spill] sm:$0xff] }
 0x1ba   : > { %v1696_v22 = vpop.f32.mrf.mxu2  ;;  %2325 = vmatpush.bf16.msra.mxu1 %v7580_v10  ;;  %v7586_v10 = vld [vmem:[#allocation84_spill] sm:$0xff]  ;;  %v7596_v15 = vld [vmem:[#allocation23_spill] sm:$0xff] }
 0x1bb   : > { %v1697_v60 = vadd.f32 %v1696_v22, %v1669_v27  ;;  %v1724_v53 = vpop.f32.mrf.mxu3  ;;  %v1643_v29 = vpop.f32.mrf.mxu0  ;;  %v7587_v27 = vld [vmem:[#allocation85_spill] sm:$0xff]  ;;  %v7588_v22 = vld [vmem:[#allocation94_spill] sm:$0xff] }
 0x1bc   : > { %v1644_v58 = vadd.f32 %v1643_v29, %v5296_v6  ;;  %v1671_v61 = vpop.f32.mrf.mxu1  ;;  %2354 = vmatpush.bf16.msra.mxu2 %v7581_v41  ;;  %v7589_v29 = vld [vmem:[#allocation20_spill] sm:$0xff]  ;;  %v7590_v41 = vld [vmem:[#allocation21_spill] sm:$0xff] }
 0x1bd   : > { %v5963_v2 = vadd.f32 %v1724_v53, %v1697_v60  ;;  %2382 = vmatpush.bf16.msra.mxu3 %v7582_v1  ;;  %2298 = vmatpush.bf16.msra.mxu0 %v7583_v5  ;;  %v7591_v60 = vld [vmem:[#allocation18_spill] sm:$0xff]  ;;  %v7592_v1 = vld [vmem:[#allocation19_spill] sm:$0xff] }
 0x1be   : > { %v1672_v59 = vadd.f32 %v1671_v61, %v1644_v58  ;;  %1866 = vmatmul.bf16.gmra.mxu0 %v7584_v25  ;;  %2326 = vmatpush.bf16.msra.mxu1 %v7585_v38 }
 0x1bf   : > { %1894 = vmatmul.bf16.gmra.mxu1 %v7586_v10  ;;  %1922 = vmatmul.bf16.gmra.mxu2 %v7587_v27  ;;  %v7593_v10 = vld [vmem:[#allocation24_spill] sm:$0xff] }
 0x1c0   : > { %1950 = vmatmul.bf16.gmra.mxu3 %v7588_v22  ;;  %2355 = vmatpush.bf16.msra.mxu2 %v7589_v29  ;;  %v7594_v22 = vld [vmem:[#allocation25_spill] sm:$0xff]  ;;  %v7595_v29 = vld [vmem:[#allocation22_spill] sm:$0xff] }
 0x1c1   : > { %2383 = vmatpush.bf16.msra.mxu3 %v7590_v41  ;;  %2299 = vmatpush.bf16.msra.mxu0 %v7591_v60  ;;  %v7597_v60 = vld [vmem:[#allocation28_spill] sm:$0xff] }
 0x1c2   : > { %v1699_v53 = vpop.f32.mrf.mxu2  ;;  %2327 = vmatpush.bf16.msra.mxu1 %v7592_v1  ;;  %v7598_v1 = vld [vmem:[#allocation29_spill] sm:$0xff] }
 0x1c3   : > { %v1700_v58 = vadd.f32 %v1699_v53, %v1672_v59  ;;  %v1727_v61 = vpop.f32.mrf.mxu3  ;;  %v1645_v25 = vpop.f32.mrf.mxu0  ;;  %v7599_v59 = vld [vmem:[#allocation26_spill] sm:$0xff] }
 0x1c4   : > { %v1646_v38 = vadd.f32 %v1645_v25, %v5296_v6  ;;  %v1673_v5 = vpop.f32.mrf.mxu1  ;;  %2356 = vmatpush.bf16.msra.mxu2 %v7593_v10  ;;  %v7600_v25 = vld [vmem:[#allocation27_spill] sm:$0xff] }
 0x1c5   : > { %v5978_v27 = vadd.f32 %v1727_v61, %v1700_v58  ;;  %2384 = vmatpush.bf16.msra.mxu3 %v7594_v22  ;;  %2300 = vmatpush.bf16.msra.mxu0 %v7595_v29 }
 0x1c6   : > { %v1674_v41 = vadd.f32 %v1673_v5, %v1646_v38  ;;  %2328 = vmatpush.bf16.msra.mxu1 %v7596_v15  ;;  %v7602_v5 = vld [vmem:[#allocation33_spill] sm:$0xff]  ;;  %v7604_v15 = vld [vmem:[#allocation95_spill] sm:$0xff] }
 0x1c8   : > { %2357 = vmatpush.bf16.msra.mxu2 %v7597_v60  ;;  %v7603_v60 = vld [vmem:[#allocation30_spill] sm:$0xff] }
 0x1c9   : > { %2385 = vmatpush.bf16.msra.mxu3 %v7598_v1  ;;  %2301 = vmatpush.bf16.msra.mxu0 %v7599_v59  ;;  %v7605_v59 = vld [vmem:[#allocation31_spill] sm:$0xff] }
 0x1ca   : > { %v1701_v53 = vpop.f32.mrf.mxu2  ;;  %2329 = vmatpush.bf16.msra.mxu1 %v7600_v25  ;;  %v7606_v25 = vld [vmem:[#allocation96_spill] sm:$0xff] }
 0x1cb   : > { %v1702_v33 = vadd.f32 %v1701_v53, %v1674_v41  ;;  %v1729_v10 = vpop.f32.mrf.mxu3  ;;  %v1648_v58 = vpop.f32.mrf.mxu0  ;;  %v7607_v41 = vld [vmem:[#allocation97_spill] sm:$0xff]  ;;  %v7608_v53 = vld [vmem:[#allocation106_spill] sm:$0xff] }
 0x1cc   : > { %v1649_v61 = vadd.f32 %v1648_v58, %v5296_v6  ;;  %v1676_v22 = vpop.f32.mrf.mxu1  ;;  %2358 = vmatpush.bf16.msra.mxu2 %v7601_v26 }
 0x1cd   : > { %v5989_v38 = vadd.f32 %v1729_v10, %v1702_v33  ;;  %2386 = vmatpush.bf16.msra.mxu3 %v7602_v5  ;;  %2302 = vmatpush.bf16.msra.mxu0 %v7603_v60 }
 0x1ce   : > { %v1677_v1 = vadd.f32 %v1676_v22, %v1649_v61  ;;  %1871 = vmatmul.bf16.gmra.mxu0 %v7604_v15  ;;  %2330 = vmatpush.bf16.msra.mxu1 %v7605_v59 }
 0x1cf   : > { %1899 = vmatmul.bf16.gmra.mxu1 %v7606_v25  ;;  %1927 = vmatmul.bf16.gmra.mxu2 %v7607_v41 }
 0x1d0   : > { %1955 = vmatmul.bf16.gmra.mxu3 %v7608_v53 }
 0x1d2   : > { %v1704_v58 = vpop.f32.mrf.mxu2 }
 0x1d3   : > { %v1705_v29 = vadd.f32 %v1704_v58, %v1677_v1  ;;  %v1732_v26 = vpop.f32.mrf.mxu3  ;;  %v1650_v33 = vpop.f32.mrf.mxu0  ;;  %v7610_v1 = vld [vmem:[#allocation108_spill] sm:$0xff]  ;;  %v7611_v58 = vld [vmem:[#allocation109_spill] sm:$0xff] }
 0x1d4   : > { %v1651_v10 = vadd.f32 %v1650_v33, %v5296_v6  ;;  %v1678_v5 = vpop.f32.mrf.mxu1  ;;  %v7612_v33 = vld [vmem:[#allocation117_spill] sm:$0xff] }
 0x1d5   : > { %v5999_v51 = vadd.f32 %v1732_v26, %v1705_v29 }
 0x1d6   : > { %v1679_v22 = vadd.f32 %v1678_v5, %v1651_v10 }
 0x1da   : > { %v1706_v61 = vpop.f32.mrf.mxu2 }
 0x1db   : > { %v1707_v15 = vadd.f32 %v1706_v61, %v1679_v22  ;;  %v1734_v60 = vpop.f32.mrf.mxu3  ;;  %v1653_v59 = vpop.f32.mrf.mxu0 }
 0x1dc   : > { %v1654_v25 = vadd.f32 %v1653_v59, %v5296_v6  ;;  %v1681_v31 = vpop.f32.mrf.mxu1 }
 0x1dd   : > { %v6002_v41 = vadd.f32 %v1734_v60, %v1707_v15 }
 0x1de   : > { %v1682_v53 = vadd.f32 %v1681_v31, %v1654_v25  ;;  %1876 = vmatmul.bf16.gmra.mxu0 %v7609_v0  ;;  %v7613_v25 = vld [vmem:[#allocation34_spill] sm:$0xff] }
 0x1df   : > { %1904 = vmatmul.bf16.gmra.mxu1 %v7610_v1  ;;  %1932 = vmatmul.bf16.gmra.mxu2 %v7611_v58  ;;  %v7615_v1 = vld [vmem:[#allocation36_spill] sm:$0xff]  ;;  %v7616_v58 = vld [vmem:[#allocation37_spill] sm:$0xff] }
 0x1e0   : > { %1960 = vmatmul.bf16.gmra.mxu3 %v7612_v33 }
 0x1e2   : > { %v1709_v26 = vpop.f32.mrf.mxu2 }
 0x1e3   : > { %v1710_v29 = vadd.f32 %v1709_v26, %v1682_v53  ;;  %v1737_v5 = vpop.f32.mrf.mxu3  ;;  %v1655_v10 = vpop.f32.mrf.mxu0  ;;  %v7614_v53 = vld [vmem:[#allocation35_spill] sm:$0xff] }
 0x1e4   : > { %v1683_v22 = vpop.f32.mrf.mxu1 }
 0x1e5   : > { %v6008_v61 = vadd.f32 %v1737_v5, %v1710_v29  ;;  %v7619_v5 = vld [vmem:[#allocation40_spill] sm:$0xff]  ;;  %v7620_v22 = vld [vmem:[#allocation41_spill] sm:$0xff] }
 0x1ea   : > { %v1711_v59 = vpop.f32.mrf.mxu2 }
 0x1eb   : > { %v1739_v43 = vpop.f32.mrf.mxu3  ;;  %v1750_v60 = vpop.f32.mrf.mxu0  ;;  %v7621_v59 = vld [vmem:[#allocation42_spill] sm:$0xff] }
 0x1ec   : > { %v1751_v31 = vadd.f32 %v1750_v60, %v5952_v37  ;;  %v1778_v15 = vpop.f32.mrf.mxu1  ;;  %v7622_v60 = vld [vmem:[#allocation43_spill] sm:$0xff] }
 0x1ee   : > { %v1779_v0 = vadd.f32 %v1778_v15, %v1751_v31  ;;  %1973 = vmatmul.bf16.vlgmr.msrb.gmra.mxu0 %v5785_v12  ;;  %v7623_v31 = vld [vmem:[#allocation44_spill] sm:$0xff] }
 0x1ef   : > { %2001 = vmatmul.bf16.vlgmr.msrb.gmra.mxu1 %v5788_v30  ;;  %2029 = vmatmul.bf16.vlgmr.msrb.gmra.mxu2 %v5790_v13  ;;  %v7617_v30 = vld [vmem:[#allocation38_spill] sm:$0xff] }
 0x1f0   : > { %2057 = vmatmul.bf16.vlgmr.msrb.gmra.mxu3 %v5792_v8  ;;  %2463 = vmatpush.bf16.msrb.mxu2 %v7613_v25  ;;  %v7618_v8 = vld [vmem:[#allocation39_spill] sm:$0xff]  ;;  %v3868_v25 = vld [vmem:[%s4444_s14 + $0x310] sm:$0xff] }
 0x1f1   : > { %2491 = vmatpush.bf16.msrb.mxu3 %v7614_v53  ;;  %2407 = vmatpush.bf16.msrb.mxu0 %v7615_v1  ;;  %v3859_v1 = vld [vmem:[%s4444_s14 + $0x2c8] sm:$0xff] }
 0x1f2   : > { %v1806_v43 = vpop.f32.mrf.mxu2  ;;  %2435 = vmatpush.bf16.msrb.mxu1 %v7616_v58  ;;  %v3867_v53 = vld [vmem:[%s4444_s14 + $0x308] sm:$0xff] }
 0x1f3   : > { %v1807_v37 = vadd.f32 %v1806_v43, %v1779_v0  ;;  %v1834_v33 = vpop.f32.mrf.mxu3  ;;  %v1752_v26 = vpop.f32.mrf.mxu0  ;;  %v6190_v35 = vpack.c.bf16 %v3867_v53, %v3859_v1  ;;  %v7691_v53 = vld [vmem:[#allocation105_spill] sm:$0xff] }
 0x1f4   : > { %v1753_v12 = vadd.f32 %v1752_v26, %v5963_v2  ;;  %v1780_v29 = vpop.f32.mrf.mxu1  ;;  %2464 = vmatpush.bf16.msrb.mxu2 %v7617_v30  ;;  %v7624_v2 = vld [vmem:[#allocation45_spill] sm:$0xff] }
 0x1f5   : > { %v6021_v13 = vadd.f32 %v1834_v33, %v1807_v37  ;;  %2492 = vmatpush.bf16.msrb.mxu3 %v7618_v8  ;;  %2408 = vmatpush.bf16.msrb.mxu0 %v7619_v5  ;;  %v7625_v8 = vld [vmem:[#allocation46_spill] sm:$0xff]  ;;  %7684 = vst [vmem:[#allocation84_spill] sm:$0xff] %v6190_v35 }
 0x1f6   : > { %v1781_v10 = vadd.f32 %v1780_v29, %v1753_v12  ;;  %2436 = vmatpush.bf16.msrb.mxu1 %v7620_v22  ;;  %v7626_v29 = vld [vmem:[#allocation47_spill] sm:$0xff] }
 0x1f8   : > { %2465 = vmatpush.bf16.msrb.mxu2 %v7621_v59  ;;  %v7627_v59 = vld [vmem:[#allocation48_spill] sm:$0xff] }
 0x1f9   : > { %2493 = vmatpush.bf16.msrb.mxu3 %v7622_v60  ;;  %2409 = vmatpush.bf16.msrb.mxu0 %v7623_v31  ;;  %v7628_v31 = vld [vmem:[#allocation49_spill] sm:$0xff] }
 0x1fa   : > { %v1808_v15 = vpop.f32.mrf.mxu2  ;;  %2437 = vmatpush.bf16.msrb.mxu1 %v7624_v2  ;;  %v7662_v2 = vld [vmem:[#allocation76_spill] sm:$0xff] }
 0x1fb   : > { %v1809_v0 = vadd.f32 %v1808_v15, %v1781_v10  ;;  %v1836_v43 = vpop.f32.mrf.mxu3  ;;  %v1755_v37 = vpop.f32.mrf.mxu0  ;;  %v7630_v10 = vld [vmem:[#allocation51_spill] sm:$0xff]  ;;  %v7631_v15 = vld [vmem:[#allocation52_spill] sm:$0xff] }
 0x1fc   : > { %v1756_v33 = vadd.f32 %v1755_v37, %v5978_v27  ;;  %v1783_v26 = vpop.f32.mrf.mxu1  ;;  %2466 = vmatpush.bf16.msrb.mxu2 %v7625_v8  ;;  %v7629_v27 = vld [vmem:[#allocation50_spill] sm:$0xff]  ;;  %v7661_v8 = vld [vmem:[#allocation75_spill] sm:$0xff] }
 0x1fd   : > { %v6032_v12 = vadd.f32 %v1836_v43, %v1809_v0  ;;  %2494 = vmatpush.bf16.msrb.mxu3 %v7626_v29  ;;  %2410 = vmatpush.bf16.msrb.mxu0 %v7627_v59  ;;  %v7632_v43 = vld [vmem:[#allocation53_spill] sm:$0xff]  ;;  %v7641_v29 = vld [vmem:[#allocation62_spill] sm:$0xff] }
 0x1fe   : > { %v1784_v60 = vadd.f32 %v1783_v26, %v1756_v33  ;;  %1978 = vmatmul.bf16.gmra.mxu0 %v5834_v46  ;;  %2438 = vmatpush.bf16.msrb.mxu1 %v7628_v31  ;;  %v7636_v59 = vld [vmem:[#allocation57_spill] sm:$0xff] }
 0x1ff   : > { %2006 = vmatmul.bf16.gmra.mxu1 %v5838_v21  ;;  %2034 = vmatmul.bf16.gmra.mxu2 %v5840_v39  ;;  %v7633_v21 = vld [vmem:[#allocation54_spill] sm:$0xff] }
 0x200   : > { %2062 = vmatmul.bf16.gmra.mxu3 %v5842_v20  ;;  %2467 = vmatpush.bf16.msrb.mxu2 %v7629_v27  ;;  %v7634_v20 = vld [vmem:[#allocation55_spill] sm:$0xff]  ;;  %v7635_v27 = vld [vmem:[#allocation56_spill] sm:$0xff] }
 0x201   : > { %2495 = vmatpush.bf16.msrb.mxu3 %v7630_v10  ;;  %2411 = vmatpush.bf16.msrb.mxu0 %v7631_v15  ;;  %v7637_v15 = vld [vmem:[#allocation58_spill] sm:$0xff] }
 0x202   : > { %v1811_v0 = vpop.f32.mrf.mxu2  ;;  %2439 = vmatpush.bf16.msrb.mxu1 %v7632_v43  ;;  %v7638_v43 = vld [vmem:[#allocation59_spill] sm:$0xff] }
 0x203   : > { %v1812_v37 = vadd.f32 %v1811_v0, %v1784_v60  ;;  %v1839_v33 = vpop.f32.mrf.mxu3  ;;  %v1757_v46 = vpop.f32.mrf.mxu0  ;;  %v7639_v60 = vld [vmem:[#allocation60_spill] sm:$0xff] }
 0x204   : > { %v1758_v26 = vadd.f32 %v1757_v46, %v5989_v38  ;;  %v1785_v31 = vpop.f32.mrf.mxu1  ;;  %2468 = vmatpush.bf16.msrb.mxu2 %v7633_v21  ;;  %v7640_v38 = vld [vmem:[#allocation61_spill] sm:$0xff] }
 0x205   : > { %v6047_v39 = vadd.f32 %v1839_v33, %v1812_v37  ;;  %2496 = vmatpush.bf16.msrb.mxu3 %v7634_v20  ;;  %2412 = vmatpush.bf16.msrb.mxu0 %v7635_v27  ;;  %v3853_v27 = vld [vmem:[%s4444_s14 + $0x298] sm:$0xff] }
 0x206   : > { %v1786_v10 = vadd.f32 %v1785_v31, %v1758_v26  ;;  %2440 = vmatpush.bf16.msrb.mxu1 %v7636_v59  ;;  %v7642_v26 = vld [vmem:[#allocation63_spill] sm:$0xff]  ;;  %v3845_v59 = vld [vmem:[%s4444_s14 + $0x258] sm:$0xff] }
 0x207   : > { %v6145_v58 = vpack.c.bf16 %v3853_v27, %v3845_v59  ;;  %v7672_v59 = vld [vmem:[#allocation86_spill] sm:$0xff]  ;;  %v7673_v27 = vld [vmem:[#allocation87_spill] sm:$0xff] }
 0x208   : > { %2469 = vmatpush.bf16.msrb.mxu2 %v7637_v15  ;;  %v7643_v15 = vld [vmem:[#allocation64_spill] sm:$0xff] }
 0x209   : > { %2497 = vmatpush.bf16.msrb.mxu3 %v7638_v43  ;;  %2413 = vmatpush.bf16.msrb.mxu0 %v7639_v60  ;;  %v7644_v60 = vld [vmem:[#allocation65_spill] sm:$0xff]  ;;  %7667 = vst [vmem:[#allocation82_spill] sm:$0xff] %v6145_v58 }
 0x20a   : > { %v1813_v0 = vpop.f32.mrf.mxu2  ;;  %2441 = vmatpush.bf16.msrb.mxu1 %v7640_v38  ;;  %v7660_v38 = vld [vmem:[#allocation74_spill] sm:$0xff] }
 0x20b   : > { %v1814_v46 = vadd.f32 %v1813_v0, %v1786_v10  ;;  %v1841_v21 = vpop.f32.mrf.mxu3  ;;  %v1760_v37 = vpop.f32.mrf.mxu0 }
 0x20c   : > { %v1761_v33 = vadd.f32 %v1760_v37, %v5999_v51  ;;  %v1788_v20 = vpop.f32.mrf.mxu1  ;;  %2470 = vmatpush.bf16.msrb.mxu2 %v7641_v29  ;;  %v3852_v29 = vld [vmem:[%s4444_s14 + $0x290] sm:$0xff] }
 0x20d   : > { %v6058_v31 = vadd.f32 %v1841_v21, %v1814_v46  ;;  %2498 = vmatpush.bf16.msrb.mxu3 %v7642_v26  ;;  %2414 = vmatpush.bf16.msrb.mxu0 %v7643_v15 }
 0x20e   : > { %v1789_v43 = vadd.f32 %v1788_v20, %v1761_v33  ;;  %1983 = vmatmul.bf16.gmra.mxu0 %v5883_v62  ;;  %2442 = vmatpush.bf16.msrb.mxu1 %v7644_v60 }
 0x20f   : > { %2011 = vmatmul.bf16.gmra.mxu1 %v5887_v17  ;;  %2039 = vmatmul.bf16.gmra.mxu2 %v5889_v18 }
 0x210   : > { %2067 = vmatmul.bf16.gmra.mxu3 %v5891_v49 }
 0x212   : > { %v1816_v51 = vpop.f32.mrf.mxu2 }
 0x213   : > { %v1817_v10 = vadd.f32 %v1816_v51, %v1789_v43  ;;  %v1844_v0 = vpop.f32.mrf.mxu3  ;;  %v1762_v21 = vpop.f32.mrf.mxu0 }
 0x214   : > { %v1763_v46 = vadd.f32 %v1762_v21, %v6002_v41  ;;  %v1790_v37 = vpop.f32.mrf.mxu1  ;;  %v3834_v21 = vld [vmem:[%s4444_s14 + $0x200] sm:$0xff] }
 0x215   : > { %v6068_v26 = vadd.f32 %v1844_v0, %v1817_v10  ;;  %v3826_v0 = vld [vmem:[%s4444_s14 + $0x1c0] sm:$0xff] }
 0x216   : > { %v1791_v20 = vadd.f32 %v1790_v37, %v1763_v46  ;;  %v3827_v46 = vld [vmem:[%s4444_s14 + $0x1c8] sm:$0xff] }
 0x217   : > { %7645 = vst [vmem:[#allocation123_spill] sm:$0xff] %v6068_v26  ;;  %v3835_v37 = vld [vmem:[%s4444_s14 + $0x208] sm:$0xff]  ;;  %v3840_v26 = vld [vmem:[%s4444_s14 + $0x230] sm:$0xff] }
 0x21a   : > { %v1818_v33 = vpop.f32.mrf.mxu2 }
 0x21b   : > { %v1819_v62 = vadd.f32 %v1818_v33, %v1791_v20  ;;  %v1846_v15 = vpop.f32.mrf.mxu3  ;;  %v1765_v60 = vpop.f32.mrf.mxu0  ;;  %v3836_v20 = vld [vmem:[%s4444_s14 + $0x210] sm:$0xff]  ;;  %v3829_v33 = vld [vmem:[%s4444_s14 + $0x1d8] sm:$0xff] }
 0x21c   : > { %v1766_v17 = vadd.f32 %v1765_v60, %v6008_v61  ;;  %v1793_v18 = vpop.f32.mrf.mxu1 }
 0x21d   : > { %v6071_v49 = vadd.f32 %v1846_v15, %v1819_v62 }
 0x21e   : > { %v1794_v43 = vadd.f32 %v1793_v18, %v1766_v17  ;;  %1988 = vmatmul.bf16.gmra.mxu0 %v5917_v57  ;;  %v3828_v57 = vld [vmem:[%s4444_s14 + $0x1d0] sm:$0xff]  ;;  %v6087_v17 = vpack.c.bf16 %v3834_v21, %v3826_v0  ;;  %v6091_v18 = vpack.c.bf16 %v3835_v37, %v3827_v46  ;;  %v7655_v21 = vld [vmem:[#allocation69_spill] sm:$0xff] }
 0x21f   : > { %7646 = vst [vmem:[#allocation110_spill] sm:$0xff] %v6071_v49  ;;  %2016 = vmatmul.bf16.gmra.mxu1 %v5920_v3  ;;  %2044 = vmatmul.bf16.gmra.mxu2 %v5922_v45  ;;  %v3837_v3 = vld [vmem:[%s4444_s14 + $0x218] sm:$0xff]  ;;  %v3832_v49 = vld [vmem:[%s4444_s14 + $0x1f0] sm:$0xff] }
 0x220   : > { %2072 = vmatmul.bf16.gmra.mxu3 %v5924_v44  ;;  %7648 = vst [vmem:[#allocation125_spill] sm:$0xff] %v6087_v17 }
 0x221   : > { %7649 = vst [vmem:[#allocation127_spill] sm:$0xff] %v6091_v18 }
 0x222   : > { %v1821_v41 = vpop.f32.mrf.mxu2 }
 0x223   : > { %v1822_v61 = vadd.f32 %v1821_v41, %v1794_v43  ;;  %v1849_v60 = vpop.f32.mrf.mxu3  ;;  %v1767_v51 = vpop.f32.mrf.mxu0  ;;  %v6093_v43 = vpack.c.bf16 %v3836_v20, %v3828_v57  ;;  %v7656_v20 = vld [vmem:[#allocation70_spill] sm:$0xff] }
 0x224   : > { %v1795_v10 = vpop.f32.mrf.mxu1  ;;  %v7653_v51 = vld [vmem:[#allocation67_spill] sm:$0xff] }
 0x225   : > { %v6077_v15 = vadd.f32 %v1849_v60, %v1822_v61  ;;  %7650 = vst [vmem:[#allocation128_spill] sm:$0xff] %v6093_v43  ;;  %v6097_v61 = vpack.c.bf16 %v3837_v3, %v3829_v33  ;;  %v7652_v60 = vld [vmem:[#allocation66_spill] sm:$0xff]  ;;  %v7654_v10 = vld [vmem:[#allocation68_spill] sm:$0xff]  ;;  %v7657_v33 = vld [vmem:[#allocation71_spill] sm:$0xff] }
 0x226   : > { %v7658_v3 = vld [vmem:[#allocation72_spill] sm:$0xff] }
 0x227   : > { %7647 = vst [vmem:[#allocation121_spill] sm:$0xff] %v6077_v15  ;;  %v3831_v15 = vld [vmem:[%s4444_s14 + $0x1e8] sm:$0xff] }
 0x228   : > { %7651 = vst [vmem:[#allocation129_spill] sm:$0xff] %v6097_v61 }
 0x22a   : > { %v1823_v62 = vpop.f32.mrf.mxu2 }
 0x22b   : > { %v1851_v45 = vpop.f32.mrf.mxu3  ;;  %v6089_v44 = vpop.f32.mrf.mxu0  ;;  %v7659_v62 = vld [vmem:[#allocation73_spill] sm:$0xff] }
 0x22c   : > { %v6095_v41 = vpop.f32.mrf.mxu1  ;;  %v3842_v45 = vld [vmem:[%s4444_s14 + $0x240] sm:$0xff] }
 0x22e   : > { %2303 = vmatmul.bf16.vlgmr.msra.gmra.mxu0 %v6087_v17 }
 0x22f   : > { %2331 = vmatmul.bf16.vlgmr.msra.gmra.mxu1 %v6091_v18  ;;  %2359 = vmatmul.bf16.vlgmr.msra.gmra.mxu2 %v6093_v43 }
 0x230   : > { %2387 = vmatmul.bf16.vlgmr.msra.gmra.mxu3 %v6097_v61  ;;  %2575 = vmatpush.bf16.msra.mxu2 %v7652_v60  ;;  %v3851_v60 = vld [vmem:[%s4444_s14 + $0x288] sm:$0xff] }
 0x231   : > { %2603 = vmatpush.bf16.msra.mxu3 %v7653_v51  ;;  %2519 = vmatpush.bf16.msra.mxu0 %v7654_v10  ;;  %v3850_v10 = vld [vmem:[%s4444_s14 + $0x280] sm:$0xff]  ;;  %v3843_v51 = vld [vmem:[%s4444_s14 + $0x248] sm:$0xff] }
 0x232   : > { %v6106_v0 = vpop.f32.mrf.mxu2  ;;  %2547 = vmatpush.bf16.msra.mxu1 %v7655_v21  ;;  %v3844_v21 = vld [vmem:[%s4444_s14 + $0x250] sm:$0xff]  ;;  %v6139_v5 = vpack.c.bf16 %v3851_v60, %v3843_v51 }
 0x233   : > { %v6109_v46 = vpop.f32.mrf.mxu3  ;;  %v6111_v37 = vpop.f32.mrf.mxu0  ;;  %v6141_v30 = vpack.c.bf16 %v3852_v29, %v3844_v21  ;;  %v7671_v29 = vld [vmem:[#allocation81_spill] sm:$0xff]  ;;  %v7674_v51 = vld [vmem:[#allocation88_spill] sm:$0xff] }
 0x234   : > { %v6113_v57 = vpop.f32.mrf.mxu1  ;;  %2576 = vmatpush.bf16.msra.mxu2 %v7656_v20  ;;  %7665 = vst [vmem:[#allocation131_spill] sm:$0xff] %v6139_v5 }
 0x235   : > { %2604 = vmatpush.bf16.msra.mxu3 %v7657_v33  ;;  %2520 = vmatpush.bf16.msra.mxu0 %v7658_v3  ;;  %v6132_v33 = vpack.c.bf16 %v3850_v10, %v3842_v45  ;;  %v7664_v3 = vld [vmem:[#allocation77_spill] sm:$0xff]  ;;  %7666 = vst [vmem:[#allocation132_spill] sm:$0xff] %v6141_v30  ;;  %v7670_v10 = vld [vmem:[#allocation80_spill] sm:$0xff] }
 0x236   : > { %2548 = vmatpush.bf16.msra.mxu1 %v7659_v62 }
 0x237   : > { %7663 = vst [vmem:[#allocation130_spill] sm:$0xff] %v6132_v33 }
 0x238   : > { %2577 = vmatpush.bf16.msra.mxu2 %v7660_v38 }
 0x239   : > { %2605 = vmatpush.bf16.msra.mxu3 %v7661_v8  ;;  %2521 = vmatpush.bf16.msra.mxu0 %v7662_v2  ;;  %v7668_v8 = vld [vmem:[#allocation78_spill] sm:$0xff]  ;;  %v7669_v2 = vld [vmem:[#allocation79_spill] sm:$0xff] }
 0x23a   : > { %v6130_v20 = vpop.f32.mrf.mxu2  ;;  %2549 = vmatpush.bf16.msra.mxu1 %v7664_v3  ;;  %v3866_v3 = vld [vmem:[%s4444_s14 + $0x300] sm:$0xff] }
 0x23b   : > { %v6135_v62 = vpop.f32.mrf.mxu3  ;;  %v6137_v22 = vpop.f32.mrf.mxu0 }
 0x23c   : > { %v6143_v38 = vpop.f32.mrf.mxu1  ;;  %2578 = vmatpush.bf16.msra.mxu2 %v7668_v8  ;;  %v7678_v8 = vld [vmem:[#allocation92_spill] sm:$0xff] }
 0x23d   : > { %2606 = vmatpush.bf16.msra.mxu3 %v7669_v2  ;;  %2522 = vmatpush.bf16.msra.mxu0 %v7670_v10  ;;  %v7675_v2 = vld [vmem:[#allocation89_spill] sm:$0xff] }
 0x23e   : > { %2308 = vmatmul.bf16.gmra.mxu0 %v6132_v33  ;;  %2550 = vmatpush.bf16.msra.mxu1 %v7671_v29  ;;  %v7676_v29 = vld [vmem:[#allocation90_spill] sm:$0xff] }
 0x23f   : > { %2336 = vmatmul.bf16.gmra.mxu1 %v6139_v5  ;;  %2364 = vmatmul.bf16.gmra.mxu2 %v6141_v30  ;;  %v3861_v30 = vld [vmem:[%s4444_s14 + $0x2d8] sm:$0xff]  ;;  %v7680_v33 = vld [vmem:[#allocation98_spill] sm:$0xff] }
 0x240   : > { %2392 = vmatmul.bf16.gmra.mxu3 %v6145_v58  ;;  %2579 = vmatpush.bf16.msra.mxu2 %v7672_v59  ;;  %v7677_v59 = vld [vmem:[#allocation91_spill] sm:$0xff]  ;;  %v7679_v58 = vld [vmem:[#allocation93_spill] sm:$0xff] }
 0x241   : > { %2607 = vmatpush.bf16.msra.mxu3 %v7673_v27  ;;  %2523 = vmatpush.bf16.msra.mxu0 %v7674_v51  ;;  %v3858_v27 = vld [vmem:[%s4444_s14 + $0x2c0] sm:$0xff]  ;;  %v3860_v51 = vld [vmem:[%s4444_s14 + $0x2d0] sm:$0xff]  ;;  %v3869_v5 = vld [vmem:[%s4444_s14 + $0x318] sm:$0xff] }
 0x242   : > { %v6157_v60 = vpop.f32.mrf.mxu2  ;;  %2551 = vmatpush.bf16.msra.mxu1 %v7675_v2  ;;  %v6192_v61 = vpack.c.bf16 %v3868_v25, %v3860_v51  ;;  %v7690_v25 = vld [vmem:[#allocation104_spill] sm:$0xff] }
 0x243   : > { %v6160_v21 = vpop.f32.mrf.mxu3  ;;  %v6162_v45 = vpop.f32.mrf.mxu0 }
 0x244   : > { %v6164_v10 = vpop.f32.mrf.mxu1  ;;  %2580 = vmatpush.bf16.msra.mxu2 %v7676_v29  ;;  %v6183_v29 = vpack.c.bf16 %v3866_v3, %v3858_v27  ;;  %7685 = vst [vmem:[#allocation85_spill] sm:$0xff] %v6192_v61  ;;  %v7688_v3 = vld [vmem:[#allocation102_spill] sm:$0xff]  ;;  %v7689_v27 = vld [vmem:[#allocation103_spill] sm:$0xff] }
 0x245   : > { %2608 = vmatpush.bf16.msra.mxu3 %v7677_v59  ;;  %2524 = vmatpush.bf16.msra.mxu0 %v7678_v8  ;;  %v7683_v59 = vld [vmem:[#allocation100_spill] sm:$0xff] }
 0x246   : > { %2552 = vmatpush.bf16.msra.mxu1 %v7679_v58  ;;  %7682 = vst [vmem:[#allocation83_spill] sm:$0xff] %v6183_v29 }
 0x248   : > { %2581 = vmatpush.bf16.msra.mxu2 %v7680_v33  ;;  %v6196_v33 = vpack.c.bf16 %v3869_v5, %v3861_v30 }
 0x249   : > { %2609 = vmatpush.bf16.msra.mxu3 %v7681_v40  ;;  %2525 = vmatpush.bf16.msra.mxu0 %v7683_v59  ;;  %v7687_v40 = vld [vmem:[#allocation101_spill] sm:$0xff] }
 0x24a   : > { %v6181_v2 = vpop.f32.mrf.mxu2  ;;  %7686 = vst [vmem:[#allocation94_spill] sm:$0xff] %v6196_v33  ;;  %2553 = vmatpush.bf16.msra.mxu1 %v7687_v40  ;;  %v3876_v40 = vld [vmem:[%s4444_s14 + $0x350] sm:$0x1]  ;;  %v3877_v59 = vld [vmem:[%s4444_s14 + $0x358] sm:$0x1] }
 0x24b   : > { %v6186_v8 = vpop.f32.mrf.mxu3  ;;  %v6188_v54 = vpop.f32.mrf.mxu0  ;;  %v6233_v18 = vpack.c.bf16 %v3877_v59, %v3877_v59 }
 0x24c   : > { %v6194_v58 = vpop.f32.mrf.mxu1  ;;  %2582 = vmatpush.bf16.msra.mxu2 %v7688_v3  ;;  %v3875_v3 = vld [vmem:[%s4444_s14 + $0x348] sm:$0x1] }
 0x24d   : > { %2610 = vmatpush.bf16.msra.mxu3 %v7689_v27  ;;  %2526 = vmatpush.bf16.msra.mxu0 %v7690_v25  ;;  %v3874_v27 = vld [vmem:[%s4444_s14 + $0x340] sm:$0x1]  ;;  %7697 = vst [vmem:[#allocation108_spill] sm:$0xff] %v6233_v18 }
 0x24e   : > { %2313 = vmatmul.bf16.gmra.mxu0 %v6183_v29  ;;  %2554 = vmatpush.bf16.msra.mxu1 %v7691_v53  ;;  %v6227_v53 = vpack.c.bf16 %v3875_v3, %v3875_v3  ;;  %v6229_v29 = vpack.c.bf16 %v3876_v40, %v3876_v40 }
 0x24f   : > { %2341 = vmatmul.bf16.gmra.mxu1 %v6190_v35  ;;  %2369 = vmatmul.bf16.gmra.mxu2 %v6192_v61  ;;  %v6221_v61 = vpack.c.bf16 %v3874_v27, %v3874_v27  ;;  %v1863_v27 = vadd.f32 %v6089_v44, %v5749_v56  ;;  %v3838_v44 = vld [vmem:[%s4444_s14 + $0x220] sm:$0xff] }
 0x250   : > { %2397 = vmatmul.bf16.gmra.mxu3 %v6196_v33  ;;  %7694 = vst [vmem:[#allocation97_spill] sm:$0xff] %v6227_v53 }
 0x251   : > { %7692 = vst [vmem:[#allocation95_spill] sm:$0xff] %v6221_v61  ;;  %v1891_v59 = vadd.f32 %v6095_v41, %v1863_v27 }
 0x252   : > { %v6207_v1 = vpop.f32.mrf.mxu2  ;;  %7695 = vst [vmem:[#allocation106_spill] sm:$0xff] %v6229_v29 }
 0x253   : > { %v6209_v30 = vpop.f32.mrf.mxu3  ;;  %v6211_v5 = vpop.f32.mrf.mxu0  ;;  %v1919_v6 = vadd.f32 %v6106_v0, %v1891_v59  ;;  %v6262_v0 = vpack.c.bf16 %v3840_v26, %v3832_v49  ;;  %v7700_v26 = vld [vmem:[#allocation111_spill] sm:$0xff]  ;;  %v7701_v49 = vld [vmem:[#allocation112_spill] sm:$0xff] }
 0x254   : > { %v6213_v51 = vpop.f32.mrf.mxu1 }
 0x255   : > { %v1947_v41 = vadd.f32 %v6109_v46, %v1919_v6 }
 0x25a   : > { %v6219_v35 = vpop.f32.mrf.mxu2 }
 0x25b   : > { %v6223_v33 = vpop.f32.mrf.mxu3  ;;  %v6225_v25 = vpop.f32.mrf.mxu0 }
 0x25c   : > { %7693 = vst [vmem:[#allocation96_spill] sm:$0xff] %v6223_v33  ;;  %v6231_v43 = vpop.f32.mrf.mxu1  ;;  %v6257_v33 = vpack.c.bf16 %v3838_v44, %v3830_v7  ;;  %v1868_v7 = vadd.f32 %v6137_v22, %v5749_v56  ;;  %v7705_v44 = vld [vmem:[#allocation116_spill] sm:$0xff] }
 0x25d   : > { %7696 = vst [vmem:[#allocation107_spill] sm:$0xff] %v6231_v43  ;;  %v3841_v43 = vld [vmem:[%s4444_s14 + $0x238] sm:$0xff] }
 0x25e   : > { %2318 = vmatmul.bf16.gmra.mxu0 %v6221_v61  ;;  %v1896_v22 = vadd.f32 %v6143_v38, %v1868_v7  ;;  %v3848_v7 = vld [vmem:[%s4444_s14 + $0x270] sm:$0xff] }
 0x25f   : > { %2346 = vmatmul.bf16.gmra.mxu1 %v6227_v53  ;;  %2374 = vmatmul.bf16.gmra.mxu2 %v6229_v29  ;;  %v3839_v53 = vld [vmem:[%s4444_s14 + $0x228] sm:$0xff]  ;;  %v1865_v29 = vadd.f32 %v6111_v37, %v5749_v56 }
 0x260   : > { %2402 = vmatmul.bf16.gmra.mxu3 %v6233_v18  ;;  %v3833_v18 = vld [vmem:[%s4444_s14 + $0x1f8] sm:$0xff]  ;;  %v6260_v27 = vpack.c.bf16 %v3839_v53, %v3831_v15  ;;  %v1924_v38 = vadd.f32 %v6157_v60, %v1896_v22  ;;  %v7708_v60 = vld [vmem:[#allocation122_spill] sm:$0xff] }
 0x261   : > { %v1893_v32 = vadd.f32 %v6113_v57, %v1865_v29 }
 0x262   : > { %v6241_v40 = vpop.f32.mrf.mxu2 }
 0x263   : > { %7698 = vst [vmem:[#allocation109_spill] sm:$0xff] %v6241_v40  ;;  %v6244_v3 = vpop.f32.mrf.mxu3  ;;  %v1879_v17 = vpop.f32.mrf.mxu0  ;;  %v1921_v37 = vadd.f32 %v6130_v20, %v1893_v32  ;;  %v7703_v20 = vld [vmem:[#allocation114_spill] sm:$0xff] }
 0x264   : > { %7699 = vst [vmem:[#allocation117_spill] sm:$0xff] %v6244_v3  ;;  %v1907_v61 = vpop.f32.mrf.mxu1  ;;  %v6264_v3 = vpack.c.bf16 %v3841_v43, %v3833_v18  ;;  %v7702_v18 = vld [vmem:[#allocation113_spill] sm:$0xff] }
 0x265   : > { %v1949_v32 = vadd.f32 %v6135_v62, %v1921_v37  ;;  %v7706_v62 = vld [vmem:[#allocation119_spill] sm:$0xff] }
 0x266   : > { %v3855_v37 = vld [vmem:[%s4444_s14 + $0x2a8] sm:$0xff] }
 0x26a   : > { %v1935_v40 = vpop.f32.mrf.mxu2 }
 0x26b   : > { %v1963_v17 = vpop.f32.mrf.mxu3  ;;  %v1974_v61 = vpop.f32.mrf.mxu0  ;;  %v7704_v40 = vld [vmem:[#allocation115_spill] sm:$0xff] }
 0x26c   : > { %v2002_v59 = vpop.f32.mrf.mxu1  ;;  %v1975_v28 = vadd.f32 %v1974_v61, %v1947_v41  ;;  %v3846_v17 = vld [vmem:[%s4444_s14 + $0x260] sm:$0xff] }
 0x26d   : > { %v3854_v61 = vld [vmem:[%s4444_s14 + $0x2a0] sm:$0xff] }
 0x26e   : > { %2415 = vmatmul.bf16.vlgmr.msrb.gmra.mxu0 %v6257_v33  ;;  %v2003_v6 = vadd.f32 %v2002_v59, %v1975_v28  ;;  %v3847_v59 = vld [vmem:[%s4444_s14 + $0x268] sm:$0xff]  ;;  %v6300_v22 = vpack.c.bf16 %v3854_v61, %v3846_v17 }
 0x26f   : > { %2443 = vmatmul.bf16.vlgmr.msrb.gmra.mxu1 %v6260_v27  ;;  %2471 = vmatmul.bf16.vlgmr.msrb.gmra.mxu2 %v6262_v0 }
 0x270   : > { %2499 = vmatmul.bf16.vlgmr.msrb.gmra.mxu3 %v6264_v3  ;;  %2687 = vmatpush.bf16.msrb.mxu2 %v7540_v16 }
 0x271   : > { %2715 = vmatpush.bf16.msrb.mxu3 %v7700_v26  ;;  %2631 = vmatpush.bf16.msrb.mxu0 %v7701_v49 }
 0x272   : > { %v2030_v15 = vpop.f32.mrf.mxu2  ;;  %2659 = vmatpush.bf16.msrb.mxu1 %v7702_v18 }
 0x273   : > { %v2031_v43 = vadd.f32 %v2030_v15, %v2003_v6  ;;  %v2058_v46 = vpop.f32.mrf.mxu3  ;;  %v1976_v28 = vpop.f32.mrf.mxu0  ;;  %v3856_v6 = vld [vmem:[%s4444_s14 + $0x2b0] sm:$0xff] }
 0x274   : > { %v2004_v57 = vpop.f32.mrf.mxu1  ;;  %2688 = vmatpush.bf16.msrb.mxu2 %v7703_v20  ;;  %v1977_v53 = vadd.f32 %v1976_v28, %v1949_v32  ;;  %v7707_v15 = vld [vmem:[#allocation120_spill] sm:$0xff]  ;;  %v1870_v32 = vadd.f32 %v6162_v45, %v5749_v56  ;;  %v3857_v28 = vld [vmem:[%s4444_s14 + $0x2b8] sm:$0xff]  ;;  %v6304_v20 = vpack.c.bf16 %v3855_v37, %v3847_v59  ;;  %v6306_v45 = vpack.c.bf16 %v3856_v6, %v3848_v7 }
 0x275   : > { %v2059_v29 = vadd.f32 %v2058_v46, %v2031_v43  ;;  %2716 = vmatpush.bf16.msrb.mxu3 %v7704_v40  ;;  %2632 = vmatpush.bf16.msrb.mxu0 %v7705_v44  ;;  %v3849_v46 = vld [vmem:[%s4444_s14 + $0x278] sm:$0xff] }
 0x276   : > { %2660 = vmatpush.bf16.msrb.mxu1 %v7706_v62  ;;  %v2005_v43 = vadd.f32 %v2004_v57, %v1977_v53  ;;  %v1952_v62 = vadd.f32 %v6160_v21, %v1924_v38  ;;  %v6308_v53 = vpack.c.bf16 %v3857_v28, %v3849_v46  ;;  %v1873_v38 = vadd.f32 %v6188_v54, %v5749_v56  ;;  %v3871_v46 = vld [vmem:[%s4444_s14 + $0x328] sm:$0xff]  ;;  %v3864_v28 = vld [vmem:[%s4444_s14 + $0x2f0] sm:$0xff] }
 0x277   : > { %v2100_v41 = vpack.c.bf16 %v2059_v29, %v6021_v13  ;;  %v7709_v29 = vld [vmem:[#allocation124_spill] sm:$0xff] }
 0x278   : > { %2689 = vmatpush.bf16.msrb.mxu2 %v7707_v15 }
 0x279   : > { %3818 = vst [vmem:[%s5815_s21 + $0x38] sm:$0xff] %v2100_v41  ;;  %2717 = vmatpush.bf16.msrb.mxu3 %v7549_v52  ;;  %2633 = vmatpush.bf16.msrb.mxu0 %v7708_v60  ;;  %v1898_v41 = vadd.f32 %v6164_v10, %v1870_v32  ;;  %v3870_v32 = vld [vmem:[%s4444_s14 + $0x320] sm:$0xff] }
 0x27a   : > { %v2032_v13 = vpop.f32.mrf.mxu2  ;;  %2661 = vmatpush.bf16.msrb.mxu1 %v7709_v29 }
 0x27b   : > { %v2033_v44 = vadd.f32 %v2032_v13, %v2005_v43  ;;  %v2060_v15 = vpop.f32.mrf.mxu3  ;;  %v1979_v40 = vpop.f32.mrf.mxu0  ;;  %v1926_v21 = vadd.f32 %v6181_v2, %v1898_v41  ;;  %v3863_v43 = vld [vmem:[%s4444_s14 + $0x2e8] sm:$0xff]  ;;  %v3872_v13 = vld [vmem:[%s4444_s14 + $0x330] sm:$0xff]  ;;  %v1875_v41 = vadd.f32 %v6211_v5, %v5749_v56 }
 0x27c   : > { %v2007_v57 = vpop.f32.mrf.mxu1  ;;  %2690 = vmatpush.bf16.msrb.mxu2 %v7552_v24  ;;  %v1980_v61 = vadd.f32 %v1979_v40, %v1952_v62  ;;  %v6355_v5 = vpack.c.bf16 %v3872_v13, %v3864_v28 }
 0x27d   : > { %v2061_v17 = vadd.f32 %v2060_v15, %v2033_v44  ;;  %2718 = vmatpush.bf16.msrb.mxu3 %v7553_v23  ;;  %2634 = vmatpush.bf16.msrb.mxu0 %v7554_v63  ;;  %v1954_v54 = vadd.f32 %v6186_v8, %v1926_v21  ;;  %v3862_v15 = vld [vmem:[%s4444_s14 + $0x2e0] sm:$0xff]  ;;  %v3873_v21 = vld [vmem:[%s4444_s14 + $0x338] sm:$0xff] }
 0x27e   : > { %2420 = vmatmul.bf16.gmra.mxu0 %v6300_v22  ;;  %2662 = vmatpush.bf16.msrb.mxu1 %v7555_v9  ;;  %v2008_v10 = vadd.f32 %v2007_v57, %v1980_v61  ;;  %v7710_v57 = vld [vmem:[#allocation133_spill] sm:$0xff] }
 0x27f   : > { %v2101_v59 = vpack.c.bf16 %v2061_v17, %v6032_v12  ;;  %2448 = vmatmul.bf16.gmra.mxu1 %v6304_v20  ;;  %2476 = vmatmul.bf16.gmra.mxu2 %v6306_v45  ;;  %v1901_v12 = vadd.f32 %v6194_v58, %v1873_v38  ;;  %v3865_v61 = vld [vmem:[%s4444_s14 + $0x2f8] sm:$0xff]  ;;  %v6349_v38 = vpack.c.bf16 %v3870_v32, %v3862_v15  ;;  %v7714_v32 = vld [vmem:[#allocation140_spill] sm:$0xff] }
 0x280   : > { %2504 = vmatmul.bf16.gmra.mxu3 %v6308_v53  ;;  %2691 = vmatpush.bf16.msrb.mxu2 %v7556_v34 }
 0x281   : > { %3819 = vst [vmem:[%s5815_s21 + $0x40] sm:$0xff] %v2101_v59  ;;  %2719 = vmatpush.bf16.msrb.mxu3 %v7557_v47  ;;  %2635 = vmatpush.bf16.msrb.mxu0 %v7558_v50  ;;  %v1929_v58 = vadd.f32 %v6207_v1, %v1901_v12  ;;  %v7711_v1 = vld [vmem:[#allocation134_spill] sm:$0xff]  ;;  %v7712_v59 = vld [vmem:[#allocation135_spill] sm:$0xff] }
 0x282   : > { %v2035_v2 = vpop.f32.mrf.mxu2  ;;  %2663 = vmatpush.bf16.msrb.mxu1 %v5356_v19 }
 0x283   : > { %v2036_v40 = vadd.f32 %v2035_v2, %v2008_v10  ;;  %v2063_v44 = vpop.f32.mrf.mxu3  ;;  %v1981_v62 = vpop.f32.mrf.mxu0  ;;  %v1957_v10 = vadd.f32 %v6209_v30, %v1929_v58  ;;  %v1878_v58 = vadd.f32 %v6225_v25, %v5749_v56  ;;  %v7715_v25 = vld [vmem:[#allocation96_spill] sm:$0xff] }
 0x284   : > { %v2009_v37 = vpop.f32.mrf.mxu1  ;;  %v1982_v6 = vadd.f32 %v1981_v62, %v1954_v54  ;;  %2692 = vmatpush.bf16.msrb.mxu2 %v5367_v55  ;;  %v6357_v62 = vpack.c.bf16 %v3873_v21, %v3865_v61 }
 0x285   : > { %v2064_v7 = vadd.f32 %v2063_v44, %v2036_v40  ;;  %2720 = vmatpush.bf16.msrb.mxu3 %v5379_v4  ;;  %2636 = vmatpush.bf16.msrb.mxu0 %v5381_v48  ;;  %v6353_v40 = vpack.c.bf16 %v3871_v46, %v3863_v43  ;;  %v7716_v43 = vld [vmem:[#allocation107_spill] sm:$0xff] }
 0x286   : > { %2664 = vmatpush.bf16.msrb.mxu1 %v7710_v57  ;;  %v2010_v17 = vadd.f32 %v2009_v37, %v1982_v6  ;;  %v1903_v37 = vadd.f32 %v6213_v51, %v1875_v41  ;;  %v7713_v51 = vld [vmem:[#allocation139_spill] sm:$0xff]  ;;  %v1906_v46 = vadd.f32 %v7716_v43, %v1878_v58  ;;  %v7719_v58 = vld [vmem:[#allocation117_spill] sm:$0xff] }
 0x287   : > { %v2102_v8 = vpack.c.bf16 %v2064_v7, %v6047_v39 }
 0x288   : > { %2693 = vmatpush.bf16.msrb.mxu2 %v5411_v14  ;;  %v1931_v30 = vadd.f32 %v6219_v35, %v1903_v37  ;;  %v3880_v37 = vld [vmem:[%s4444_s14 + $0x370] sm:$0x1] }
 0x289   : > { %3820 = vst [vmem:[%s5815_s21 + $0x48] sm:$0xff] %v2102_v8  ;;  %2721 = vmatpush.bf16.msrb.mxu3 %v7711_v1  ;;  %2637 = vmatpush.bf16.msrb.mxu0 %v7712_v59 }
 0x28a   : > { %v2037_v39 = vpop.f32.mrf.mxu2  ;;  %2665 = vmatpush.bf16.msrb.mxu1 %v7561_v36 }
 0x28b   : > { %v2038_v2 = vadd.f32 %v2037_v39, %v2010_v17  ;;  %v2065_v54 = vpop.f32.mrf.mxu3  ;;  %v1984_v12 = vpop.f32.mrf.mxu0  ;;  %v7717_v39 = vld [vmem:[#allocation109_spill] sm:$0xff] }
 0x28c   : > { %v2012_v44 = vpop.f32.mrf.mxu1  ;;  %v1985_v6 = vadd.f32 %v1984_v12, %v1957_v10  ;;  %2694 = vmatpush.bf16.msrb.mxu2 %v7562_v42  ;;  %v1934_v10 = vadd.f32 %v7717_v39, %v1906_v46  ;;  %v3878_v12 = vld [vmem:[%s4444_s14 + $0x360] sm:$0x1]  ;;  %v6388_v46 = vpack.c.bf16 %v3880_v37, %v3880_v37  ;;  %v3897_v42 = vld [vmem:[%s5600_s19 + $0x238] sm:$0xff] }
 0x28d   : > { %v2066_v7 = vadd.f32 %v2065_v54, %v2038_v2  ;;  %2722 = vmatpush.bf16.msrb.mxu3 %v7563_v11  ;;  %2638 = vmatpush.bf16.msrb.mxu0 %v7713_v51  ;;  %v7718_v2 = vld [vmem:[#allocation123_spill] sm:$0xff] }
 0x28e   : > { %2425 = vmatmul.bf16.gmra.mxu0 %v6349_v38  ;;  %v2013_v15 = vadd.f32 %v2012_v44, %v1985_v6  ;;  %2666 = vmatpush.bf16.msrb.mxu1 %v7714_v32  ;;  %v3879_v44 = vld [vmem:[%s4444_s14 + $0x368] sm:$0x1]  ;;  %v3881_v6 = vld [vmem:[%s4444_s14 + $0x378] sm:$0x1] }
 0x28f   : > { %v2103_v8 = vpack.c.bf16 %v2066_v7, %v6058_v31  ;;  %2453 = vmatmul.bf16.gmra.mxu1 %v6353_v40  ;;  %2481 = vmatmul.bf16.gmra.mxu2 %v6355_v5  ;;  %v1959_v31 = vadd.f32 %v7715_v25, %v1931_v30  ;;  %v6383_v30 = vpack.c.bf16 %v3878_v12, %v3878_v12  ;;  %v7768_v11 = vld [vmem:[#allocation95_spill] sm:$0xff] }
 0x290   : > { %2509 = vmatmul.bf16.gmra.mxu3 %v6357_v62 }
 0x291   : > { %3821 = vst [vmem:[%s5815_s21 + $0x50] sm:$0xff] %v2103_v8 }
 0x292   : > { %v2040_v35 = vpop.f32.mrf.mxu2 }
 0x293   : > { %v2041_v28 = vadd.f32 %v2040_v35, %v2013_v15  ;;  %v2068_v13 = vpop.f32.mrf.mxu3  ;;  %v1986_v41 = vpop.f32.mrf.mxu0  ;;  %v1962_v15 = vadd.f32 %v7719_v58, %v1934_v10  ;;  %v7760_v58 = vld [vmem:[#allocation32_spill] sm:$0xff] }
 0x294   : > { %v2014_v17 = vpop.f32.mrf.mxu1  ;;  %v1987_v21 = vadd.f32 %v1986_v41, %v1959_v31  ;;  %v6386_v31 = vpack.c.bf16 %v3879_v44, %v3879_v44 }
 0x295   : > { %v2069_v61 = vadd.f32 %v2068_v13, %v2041_v28  ;;  %v6390_v13 = vpack.c.bf16 %v3881_v6, %v3881_v6  ;;  %v7721_v6 = vld [vmem:[#allocation121_spill] sm:$0xff] }
 0x296   : > { %v2015_v7 = vadd.f32 %v2014_v17, %v1987_v21 }
 0x297   : > { %v2104_v54 = vpack.c.bf16 %v2069_v61, %v7718_v2  ;;  %v7720_v61 = vld [vmem:[#allocation110_spill] sm:$0xff] }
 0x299   : > { %3822 = vst [vmem:[%s5815_s21 + $0x58] sm:$0xff] %v2104_v54 }
 0x29a   : > { %v2042_v8 = vpop.f32.mrf.mxu2 }
 0x29b   : > { %v2043_v35 = vadd.f32 %v2042_v8, %v2015_v7  ;;  %v2070_v25 = vpop.f32.mrf.mxu3  ;;  %v1989_v43 = vpop.f32.mrf.mxu0  ;;  %v3824_v7 = vld [vmem:[%s5815_s21 + $0x68] sm:$0x11] }
 0x29c   : > { %v2017_v28 = vpop.f32.mrf.mxu1  ;;  %v1990_v17 = vadd.f32 %v1989_v43, %v1962_v15 }
 0x29d   : > { %v2071_v41 = vadd.f32 %v2070_v25, %v2043_v35 }
 0x29e   : > { %2430 = vmatmul.bf16.gmra.mxu0 %v6383_v30  ;;  %v2018_v39 = vadd.f32 %v2017_v28, %v1990_v17  ;;  %v7724_v17 = vld [vmem:[#allocation125_spill] sm:$0xff] }
 0x29f   : > { %v2105_v21 = vpack.c.bf16 %v2071_v41, %v7720_v61  ;;  %2458 = vmatmul.bf16.gmra.mxu1 %v6386_v31  ;;  %2486 = vmatmul.bf16.gmra.mxu2 %v6388_v46  ;;  %v7723_v41 = vld [vmem:[#allocation126_spill] sm:$0xff] }
 0x2a0   : > { %2514 = vmatmul.bf16.gmra.mxu3 %v6390_v13 }
 0x2a1   : > { %3823 = vst [vmem:[%s5815_s21 + $0x60] sm:$0xff] %v2105_v21 }
 0x2a2   : > { %v2045_v10 = vpop.f32.mrf.mxu2 }
 0x2a3   : > { %v2046_v2 = vadd.f32 %v2045_v10, %v2018_v39  ;;  %v2073_v54 = vpop.f32.mrf.mxu3  ;;  %v1991_v12 = vpop.f32.mrf.mxu0  ;;  %v7725_v39 = vld [vmem:[#allocation127_spill] sm:$0xff]  ;;  %v7726_v10 = vld [vmem:[#allocation128_spill] sm:$0xff] }
 0x2a4   : > { %v2019_v44 = vpop.f32.mrf.mxu1  ;;  %v7729_v12 = vld [vmem:[#allocation5_spill] sm:$0xff] }
 0x2a5   : > { %v2074_v37 = vadd.f32 %v2073_v54, %v2046_v2  ;;  %v7727_v2 = vld [vmem:[#allocation129_spill] sm:$0xff]  ;;  %v7728_v54 = vld [vmem:[#allocation4_spill] sm:$0xff]  ;;  %v7730_v44 = vld [vmem:[#allocation2_spill] sm:$0xff] }
 0x2a7   : > { %v2106_v8 = vpack.c.bf16 %v2074_v37, %v7721_v6 }
 0x2a9   : > { %v2115_v15 = vsel %vm5932_vm6, %v2106_v8, %v3824_v7  ;;  %v7731_v7 = vld [vmem:[#allocation3_spill] sm:$0xff] }
 0x2aa   : > { %3825 = vst [vmem:[%s5815_s21 + $0x68] sm:$0x11] %v2115_v15  ;;  %v2047_v35 = vpop.f32.mrf.mxu2 }
 0x2ab   : > { %v2075_v25 = vpop.f32.mrf.mxu3  ;;  %v2304_v43 = vpop.f32.mrf.mxu0 }
 0x2ac   : > { %v2305_v61 = vadd.f32 %v2304_v43, %v7723_v41  ;;  %v2332_v21 = vpop.f32.mrf.mxu1  ;;  %v7732_v43 = vld [vmem:[#allocation8_spill] sm:$0xff] }
 0x2ae   : > { %v2333_v28 = vadd.f32 %v2332_v21, %v2305_v61  ;;  %2527 = vmatmul.bf16.vlgmr.msra.gmra.mxu0 %v7724_v17  ;;  %v7733_v21 = vld [vmem:[#allocation9_spill] sm:$0xff]  ;;  %v7734_v17 = vld [vmem:[#allocation6_spill] sm:$0xff] }
 0x2af   : > { %2555 = vmatmul.bf16.vlgmr.msra.gmra.mxu1 %v7725_v39  ;;  %2583 = vmatmul.bf16.vlgmr.msra.gmra.mxu2 %v7726_v10  ;;  %v7735_v10 = vld [vmem:[#allocation7_spill] sm:$0xff] }
 0x2b0   : > { %2611 = vmatmul.bf16.vlgmr.msra.gmra.mxu3 %v7727_v2  ;;  %2799 = vmatpush.bf16.msra.mxu2 %v7728_v54  ;;  %v7736_v2 = vld [vmem:[#allocation12_spill] sm:$0xff]  ;;  %v7737_v54 = vld [vmem:[#allocation13_spill] sm:$0xff] }
 0x2b1   : > { %2827 = vmatpush.bf16.msra.mxu3 %v7729_v12  ;;  %2743 = vmatpush.bf16.msra.mxu0 %v7730_v44  ;;  %v7739_v44 = vld [vmem:[#allocation11_spill] sm:$0xff] }
 0x2b2   : > { %v2360_v37 = vpop.f32.mrf.mxu2  ;;  %2771 = vmatpush.bf16.msra.mxu1 %v7731_v7 }
 0x2b3   : > { %v2361_v6 = vadd.f32 %v2360_v37, %v2333_v28  ;;  %v2388_v8 = vpop.f32.mrf.mxu3  ;;  %v2306_v15 = vpop.f32.mrf.mxu0  ;;  %v7738_v28 = vld [vmem:[#allocation10_spill] sm:$0xff] }
 0x2b4   : > { %v2307_v35 = vadd.f32 %v2306_v15, %v7723_v41  ;;  %v2334_v25 = vpop.f32.mrf.mxu1  ;;  %2800 = vmatpush.bf16.msra.mxu2 %v7732_v43  ;;  %v7740_v43 = vld [vmem:[#allocation16_spill] sm:$0xff] }
 0x2b5   : > { %v6414_v61 = vadd.f32 %v2388_v8, %v2361_v6  ;;  %2828 = vmatpush.bf16.msra.mxu3 %v7733_v21  ;;  %2744 = vmatpush.bf16.msra.mxu0 %v7734_v17  ;;  %v7742_v21 = vld [vmem:[#allocation14_spill] sm:$0xff] }
 0x2b6   : > { %v2335_v39 = vadd.f32 %v2334_v25, %v2307_v35  ;;  %2772 = vmatpush.bf16.msra.mxu1 %v7735_v10  ;;  %v7741_v25 = vld [vmem:[#allocation17_spill] sm:$0xff]  ;;  %v7743_v10 = vld [vmem:[#allocation130_spill] sm:$0xff] }
 0x2b8   : > { %2801 = vmatpush.bf16.msra.mxu2 %v7736_v2  ;;  %v7744_v2 = vld [vmem:[#allocation15_spill] sm:$0xff] }
 0x2b9   : > { %2829 = vmatpush.bf16.msra.mxu3 %v7737_v54  ;;  %2745 = vmatpush.bf16.msra.mxu0 %v7738_v28  ;;  %v7745_v54 = vld [vmem:[#allocation131_spill] sm:$0xff]  ;;  %v7747_v28 = vld [vmem:[#allocation82_spill] sm:$0xff] }
 0x2ba   : > { %v2362_v12 = vpop.f32.mrf.mxu2  ;;  %2773 = vmatpush.bf16.msra.mxu1 %v7739_v44  ;;  %v7749_v44 = vld [vmem:[#allocation21_spill] sm:$0xff] }
 0x2bb   : > { %v2363_v37 = vadd.f32 %v2362_v12, %v2335_v39  ;;  %v2390_v7 = vpop.f32.mrf.mxu3  ;;  %v2309_v6 = vpop.f32.mrf.mxu0  ;;  %v7746_v39 = vld [vmem:[#allocation132_spill] sm:$0xff] }
 0x2bc   : > { %v2310_v8 = vadd.f32 %v2309_v6, %v7723_v41  ;;  %v2337_v15 = vpop.f32.mrf.mxu1  ;;  %2802 = vmatpush.bf16.msra.mxu2 %v7740_v43  ;;  %v7748_v12 = vld [vmem:[#allocation20_spill] sm:$0xff]  ;;  %v7751_v6 = vld [vmem:[#allocation19_spill] sm:$0xff] }
 0x2bd   : > { %v6425_v35 = vadd.f32 %v2390_v7, %v2363_v37  ;;  %2830 = vmatpush.bf16.msra.mxu3 %v7741_v25  ;;  %2746 = vmatpush.bf16.msra.mxu0 %v7742_v21  ;;  %v7750_v37 = vld [vmem:[#allocation18_spill] sm:$0xff] }
 0x2be   : > { %v2338_v17 = vadd.f32 %v2337_v15, %v2310_v8  ;;  %2532 = vmatmul.bf16.gmra.mxu0 %v7743_v10  ;;  %2774 = vmatpush.bf16.msra.mxu1 %v7744_v2  ;;  %v7752_v10 = vld [vmem:[#allocation24_spill] sm:$0xff] }
 0x2bf   : > { %2560 = vmatmul.bf16.gmra.mxu1 %v7745_v54  ;;  %2588 = vmatmul.bf16.gmra.mxu2 %v7746_v39  ;;  %v7753_v54 = vld [vmem:[#allocation25_spill] sm:$0xff]  ;;  %v7754_v39 = vld [vmem:[#allocation22_spill] sm:$0xff] }
 0x2c0   : > { %2616 = vmatmul.bf16.gmra.mxu3 %v7747_v28  ;;  %2803 = vmatpush.bf16.msra.mxu2 %v7748_v12  ;;  %v7755_v12 = vld [vmem:[#allocation23_spill] sm:$0xff] }
 0x2c1   : > { %2831 = vmatpush.bf16.msra.mxu3 %v7749_v44  ;;  %2747 = vmatpush.bf16.msra.mxu0 %v7750_v37  ;;  %v7756_v44 = vld [vmem:[#allocation28_spill] sm:$0xff]  ;;  %v7757_v37 = vld [vmem:[#allocation29_spill] sm:$0xff] }
 0x2c2   : > { %v2365_v7 = vpop.f32.mrf.mxu2  ;;  %2775 = vmatpush.bf16.msra.mxu1 %v7751_v6  ;;  %v7759_v6 = vld [vmem:[#allocation27_spill] sm:$0xff] }
 0x2c3   : > { %v2366_v8 = vadd.f32 %v2365_v7, %v2338_v17  ;;  %v2393_v15 = vpop.f32.mrf.mxu3  ;;  %v2311_v43 = vpop.f32.mrf.mxu0  ;;  %v7758_v17 = vld [vmem:[#allocation26_spill] sm:$0xff] }
 0x2c4   : > { %v2312_v25 = vadd.f32 %v2311_v43, %v7723_v41  ;;  %v2339_v21 = vpop.f32.mrf.mxu1  ;;  %2804 = vmatpush.bf16.msra.mxu2 %v7752_v10 }
 0x2c5   : > { %v6440_v2 = vadd.f32 %v2393_v15, %v2366_v8  ;;  %2832 = vmatpush.bf16.msra.mxu3 %v7753_v54  ;;  %2748 = vmatpush.bf16.msra.mxu0 %v7754_v39  ;;  %v7762_v39 = vld [vmem:[#allocation30_spill] sm:$0xff] }
 0x2c6   : > { %v2340_v28 = vadd.f32 %v2339_v21, %v2312_v25  ;;  %2776 = vmatpush.bf16.msra.mxu1 %v7755_v12  ;;  %v7761_v21 = vld [vmem:[#allocation33_spill] sm:$0xff] }
 0x2c8   : > { %2805 = vmatpush.bf16.msra.mxu2 %v7756_v44  ;;  %v7763_v44 = vld [vmem:[#allocation83_spill] sm:$0xff] }
 0x2c9   : > { %2833 = vmatpush.bf16.msra.mxu3 %v7757_v37  ;;  %2749 = vmatpush.bf16.msra.mxu0 %v7758_v17  ;;  %v7764_v37 = vld [vmem:[#allocation31_spill] sm:$0xff]  ;;  %v7765_v17 = vld [vmem:[#allocation84_spill] sm:$0xff] }
 0x2ca   : > { %v2367_v7 = vpop.f32.mrf.mxu2  ;;  %2777 = vmatpush.bf16.msra.mxu1 %v7759_v6 }
 0x2cb   : > { %v2368_v43 = vadd.f32 %v2367_v7, %v2340_v28  ;;  %v2395_v10 = vpop.f32.mrf.mxu3  ;;  %v2314_v8 = vpop.f32.mrf.mxu0  ;;  %v7766_v28 = vld [vmem:[#allocation85_spill] sm:$0xff]  ;;  %v7767_v7 = vld [vmem:[#allocation94_spill] sm:$0xff] }
 0x2cc   : > { %v2315_v15 = vadd.f32 %v2314_v8, %v7723_v41  ;;  %v2342_v54 = vpop.f32.mrf.mxu1  ;;  %2806 = vmatpush.bf16.msra.mxu2 %v7760_v58 }
 0x2cd   : > { %v6451_v25 = vadd.f32 %v2395_v10, %v2368_v43  ;;  %2834 = vmatpush.bf16.msra.mxu3 %v7761_v21  ;;  %2750 = vmatpush.bf16.msra.mxu0 %v7762_v39 }
 0x2ce   : > { %v2343_v12 = vadd.f32 %v2342_v54, %v2315_v15  ;;  %2537 = vmatmul.bf16.gmra.mxu0 %v7763_v44  ;;  %2778 = vmatpush.bf16.msra.mxu1 %v7764_v37 }
 0x2cf   : > { %2565 = vmatmul.bf16.gmra.mxu1 %v7765_v17  ;;  %2593 = vmatmul.bf16.gmra.mxu2 %v7766_v28 }
 0x2d0   : > { %2621 = vmatmul.bf16.gmra.mxu3 %v7767_v7 }
 0x2d2   : > { %v2370_v6 = vpop.f32.mrf.mxu2 }
 0x2d3   : > { %v2371_v8 = vadd.f32 %v2370_v6, %v2343_v12  ;;  %v2398_v58 = vpop.f32.mrf.mxu3  ;;  %v2316_v43 = vpop.f32.mrf.mxu0  ;;  %v7769_v12 = vld [vmem:[#allocation97_spill] sm:$0xff]  ;;  %v7770_v6 = vld [vmem:[#allocation106_spill] sm:$0xff] }
 0x2d4   : > { %v2317_v10 = vadd.f32 %v2316_v43, %v7723_v41  ;;  %v2344_v21 = vpop.f32.mrf.mxu1  ;;  %v7771_v43 = vld [vmem:[#allocation108_spill] sm:$0xff] }
 0x2d5   : > { %v6461_v32 = vadd.f32 %v2398_v58, %v2371_v8 }
 0x2d6   : > { %v2345_v15 = vadd.f32 %v2344_v21, %v2317_v10 }
 0x2da   : > { %v2372_v54 = vpop.f32.mrf.mxu2 }
 0x2db   : > { %v2373_v39 = vadd.f32 %v2372_v54, %v2345_v15  ;;  %v2400_v44 = vpop.f32.mrf.mxu3  ;;  %v2319_v37 = vpop.f32.mrf.mxu0 }
 0x2dc   : > { %v2320_v17 = vadd.f32 %v2319_v37, %v7723_v41  ;;  %v2347_v51 = vpop.f32.mrf.mxu1 }
 0x2dd   : > { %v6464_v28 = vadd.f32 %v2400_v44, %v2373_v39 }
 0x2de   : > { %v2348_v7 = vadd.f32 %v2347_v51, %v2320_v17  ;;  %2542 = vmatmul.bf16.gmra.mxu0 %v7768_v11  ;;  %v7772_v17 = vld [vmem:[#allocation34_spill] sm:$0xff] }
 0x2df   : > { %2570 = vmatmul.bf16.gmra.mxu1 %v7769_v12  ;;  %2598 = vmatmul.bf16.gmra.mxu2 %v7770_v6  ;;  %v7774_v12 = vld [vmem:[#allocation36_spill] sm:$0xff]  ;;  %v7775_v6 = vld [vmem:[#allocation37_spill] sm:$0xff] }
 0x2e0   : > { %2626 = vmatmul.bf16.gmra.mxu3 %v7771_v43 }
 0x2e2   : > { %v2375_v8 = vpop.f32.mrf.mxu2 }
 0x2e3   : > { %v2376_v58 = vadd.f32 %v2375_v8, %v2348_v7  ;;  %v2403_v10 = vpop.f32.mrf.mxu3  ;;  %v2321_v21 = vpop.f32.mrf.mxu0  ;;  %v7773_v7 = vld [vmem:[#allocation35_spill] sm:$0xff] }
 0x2e4   : > { %v2349_v15 = vpop.f32.mrf.mxu1 }
 0x2e5   : > { %v6470_v54 = vadd.f32 %v2403_v10, %v2376_v58  ;;  %v7778_v10 = vld [vmem:[#allocation40_spill] sm:$0xff]  ;;  %v7779_v15 = vld [vmem:[#allocation41_spill] sm:$0xff] }
 0x2ea   : > { %v2377_v37 = vpop.f32.mrf.mxu2 }
 0x2eb   : > { %v2405_v41 = vpop.f32.mrf.mxu3  ;;  %v2416_v39 = vpop.f32.mrf.mxu0  ;;  %v7780_v37 = vld [vmem:[#allocation42_spill] sm:$0xff] }
 0x2ec   : > { %v2417_v51 = vadd.f32 %v2416_v39, %v6414_v61  ;;  %v2444_v44 = vpop.f32.mrf.mxu1  ;;  %v7781_v39 = vld [vmem:[#allocation43_spill] sm:$0xff] }
 0x2ee   : > { %v2445_v11 = vadd.f32 %v2444_v44, %v2417_v51  ;;  %2639 = vmatmul.bf16.vlgmr.msrb.gmra.mxu0 %v6257_v33  ;;  %v7782_v51 = vld [vmem:[#allocation44_spill] sm:$0xff] }
 0x2ef   : > { %2667 = vmatmul.bf16.vlgmr.msrb.gmra.mxu1 %v6260_v27  ;;  %2695 = vmatmul.bf16.vlgmr.msrb.gmra.mxu2 %v6262_v0  ;;  %v7776_v27 = vld [vmem:[#allocation38_spill] sm:$0xff] }
 0x2f0   : > { %2723 = vmatmul.bf16.vlgmr.msrb.gmra.mxu3 %v6264_v3  ;;  %2911 = vmatpush.bf16.msrb.mxu2 %v7772_v17  ;;  %v7777_v3 = vld [vmem:[#allocation39_spill] sm:$0xff] }
 0x2f1   : > { %2939 = vmatpush.bf16.msrb.mxu3 %v7773_v7  ;;  %2855 = vmatpush.bf16.msrb.mxu0 %v7774_v12 }
 0x2f2   : > { %v2472_v41 = vpop.f32.mrf.mxu2  ;;  %2883 = vmatpush.bf16.msrb.mxu1 %v7775_v6  ;;  %v7784_v6 = vld [vmem:[#allocation46_spill] sm:$0xff] }
 0x2f3   : > { %v2473_v61 = vadd.f32 %v2472_v41, %v2445_v11  ;;  %v2500_v43 = vpop.f32.mrf.mxu3  ;;  %v2418_v8 = vpop.f32.mrf.mxu0 }
 0x2f4   : > { %v2419_v33 = vadd.f32 %v2418_v8, %v6425_v35  ;;  %v2446_v58 = vpop.f32.mrf.mxu1  ;;  %2912 = vmatpush.bf16.msrb.mxu2 %v7776_v27  ;;  %v7783_v35 = vld [vmem:[#allocation45_spill] sm:$0xff]  ;;  %v7786_v8 = vld [vmem:[#allocation48_spill] sm:$0xff]  ;;  %v7789_v27 = vld [vmem:[#allocation51_spill] sm:$0xff] }
 0x2f5   : > { %v6483_v0 = vadd.f32 %v2500_v43, %v2473_v61  ;;  %2940 = vmatpush.bf16.msrb.mxu3 %v7777_v3  ;;  %2856 = vmatpush.bf16.msrb.mxu0 %v7778_v10  ;;  %v7785_v43 = vld [vmem:[#allocation47_spill] sm:$0xff]  ;;  %v7790_v3 = vld [vmem:[#allocation52_spill] sm:$0xff] }
 0x2f6   : > { %v2447_v21 = vadd.f32 %v2446_v58, %v2419_v33  ;;  %2884 = vmatpush.bf16.msrb.mxu1 %v7779_v15  ;;  %v7787_v58 = vld [vmem:[#allocation49_spill] sm:$0xff] }
 0x2f8   : > { %2913 = vmatpush.bf16.msrb.mxu2 %v7780_v37 }
 0x2f9   : > { %2941 = vmatpush.bf16.msrb.mxu3 %v7781_v39  ;;  %2857 = vmatpush.bf16.msrb.mxu0 %v7782_v51 }
 0x2fa   : > { %v2474_v44 = vpop.f32.mrf.mxu2  ;;  %2885 = vmatpush.bf16.msrb.mxu1 %v7783_v35 }
 0x2fb   : > { %v2475_v11 = vadd.f32 %v2474_v44, %v2447_v21  ;;  %v2502_v17 = vpop.f32.mrf.mxu3  ;;  %v2421_v7 = vpop.f32.mrf.mxu0  ;;  %v7791_v21 = vld [vmem:[#allocation53_spill] sm:$0xff]  ;;  %v7794_v44 = vld [vmem:[#allocation56_spill] sm:$0xff] }
 0x2fc   : > { %v2422_v12 = vadd.f32 %v2421_v7, %v6440_v2  ;;  %v2449_v41 = vpop.f32.mrf.mxu1  ;;  %2914 = vmatpush.bf16.msrb.mxu2 %v7784_v6  ;;  %v7788_v2 = vld [vmem:[#allocation50_spill] sm:$0xff]  ;;  %v7797_v7 = vld [vmem:[#allocation59_spill] sm:$0xff] }
 0x2fd   : > { %v6494_v61 = vadd.f32 %v2502_v17, %v2475_v11  ;;  %2942 = vmatpush.bf16.msrb.mxu3 %v7785_v43  ;;  %2858 = vmatpush.bf16.msrb.mxu0 %v7786_v8  ;;  %v7795_v11 = vld [vmem:[#allocation57_spill] sm:$0xff]  ;;  %v7796_v17 = vld [vmem:[#allocation58_spill] sm:$0xff] }
 0x2fe   : > { %v2450_v33 = vadd.f32 %v2449_v41, %v2422_v12  ;;  %2644 = vmatmul.bf16.gmra.mxu0 %v6300_v22  ;;  %2886 = vmatpush.bf16.msrb.mxu1 %v7787_v58  ;;  %v7798_v12 = vld [vmem:[#allocation60_spill] sm:$0xff] }
 0x2ff   : > { %2672 = vmatmul.bf16.gmra.mxu1 %v6304_v20  ;;  %2700 = vmatmul.bf16.gmra.mxu2 %v6306_v45  ;;  %v7792_v20 = vld [vmem:[#allocation54_spill] sm:$0xff] }
 0x300   : > { %2728 = vmatmul.bf16.gmra.mxu3 %v6308_v53  ;;  %2915 = vmatpush.bf16.msrb.mxu2 %v7788_v2  ;;  %v7793_v53 = vld [vmem:[#allocation55_spill] sm:$0xff]  ;;  %v7800_v2 = vld [vmem:[#allocation62_spill] sm:$0xff] }
 0x301   : > { %2943 = vmatpush.bf16.msrb.mxu3 %v7789_v27  ;;  %2859 = vmatpush.bf16.msrb.mxu0 %v7790_v3  ;;  %v7802_v3 = vld [vmem:[#allocation63_spill] sm:$0xff] }
 0x302   : > { %v2477_v10 = vpop.f32.mrf.mxu2  ;;  %2887 = vmatpush.bf16.msrb.mxu1 %v7791_v21 }
 0x303   : > { %v2478_v15 = vadd.f32 %v2477_v10, %v2450_v33  ;;  %v2505_v37 = vpop.f32.mrf.mxu3  ;;  %v2423_v22 = vpop.f32.mrf.mxu0  ;;  %v7803_v10 = vld [vmem:[#allocation64_spill] sm:$0xff] }
 0x304   : > { %v2424_v39 = vadd.f32 %v2423_v22, %v6451_v25  ;;  %v2451_v51 = vpop.f32.mrf.mxu1  ;;  %2916 = vmatpush.bf16.msrb.mxu2 %v7792_v20  ;;  %v7799_v25 = vld [vmem:[#allocation61_spill] sm:$0xff] }
 0x305   : > { %v6509_v45 = vadd.f32 %v2505_v37, %v2478_v15  ;;  %2944 = vmatpush.bf16.msrb.mxu3 %v7793_v53  ;;  %2860 = vmatpush.bf16.msrb.mxu0 %v7794_v44  ;;  %v7804_v15 = vld [vmem:[#allocation65_spill] sm:$0xff] }
 0x306   : > { %v2452_v35 = vadd.f32 %v2451_v51, %v2424_v39  ;;  %2888 = vmatpush.bf16.msrb.mxu1 %v7795_v11 }
 0x308   : > { %2917 = vmatpush.bf16.msrb.mxu2 %v7796_v17 }
 0x309   : > { %2945 = vmatpush.bf16.msrb.mxu3 %v7797_v7  ;;  %2861 = vmatpush.bf16.msrb.mxu0 %v7798_v12 }
 0x30a   : > { %v2479_v41 = vpop.f32.mrf.mxu2  ;;  %2889 = vmatpush.bf16.msrb.mxu1 %v7799_v25 }
 0x30b   : > { %v2480_v6 = vadd.f32 %v2479_v41, %v2452_v35  ;;  %v2507_v43 = vpop.f32.mrf.mxu3  ;;  %v2426_v8 = vpop.f32.mrf.mxu0 }
 0x30c   : > { %v2427_v33 = vadd.f32 %v2426_v8, %v6461_v32  ;;  %v2454_v58 = vpop.f32.mrf.mxu1  ;;  %2918 = vmatpush.bf16.msrb.mxu2 %v7800_v2  ;;  %v3890_v8 = vld [vmem:[%s5600_s19 + $0x200] sm:$0xff]  ;;  %v3892_v2 = vld [vmem:[%s5600_s19 + $0x210] sm:$0xff] }
 0x30d   : > { %v6520_v27 = vadd.f32 %v2507_v43, %v2480_v6  ;;  %2946 = vmatpush.bf16.msrb.mxu3 %v7802_v3  ;;  %2862 = vmatpush.bf16.msrb.mxu0 %v7803_v10  ;;  %v3882_v43 = vld [vmem:[%s5600_s19 + $0x1c0] sm:$0xff]  ;;  %v3885_v3 = vld [vmem:[%s5600_s19 + $0x1d8] sm:$0xff] }
 0x30e   : > { %v2455_v21 = vadd.f32 %v2454_v58, %v2427_v33  ;;  %2649 = vmatmul.bf16.gmra.mxu0 %v6349_v38  ;;  %2890 = vmatpush.bf16.msrb.mxu1 %v7804_v15  ;;  %v3883_v33 = vld [vmem:[%s5600_s19 + $0x1c8] sm:$0xff] }
 0x30f   : > { %7801 = vst [vmem:[#allocation111_spill] sm:$0xff] %v6520_v27  ;;  %2677 = vmatmul.bf16.gmra.mxu1 %v6353_v40  ;;  %2705 = vmatmul.bf16.gmra.mxu2 %v6355_v5  ;;  %v3891_v58 = vld [vmem:[%s5600_s19 + $0x208] sm:$0xff] }
 0x310   : > { %2733 = vmatmul.bf16.gmra.mxu3 %v6357_v62  ;;  %v6553_v15 = vpack.c.bf16 %v3891_v58, %v3883_v33  ;;  %v7820_v33 = vld [vmem:[#allocation74_spill] sm:$0xff]  ;;  %v3901_v58 = vld [vmem:[%s5600_s19 + $0x258] sm:$0xff]  ;;  %v3887_v27 = vld [vmem:[%s5600_s19 + $0x1e8] sm:$0xff] }
 0x312   : > { %v2482_v32 = vpop.f32.mrf.mxu2  ;;  %7809 = vst [vmem:[#allocation133_spill] sm:$0xff] %v6553_v15 }
 0x313   : > { %v2483_v37 = vadd.f32 %v2482_v32, %v2455_v21  ;;  %v2510_v22 = vpop.f32.mrf.mxu3  ;;  %v2428_v39 = vpop.f32.mrf.mxu0  ;;  %v6549_v21 = vpack.c.bf16 %v3890_v8, %v3882_v43  ;;  %v3900_v43 = vld [vmem:[%s5600_s19 + $0x250] sm:$0xff] }
 0x314   : > { %v2429_v51 = vadd.f32 %v2428_v39, %v6464_v28  ;;  %v2456_v20 = vpop.f32.mrf.mxu1  ;;  %v7812_v39 = vld [vmem:[#allocation66_spill] sm:$0xff]  ;;  %v3908_v8 = vld [vmem:[%s5600_s19 + $0x290] sm:$0xff] }
 0x315   : > { %v6530_v53 = vadd.f32 %v2510_v22, %v2483_v37  ;;  %7808 = vst [vmem:[#allocation124_spill] sm:$0xff] %v6549_v21 }
 0x316   : > { %v2457_v44 = vadd.f32 %v2456_v20, %v2429_v51  ;;  %v7813_v51 = vld [vmem:[#allocation67_spill] sm:$0xff]  ;;  %v7814_v20 = vld [vmem:[#allocation68_spill] sm:$0xff] }
 0x317   : > { %7805 = vst [vmem:[#allocation112_spill] sm:$0xff] %v6530_v53 }
 0x31a   : > { %v2484_v35 = vpop.f32.mrf.mxu2 }
 0x31b   : > { %v2485_v38 = vadd.f32 %v2484_v35, %v2457_v44  ;;  %v2512_v11 = vpop.f32.mrf.mxu3  ;;  %v2431_v17 = vpop.f32.mrf.mxu0  ;;  %v7815_v35 = vld [vmem:[#allocation69_spill] sm:$0xff] }
 0x31c   : > { %v2432_v40 = vadd.f32 %v2431_v17, %v6470_v54  ;;  %v2459_v5 = vpop.f32.mrf.mxu1 }
 0x31d   : > { %v6533_v62 = vadd.f32 %v2512_v11, %v2485_v38 }
 0x31e   : > { %v2460_v7 = vadd.f32 %v2459_v5, %v2432_v40  ;;  %2654 = vmatmul.bf16.gmra.mxu0 %v6383_v30  ;;  %v3884_v30 = vld [vmem:[%s5600_s19 + $0x1d0] sm:$0xff]  ;;  %v7816_v40 = vld [vmem:[#allocation70_spill] sm:$0xff]  ;;  %v7817_v5 = vld [vmem:[#allocation71_spill] sm:$0xff] }
 0x31f   : > { %7806 = vst [vmem:[#allocation113_spill] sm:$0xff] %v6533_v62  ;;  %2682 = vmatmul.bf16.gmra.mxu1 %v6386_v31  ;;  %2710 = vmatmul.bf16.gmra.mxu2 %v6388_v46  ;;  %v3893_v31 = vld [vmem:[%s5600_s19 + $0x218] sm:$0xff]  ;;  %v6555_v32 = vpack.c.bf16 %v3892_v2, %v3884_v30  ;;  %v7821_v2 = vld [vmem:[#allocation75_spill] sm:$0xff] }
 0x320   : > { %2738 = vmatmul.bf16.gmra.mxu3 %v6390_v13  ;;  %v6559_v22 = vpack.c.bf16 %v3893_v31, %v3885_v3  ;;  %v3909_v30 = vld [vmem:[%s5600_s19 + $0x298] sm:$0xff]  ;;  %v7822_v3 = vld [vmem:[#allocation76_spill] sm:$0xff] }
 0x321   : > { %7810 = vst [vmem:[#allocation134_spill] sm:$0xff] %v6555_v32 }
 0x322   : > { %v2487_v28 = vpop.f32.mrf.mxu2  ;;  %7811 = vst [vmem:[#allocation135_spill] sm:$0xff] %v6559_v22 }
 0x323   : > { %v2488_v54 = vadd.f32 %v2487_v28, %v2460_v7  ;;  %v2515_v12 = vpop.f32.mrf.mxu3  ;;  %v2433_v41 = vpop.f32.mrf.mxu0  ;;  %v7818_v7 = vld [vmem:[#allocation72_spill] sm:$0xff]  ;;  %v7819_v28 = vld [vmem:[#allocation73_spill] sm:$0xff] }
 0x324   : > { %v2461_v25 = vpop.f32.mrf.mxu1  ;;  %v3899_v41 = vld [vmem:[%s5600_s19 + $0x248] sm:$0xff] }
 0x325   : > { %v6539_v6 = vadd.f32 %v2515_v12, %v2488_v54  ;;  %v3898_v54 = vld [vmem:[%s5600_s19 + $0x240] sm:$0xff]  ;;  %v3907_v25 = vld [vmem:[%s5600_s19 + $0x288] sm:$0xff] }
 0x326   : > { %v3906_v12 = vld [vmem:[%s5600_s19 + $0x280] sm:$0xff] }
 0x327   : > { %7807 = vst [vmem:[#allocation122_spill] sm:$0xff] %v6539_v6 }
 0x32a   : > { %v2489_v10 = vpop.f32.mrf.mxu2 }
 0x32b   : > { %v2517_v46 = vpop.f32.mrf.mxu3  ;;  %v6551_v13 = vpop.f32.mrf.mxu0  ;;  %v6594_v10 = vpack.c.bf16 %v3906_v12, %v3898_v54  ;;  %v7830_v54 = vld [vmem:[#allocation80_spill] sm:$0xff]  ;;  %v7831_v12 = vld [vmem:[#allocation81_spill] sm:$0xff] }
 0x32c   : > { %v6557_v37 = vpop.f32.mrf.mxu1  ;;  %v7824_v46 = vld [vmem:[#allocation77_spill] sm:$0xff] }
 0x32d   : > { %7823 = vst [vmem:[#allocation96_spill] sm:$0xff] %v6594_v10 }
 0x32e   : > { %2751 = vmatmul.bf16.vlgmr.msra.gmra.mxu0 %v6549_v21 }
 0x32f   : > { %2779 = vmatmul.bf16.vlgmr.msra.gmra.mxu1 %v6553_v15  ;;  %2807 = vmatmul.bf16.vlgmr.msra.gmra.mxu2 %v6555_v32 }
 0x330   : > { %2835 = vmatmul.bf16.vlgmr.msra.gmra.mxu3 %v6559_v22  ;;  %3023 = vmatpush.bf16.msra.mxu2 %v7812_v39  ;;  %v7841_v22 = vld [vmem:[#allocation99_spill] sm:$0xff] }
 0x331   : > { %3051 = vmatpush.bf16.msra.mxu3 %v7813_v51  ;;  %2967 = vmatpush.bf16.msra.mxu0 %v7814_v20  ;;  %v6601_v20 = vpack.c.bf16 %v3907_v25, %v3899_v41  ;;  %v7832_v41 = vld [vmem:[#allocation86_spill] sm:$0xff]  ;;  %v7833_v25 = vld [vmem:[#allocation87_spill] sm:$0xff] }
 0x332   : > { %v6568_v44 = vpop.f32.mrf.mxu2  ;;  %2995 = vmatpush.bf16.msra.mxu1 %v7815_v35  ;;  %v6603_v35 = vpack.c.bf16 %v3908_v8, %v3900_v43  ;;  %v7834_v8 = vld [vmem:[#allocation88_spill] sm:$0xff] }
 0x333   : > { %v6571_v38 = vpop.f32.mrf.mxu3  ;;  %v6573_v11 = vpop.f32.mrf.mxu0  ;;  %7825 = vst [vmem:[#allocation107_spill] sm:$0xff] %v6601_v20 }
 0x334   : > { %v6575_v17 = vpop.f32.mrf.mxu1  ;;  %3024 = vmatpush.bf16.msra.mxu2 %v7816_v40  ;;  %7826 = vst [vmem:[#allocation109_spill] sm:$0xff] %v6603_v35 }
 0x335   : > { %3052 = vmatpush.bf16.msra.mxu3 %v7817_v5  ;;  %2968 = vmatpush.bf16.msra.mxu0 %v7818_v7  ;;  %v6607_v5 = vpack.c.bf16 %v3909_v30, %v3901_v58  ;;  %v7828_v7 = vld [vmem:[#allocation78_spill] sm:$0xff] }
 0x336   : > { %2996 = vmatpush.bf16.msra.mxu1 %v7819_v28  ;;  %v7829_v28 = vld [vmem:[#allocation79_spill] sm:$0xff] }
 0x337   : > { %7827 = vst [vmem:[#allocation123_spill] sm:$0xff] %v6607_v5 }
 0x338   : > { %3025 = vmatpush.bf16.msra.mxu2 %v7820_v33 }
 0x339   : > { %3053 = vmatpush.bf16.msra.mxu3 %v7821_v2  ;;  %2969 = vmatpush.bf16.msra.mxu0 %v7822_v3  ;;  %v7835_v2 = vld [vmem:[#allocation89_spill] sm:$0xff]  ;;  %v7836_v3 = vld [vmem:[#allocation90_spill] sm:$0xff] }
 0x33a   : > { %v6592_v31 = vpop.f32.mrf.mxu2  ;;  %2997 = vmatpush.bf16.msra.mxu1 %v7824_v46  ;;  %v7837_v46 = vld [vmem:[#allocation91_spill] sm:$0xff] }
 0x33b   : > { %v6597_v39 = vpop.f32.mrf.mxu3  ;;  %v6599_v51 = vpop.f32.mrf.mxu0 }
 0x33c   : > { %v6605_v40 = vpop.f32.mrf.mxu1  ;;  %3026 = vmatpush.bf16.msra.mxu2 %v7828_v7  ;;  %v7838_v7 = vld [vmem:[#allocation92_spill] sm:$0xff] }
 0x33d   : > { %3054 = vmatpush.bf16.msra.mxu3 %v7829_v28  ;;  %2970 = vmatpush.bf16.msra.mxu0 %v7830_v54  ;;  %v3914_v28 = vld [vmem:[%s5600_s19 + $0x2c0] sm:$0xff] }
 0x33e   : > { %2756 = vmatmul.bf16.gmra.mxu0 %v6594_v10  ;;  %2998 = vmatpush.bf16.msra.mxu1 %v7831_v12  ;;  %v3922_v54 = vld [vmem:[%s5600_s19 + $0x300] sm:$0xff]  ;;  %v3915_v12 = vld [vmem:[%s5600_s19 + $0x2c8] sm:$0xff] }
 0x33f   : > { %2784 = vmatmul.bf16.gmra.mxu1 %v6601_v20  ;;  %2812 = vmatmul.bf16.gmra.mxu2 %v6603_v35  ;;  %v3917_v35 = vld [vmem:[%s5600_s19 + $0x2d8] sm:$0xff]  ;;  %v7840_v10 = vld [vmem:[#allocation98_spill] sm:$0xff] }
 0x340   : > { %2840 = vmatmul.bf16.gmra.mxu3 %v6607_v5  ;;  %3027 = vmatpush.bf16.msra.mxu2 %v7832_v41  ;;  %v3923_v41 = vld [vmem:[%s5600_s19 + $0x308] sm:$0xff]  ;;  %v7839_v5 = vld [vmem:[#allocation93_spill] sm:$0xff] }
 0x341   : > { %3055 = vmatpush.bf16.msra.mxu3 %v7833_v25  ;;  %2971 = vmatpush.bf16.msra.mxu0 %v7834_v8  ;;  %v3916_v25 = vld [vmem:[%s5600_s19 + $0x2d0] sm:$0xff]  ;;  %v3925_v20 = vld [vmem:[%s5600_s19 + $0x318] sm:$0xff]  ;;  %v6652_v15 = vpack.c.bf16 %v3923_v41, %v3915_v12 }
 0x342   : > { %v6619_v43 = vpop.f32.mrf.mxu2  ;;  %2999 = vmatpush.bf16.msra.mxu1 %v7835_v2  ;;  %v3924_v8 = vld [vmem:[%s5600_s19 + $0x310] sm:$0xff] }
 0x343   : > { %v6622_v33 = vpop.f32.mrf.mxu3  ;;  %v6624_v58 = vpop.f32.mrf.mxu0  ;;  %7844 = vst [vmem:[#allocation110_spill] sm:$0xff] %v6652_v15  ;;  %v6654_v21 = vpack.c.bf16 %v3924_v8, %v3916_v25  ;;  %v7850_v12 = vld [vmem:[#allocation104_spill] sm:$0xff] }
 0x344   : > { %v6626_v30 = vpop.f32.mrf.mxu1  ;;  %3028 = vmatpush.bf16.msra.mxu2 %v7836_v3  ;;  %v6645_v3 = vpack.c.bf16 %v3922_v54, %v3914_v28  ;;  %v7848_v28 = vld [vmem:[#allocation102_spill] sm:$0xff]  ;;  %v7849_v54 = vld [vmem:[#allocation103_spill] sm:$0xff] }
 0x345   : > { %3056 = vmatpush.bf16.msra.mxu3 %v7837_v46  ;;  %2972 = vmatpush.bf16.msra.mxu0 %v7838_v7  ;;  %v7843_v46 = vld [vmem:[#allocation100_spill] sm:$0xff]  ;;  %7845 = vst [vmem:[#allocation121_spill] sm:$0xff] %v6654_v21 }
 0x346   : > { %3000 = vmatpush.bf16.msra.mxu1 %v7839_v5  ;;  %7842 = vst [vmem:[#allocation117_spill] sm:$0xff] %v6645_v3 }
 0x348   : > { %3029 = vmatpush.bf16.msra.mxu2 %v7840_v10  ;;  %v6658_v10 = vpack.c.bf16 %v3925_v20, %v3917_v35  ;;  %v7851_v20 = vld [vmem:[#allocation105_spill] sm:$0xff] }
 0x349   : > { %3057 = vmatpush.bf16.msra.mxu3 %v7841_v22  ;;  %2973 = vmatpush.bf16.msra.mxu0 %v7843_v46  ;;  %v7847_v22 = vld [vmem:[#allocation101_spill] sm:$0xff]  ;;  %v3930_v46 = vld [vmem:[%s5600_s19 + $0x340] sm:$0x1] }
 0x34a   : > { %v6643_v2 = vpop.f32.mrf.mxu2  ;;  %7846 = vst [vmem:[#allocation125_spill] sm:$0xff] %v6658_v10  ;;  %3001 = vmatpush.bf16.msra.mxu1 %v7847_v22  ;;  %v3931_v22 = vld [vmem:[%s5600_s19 + $0x348] sm:$0x1] }
 0x34b   : > { %v6648_v7 = vpop.f32.mrf.mxu3  ;;  %v6650_v32 = vpop.f32.mrf.mxu0 }
 0x34c   : > { %v6656_v5 = vpop.f32.mrf.mxu1  ;;  %3030 = vmatpush.bf16.msra.mxu2 %v7848_v28  ;;  %v3932_v28 = vld [vmem:[%s5600_s19 + $0x350] sm:$0x1] }
 0x34d   : > { %3058 = vmatpush.bf16.msra.mxu3 %v7849_v54  ;;  %2974 = vmatpush.bf16.msra.mxu0 %v7850_v12  ;;  %v3933_v54 = vld [vmem:[%s5600_s19 + $0x358] sm:$0x1] }
 0x34e   : > { %2761 = vmatmul.bf16.gmra.mxu0 %v6645_v3  ;;  %3002 = vmatpush.bf16.msra.mxu1 %v7851_v20  ;;  %v6689_v20 = vpack.c.bf16 %v3931_v22, %v3931_v22  ;;  %v6691_v3 = vpack.c.bf16 %v3932_v28, %v3932_v28  ;;  %v6695_v62 = vpack.c.bf16 %v3933_v54, %v3933_v54 }
 0x34f   : > { %2789 = vmatmul.bf16.gmra.mxu1 %v6652_v15  ;;  %2817 = vmatmul.bf16.gmra.mxu2 %v6654_v21  ;;  %v6683_v21 = vpack.c.bf16 %v3930_v46, %v3930_v46  ;;  %v2529_v46 = vadd.f32 %v6551_v13, %v5749_v56  ;;  %v3894_v13 = vld [vmem:[%s5600_s19 + $0x220] sm:$0xff] }
 0x350   : > { %2845 = vmatmul.bf16.gmra.mxu3 %v6658_v10  ;;  %7858 = vst [vmem:[#allocation3_spill] sm:$0xff] %v6689_v20 }
 0x351   : > { %7855 = vst [vmem:[#allocation4_spill] sm:$0xff] %v6683_v21  ;;  %v2557_v28 = vadd.f32 %v6557_v37, %v2529_v46 }
 0x352   : > { %v6669_v35 = vpop.f32.mrf.mxu2  ;;  %7859 = vst [vmem:[#allocation8_spill] sm:$0xff] %v6691_v3 }
 0x353   : > { %v6671_v41 = vpop.f32.mrf.mxu3  ;;  %v6673_v25 = vpop.f32.mrf.mxu0  ;;  %7861 = vst [vmem:[#allocation6_spill] sm:$0xff] %v6695_v62 }
 0x354   : > { %7852 = vst [vmem:[#allocation127_spill] sm:$0xff] %v6671_v41  ;;  %v6675_v8 = vpop.f32.mrf.mxu1 }
 0x355   : > { %7853 = vst [vmem:[#allocation128_spill] sm:$0xff] %v6675_v8 }
 0x35a   : > { %v6681_v15 = vpop.f32.mrf.mxu2 }
 0x35b   : > { %7854 = vst [vmem:[#allocation129_spill] sm:$0xff] %v6681_v15  ;;  %v6685_v10 = vpop.f32.mrf.mxu3  ;;  %v6687_v12 = vpop.f32.mrf.mxu0  ;;  %v3896_v15 = vld [vmem:[%s5600_s19 + $0x230] sm:$0xff] }
 0x35c   : > { %7856 = vst [vmem:[#allocation5_spill] sm:$0xff] %v6685_v10  ;;  %v6693_v6 = vpop.f32.mrf.mxu1  ;;  %v3886_v10 = vld [vmem:[%s5600_s19 + $0x1e0] sm:$0xff] }
 0x35d   : > { %7857 = vst [vmem:[#allocation2_spill] sm:$0xff] %v6687_v12  ;;  %v3888_v12 = vld [vmem:[%s5600_s19 + $0x1f0] sm:$0xff]  ;;  %v6719_v8 = vpack.c.bf16 %v3894_v13, %v3886_v10  ;;  %v2534_v10 = vadd.f32 %v6599_v51, %v5749_v56 }
 0x35e   : > { %7860 = vst [vmem:[#allocation9_spill] sm:$0xff] %v6693_v6  ;;  %2766 = vmatmul.bf16.gmra.mxu0 %v6683_v21  ;;  %v2585_v6 = vadd.f32 %v6568_v44, %v2557_v28  ;;  %v6724_v44 = vpack.c.bf16 %v3896_v15, %v3888_v12  ;;  %v3903_v12 = vld [vmem:[%s5600_s19 + $0x268] sm:$0xff]  ;;  %v3912_v13 = vld [vmem:[%s5600_s19 + $0x2b0] sm:$0xff] }
 0x35f   : > { %2794 = vmatmul.bf16.gmra.mxu1 %v6689_v20  ;;  %2822 = vmatmul.bf16.gmra.mxu2 %v6691_v3  ;;  %v3895_v20 = vld [vmem:[%s5600_s19 + $0x228] sm:$0xff]  ;;  %v2531_v3 = vadd.f32 %v6573_v11, %v5749_v56 }
 0x360   : > { %2850 = vmatmul.bf16.gmra.mxu3 %v6695_v62  ;;  %v3889_v62 = vld [vmem:[%s5600_s19 + $0x1f8] sm:$0xff]  ;;  %v2613_v37 = vadd.f32 %v6571_v38, %v2585_v6  ;;  %v6722_v46 = vpack.c.bf16 %v3895_v20, %v3887_v27  ;;  %v3911_v20 = vld [vmem:[%s5600_s19 + $0x2a8] sm:$0xff] }
 0x361   : > { %v2559_v36 = vadd.f32 %v6575_v17, %v2531_v3  ;;  %v3902_v3 = vld [vmem:[%s5600_s19 + $0x260] sm:$0xff] }
 0x362   : > { %v6703_v22 = vpop.f32.mrf.mxu2 }
 0x363   : > { %7862 = vst [vmem:[#allocation7_spill] sm:$0xff] %v6703_v22  ;;  %v6706_v54 = vpop.f32.mrf.mxu3  ;;  %v2545_v53 = vpop.f32.mrf.mxu0  ;;  %v2587_v11 = vadd.f32 %v6592_v31, %v2559_v36  ;;  %v7865_v31 = vld [vmem:[#allocation115_spill] sm:$0xff] }
 0x364   : > { %7863 = vst [vmem:[#allocation12_spill] sm:$0xff] %v6706_v54  ;;  %v2573_v21 = vpop.f32.mrf.mxu1  ;;  %v6726_v54 = vpack.c.bf16 %v3897_v42, %v3889_v62  ;;  %v2562_v62 = vadd.f32 %v6605_v40, %v2534_v10 }
 0x365   : > { %v2615_v36 = vadd.f32 %v6597_v39, %v2587_v11  ;;  %v7867_v39 = vld [vmem:[#allocation119_spill] sm:$0xff]  ;;  %v3913_v11 = vld [vmem:[%s5600_s19 + $0x2b8] sm:$0xff] }
 0x366   : > { %v2590_v51 = vadd.f32 %v6619_v43, %v2562_v62  ;;  %v6766_v62 = vpack.c.bf16 %v3911_v20, %v3903_v12 }
 0x368   : > { %v2618_v10 = vadd.f32 %v6622_v33, %v2590_v51  ;;  %v2539_v33 = vadd.f32 %v6650_v32, %v5749_v56 }
 0x36a   : > { %v2601_v22 = vpop.f32.mrf.mxu2 }
 0x36b   : > { %v2629_v53 = vpop.f32.mrf.mxu3  ;;  %v2640_v21 = vpop.f32.mrf.mxu0  ;;  %v3904_v22 = vld [vmem:[%s5600_s19 + $0x270] sm:$0xff] }
 0x36c   : > { %v2668_v28 = vpop.f32.mrf.mxu1  ;;  %v2641_v41 = vadd.f32 %v2640_v21, %v2613_v37  ;;  %v7868_v37 = vld [vmem:[#allocation120_spill] sm:$0xff]  ;;  %v2536_v53 = vadd.f32 %v6624_v58, %v5749_v56  ;;  %v6768_v58 = vpack.c.bf16 %v3912_v13, %v3904_v22 }
 0x36e   : > { %2863 = vmatmul.bf16.vlgmr.msrb.gmra.mxu0 %v6719_v8  ;;  %v2669_v42 = vadd.f32 %v2668_v28, %v2641_v41  ;;  %v3910_v41 = vld [vmem:[%s5600_s19 + $0x2a0] sm:$0xff]  ;;  %v3905_v28 = vld [vmem:[%s5600_s19 + $0x278] sm:$0xff] }
 0x36f   : > { %2891 = vmatmul.bf16.vlgmr.msrb.gmra.mxu1 %v6722_v46  ;;  %2919 = vmatmul.bf16.vlgmr.msrb.gmra.mxu2 %v6724_v44  ;;  %v6762_v43 = vpack.c.bf16 %v3910_v41, %v3902_v3 }
 0x370   : > { %2947 = vmatmul.bf16.vlgmr.msrb.gmra.mxu3 %v6726_v54  ;;  %3135 = vmatpush.bf16.msrb.mxu2 %v7540_v16 }
 0x371   : > { %3163 = vmatpush.bf16.msrb.mxu3 %v7700_v26  ;;  %3079 = vmatpush.bf16.msrb.mxu0 %v7701_v49  ;;  %v7864_v26 = vld [vmem:[#allocation114_spill] sm:$0xff] }
 0x372   : > { %v2696_v27 = vpop.f32.mrf.mxu2  ;;  %3107 = vmatpush.bf16.msrb.mxu1 %v7702_v18  ;;  %v7866_v18 = vld [vmem:[#allocation116_spill] sm:$0xff] }
 0x373   : > { %v2697_v6 = vadd.f32 %v2696_v27, %v2669_v42  ;;  %v2724_v15 = vpop.f32.mrf.mxu3  ;;  %v2642_v16 = vpop.f32.mrf.mxu0 }
 0x374   : > { %v2670_v38 = vpop.f32.mrf.mxu1  ;;  %3136 = vmatpush.bf16.msrb.mxu2 %v7864_v26  ;;  %v2643_v17 = vadd.f32 %v2642_v16, %v2615_v36  ;;  %v3926_v26 = vld [vmem:[%s5600_s19 + $0x320] sm:$0xff] }
 0x375   : > { %v2725_v49 = vadd.f32 %v2724_v15, %v2697_v6  ;;  %3164 = vmatpush.bf16.msrb.mxu3 %v7865_v31  ;;  %3080 = vmatpush.bf16.msrb.mxu0 %v7866_v18  ;;  %v6770_v15 = vpack.c.bf16 %v3913_v11, %v3905_v28  ;;  %v3928_v31 = vld [vmem:[%s5600_s19 + $0x330] sm:$0xff]  ;;  %v7875_v11 = vld [vmem:[#allocation2_spill] sm:$0xff] }
 0x376   : > { %3108 = vmatpush.bf16.msrb.mxu1 %v7867_v39  ;;  %v2671_v21 = vadd.f32 %v2670_v38, %v2643_v17  ;;  %v3927_v17 = vld [vmem:[%s5600_s19 + $0x328] sm:$0xff]  ;;  %v3929_v39 = vld [vmem:[%s5600_s19 + $0x338] sm:$0xff] }
 0x377   : > { %v3191_v40 = vpack.c.bf16 %v2725_v49, %v6483_v0  ;;  %v3919_v49 = vld [vmem:[%s5600_s19 + $0x2e8] sm:$0xff] }
 0x378   : > { %3137 = vmatpush.bf16.msrb.mxu2 %v7868_v37  ;;  %v6815_v41 = vpack.c.bf16 %v3927_v17, %v3919_v49 }
 0x379   : > { %3938 = vst [vmem:[%s5815_s21 + $0x70] sm:$0xff] %v3191_v40  ;;  %3165 = vmatpush.bf16.msrb.mxu3 %v7549_v52  ;;  %3081 = vmatpush.bf16.msrb.mxu0 %v7708_v60  ;;  %v2564_v52 = vadd.f32 %v6626_v30, %v2536_v53  ;;  %v7873_v53 = vld [vmem:[#allocation138_spill] sm:$0xff] }
 0x37a   : > { %v2698_v0 = vpop.f32.mrf.mxu2  ;;  %3109 = vmatpush.bf16.msrb.mxu1 %v7709_v29 }
 0x37b   : > { %v2699_v42 = vadd.f32 %v2698_v0, %v2671_v21  ;;  %v2726_v27 = vpop.f32.mrf.mxu3  ;;  %v2645_v36 = vpop.f32.mrf.mxu0  ;;  %v2592_v29 = vadd.f32 %v6643_v2, %v2564_v52  ;;  %v7874_v21 = vld [vmem:[#allocation129_spill] sm:$0xff]  ;;  %v2544_v0 = vadd.f32 %v7875_v11, %v5749_v56  ;;  %v3944_v11 = vld [vmem:[%s5815_s21 + $0xa0] sm:$0x11] }
 0x37c   : > { %v2673_v6 = vpop.f32.mrf.mxu1  ;;  %3138 = vmatpush.bf16.msrb.mxu2 %v7552_v24  ;;  %v2646_v16 = vadd.f32 %v2645_v36, %v2618_v10  ;;  %v7876_v10 = vld [vmem:[#allocation111_spill] sm:$0xff] }
 0x37d   : > { %v2727_v60 = vadd.f32 %v2726_v27, %v2699_v42  ;;  %3166 = vmatpush.bf16.msrb.mxu3 %v7553_v23  ;;  %3082 = vmatpush.bf16.msrb.mxu0 %v7554_v63  ;;  %v2620_v63 = vadd.f32 %v6648_v7, %v2592_v29  ;;  %v7877_v27 = vld [vmem:[#allocation139_spill] sm:$0xff]  ;;  %v7880_v29 = vld [vmem:[#allocation9_spill] sm:$0xff] }
 0x37e   : > { %2868 = vmatmul.bf16.gmra.mxu0 %v6762_v43  ;;  %3110 = vmatpush.bf16.msrb.mxu1 %v7555_v9  ;;  %v2674_v23 = vadd.f32 %v2673_v6, %v2646_v16  ;;  %v7878_v6 = vld [vmem:[#allocation140_spill] sm:$0xff] }
 0x37f   : > { %v3192_v38 = vpack.c.bf16 %v2727_v60, %v6494_v61  ;;  %2896 = vmatmul.bf16.gmra.mxu1 %v6766_v62  ;;  %2924 = vmatmul.bf16.gmra.mxu2 %v6768_v58  ;;  %v2567_v61 = vadd.f32 %v6656_v5, %v2539_v33  ;;  %v3918_v5 = vld [vmem:[%s5600_s19 + $0x2e0] sm:$0xff]  ;;  %v7879_v60 = vld [vmem:[#allocation5_spill] sm:$0xff]  ;;  %v2572_v33 = vadd.f32 %v7880_v29, %v2544_v0  ;;  %v7888_v29 = vld [vmem:[#allocation124_spill] sm:$0xff] }
 0x380   : > { %2952 = vmatmul.bf16.gmra.mxu3 %v6770_v15  ;;  %3139 = vmatpush.bf16.msrb.mxu2 %v7556_v34 }
 0x381   : > { %3939 = vst [vmem:[%s5815_s21 + $0x78] sm:$0xff] %v3192_v38  ;;  %3167 = vmatpush.bf16.msrb.mxu3 %v7557_v47  ;;  %3083 = vmatpush.bf16.msrb.mxu0 %v7558_v50  ;;  %v2595_v50 = vadd.f32 %v6669_v35, %v2567_v61  ;;  %v7869_v35 = vld [vmem:[#allocation127_spill] sm:$0xff] }
 0x382   : > { %v2701_v24 = vpop.f32.mrf.mxu2  ;;  %3111 = vmatpush.bf16.msrb.mxu1 %v5356_v19  ;;  %v3920_v19 = vld [vmem:[%s5600_s19 + $0x2f0] sm:$0xff] }
 0x383   : > { %v2702_v32 = vadd.f32 %v2701_v24, %v2674_v23  ;;  %v2729_v9 = vpop.f32.mrf.mxu3  ;;  %v2647_v30 = vpop.f32.mrf.mxu0  ;;  %v2623_v51 = vadd.f32 %v7869_v35, %v2595_v50  ;;  %v3935_v50 = vld [vmem:[%s5600_s19 + $0x368] sm:$0x1] }
 0x384   : > { %v2675_v2 = vpop.f32.mrf.mxu1  ;;  %v2648_v47 = vadd.f32 %v2647_v30, %v2620_v63  ;;  %3140 = vmatpush.bf16.msrb.mxu2 %v5367_v55  ;;  %v2541_v55 = vadd.f32 %v6673_v25, %v5749_v56  ;;  %v6817_v25 = vpack.c.bf16 %v3928_v31, %v3920_v19  ;;  %v7883_v19 = vld [vmem:[#allocation12_spill] sm:$0xff] }
 0x385   : > { %v2730_v34 = vadd.f32 %v2729_v9, %v2702_v32  ;;  %3168 = vmatpush.bf16.msrb.mxu3 %v5379_v4  ;;  %3084 = vmatpush.bf16.msrb.mxu0 %v5381_v48  ;;  %v3921_v4 = vld [vmem:[%s5600_s19 + $0x2f8] sm:$0xff]  ;;  %v7881_v9 = vld [vmem:[#allocation7_spill] sm:$0xff] }
 0x386   : > { %3112 = vmatpush.bf16.msrb.mxu1 %v7710_v57  ;;  %v2676_v18 = vadd.f32 %v2675_v2, %v2648_v47  ;;  %v6819_v20 = vpack.c.bf16 %v3929_v39, %v3921_v4  ;;  %v2600_v30 = vadd.f32 %v7881_v9, %v2572_v33  ;;  %v7882_v2 = vld [vmem:[#allocation112_spill] sm:$0xff]  ;;  %v3934_v47 = vld [vmem:[%s5600_s19 + $0x360] sm:$0x1]  ;;  %v6848_v39 = vpack.c.bf16 %v3935_v50, %v3935_v50  ;;  %v7889_v33 = vld [vmem:[#allocation133_spill] sm:$0xff] }
 0x387   : > { %v3193_v7 = vpack.c.bf16 %v2730_v34, %v6509_v45  ;;  %v6811_v45 = vpack.c.bf16 %v3926_v26, %v3918_v5  ;;  %v3937_v26 = vld [vmem:[%s5600_s19 + $0x378] sm:$0x1]  ;;  %v6845_v17 = vpack.c.bf16 %v3934_v47, %v3934_v47 }
 0x388   : > { %3141 = vmatpush.bf16.msrb.mxu2 %v5411_v14  ;;  %v7870_v14 = vld [vmem:[#allocation136_spill] sm:$0xff]  ;;  %v2628_v31 = vadd.f32 %v7883_v19, %v2600_v30 }
 0x389   : > { %3940 = vst [vmem:[%s5815_s21 + $0x80] sm:$0xff] %v3193_v7  ;;  %3169 = vmatpush.bf16.msrb.mxu3 %v7711_v1  ;;  %3085 = vmatpush.bf16.msrb.mxu0 %v7712_v59  ;;  %v7871_v1 = vld [vmem:[#allocation128_spill] sm:$0xff]  ;;  %v7872_v59 = vld [vmem:[#allocation137_spill] sm:$0xff] }
 0x38a   : > { %v2703_v48 = vpop.f32.mrf.mxu2  ;;  %3113 = vmatpush.bf16.msrb.mxu1 %v7870_v14  ;;  %v2569_v22 = vadd.f32 %v7871_v1, %v2541_v55  ;;  %v3936_v7 = vld [vmem:[%s5600_s19 + $0x370] sm:$0x1] }
 0x38b   : > { %v2704_v40 = vadd.f32 %v2703_v48, %v2676_v18  ;;  %v2731_v57 = vpop.f32.mrf.mxu3  ;;  %v2650_v3 = vpop.f32.mrf.mxu0  ;;  %v6850_v48 = vpack.c.bf16 %v3936_v7, %v3936_v7 }
 0x38c   : > { %v2678_v12 = vpop.f32.mrf.mxu1  ;;  %v2651_v37 = vadd.f32 %v2650_v3, %v2623_v51  ;;  %3142 = vmatpush.bf16.msrb.mxu2 %v7872_v59  ;;  %v2597_v28 = vadd.f32 %v7874_v21, %v2569_v22  ;;  %v6852_v51 = vpack.c.bf16 %v3937_v26, %v3937_v26  ;;  %v7884_v3 = vld [vmem:[#allocation113_spill] sm:$0xff]  ;;  %v7885_v21 = vld [vmem:[#allocation122_spill] sm:$0xff] }
 0x38d   : > { %v2732_v13 = vadd.f32 %v2731_v57, %v2704_v40  ;;  %3170 = vmatpush.bf16.msrb.mxu3 %v7873_v53  ;;  %3086 = vmatpush.bf16.msrb.mxu0 %v7877_v27 }
 0x38e   : > { %2873 = vmatmul.bf16.gmra.mxu0 %v6811_v45  ;;  %v2679_v36 = vadd.f32 %v2678_v12, %v2651_v37  ;;  %3114 = vmatpush.bf16.msrb.mxu1 %v7878_v6  ;;  %v2625_v16 = vadd.f32 %v7879_v60, %v2597_v28  ;;  %v7887_v6 = vld [vmem:[#allocation126_spill] sm:$0xff] }
 0x38f   : > { %v3194_v42 = vpack.c.bf16 %v2732_v13, %v7876_v10  ;;  %2901 = vmatmul.bf16.gmra.mxu1 %v6815_v41  ;;  %2929 = vmatmul.bf16.gmra.mxu2 %v6817_v25 }
 0x390   : > { %2957 = vmatmul.bf16.gmra.mxu3 %v6819_v20 }
 0x391   : > { %3941 = vst [vmem:[%s5815_s21 + $0x88] sm:$0xff] %v3194_v42 }
 0x392   : > { %v2706_v52 = vpop.f32.mrf.mxu2 }
 0x393   : > { %v2707_v38 = vadd.f32 %v2706_v52, %v2679_v36  ;;  %v2734_v23 = vpop.f32.mrf.mxu3  ;;  %v2652_v24 = vpop.f32.mrf.mxu0 }
 0x394   : > { %v2680_v63 = vpop.f32.mrf.mxu1  ;;  %v2653_v32 = vadd.f32 %v2652_v24, %v2625_v16 }
 0x395   : > { %v2735_v61 = vadd.f32 %v2734_v23, %v2707_v38  ;;  %v7890_v38 = vld [vmem:[#allocation134_spill] sm:$0xff]  ;;  %v7891_v23 = vld [vmem:[#allocation135_spill] sm:$0xff] }
 0x396   : > { %v2681_v5 = vadd.f32 %v2680_v63, %v2653_v32 }
 0x397   : > { %v3195_v34 = vpack.c.bf16 %v2735_v61, %v7882_v2 }
 0x399   : > { %3942 = vst [vmem:[%s5815_s21 + $0x90] sm:$0xff] %v3195_v34 }
 0x39a   : > { %v2708_v49 = vpop.f32.mrf.mxu2 }
 0x39b   : > { %v2709_v55 = vadd.f32 %v2708_v49, %v2681_v5  ;;  %v2736_v18 = vpop.f32.mrf.mxu3  ;;  %v2655_v4 = vpop.f32.mrf.mxu0 }
 0x39c   : > { %v2683_v35 = vpop.f32.mrf.mxu1  ;;  %v2656_v57 = vadd.f32 %v2655_v4, %v2628_v31  ;;  %v7894_v4 = vld [vmem:[#allocation109_spill] sm:$0xff] }
 0x39d   : > { %v2737_v40 = vadd.f32 %v2736_v18, %v2709_v55  ;;  %v7892_v55 = vld [vmem:[#allocation96_spill] sm:$0xff]  ;;  %v7893_v18 = vld [vmem:[#allocation107_spill] sm:$0xff] }
 0x39e   : > { %2878 = vmatmul.bf16.gmra.mxu0 %v6845_v17  ;;  %v2684_v14 = vadd.f32 %v2683_v35, %v2656_v57  ;;  %v7895_v35 = vld [vmem:[#allocation123_spill] sm:$0xff] }
 0x39f   : > { %v3196_v12 = vpack.c.bf16 %v2737_v40, %v7884_v3  ;;  %2906 = vmatmul.bf16.gmra.mxu1 %v6848_v39  ;;  %2934 = vmatmul.bf16.gmra.mxu2 %v6850_v48 }
 0x3a0   : > { %2962 = vmatmul.bf16.gmra.mxu3 %v6852_v51 }
 0x3a1   : > { %3943 = vst [vmem:[%s5815_s21 + $0x98] sm:$0xff] %v3196_v12 }
 0x3a2   : > { %v2711_v1 = vpop.f32.mrf.mxu2 }
 0x3a3   : > { %v2712_v22 = vadd.f32 %v2711_v1, %v2684_v14  ;;  %v2739_v13 = vpop.f32.mrf.mxu3  ;;  %v2657_v37 = vpop.f32.mrf.mxu0 }
 0x3a4   : > { %v2685_v59 = vpop.f32.mrf.mxu1 }
 0x3a5   : > { %v2740_v53 = vadd.f32 %v2739_v13, %v2712_v22 }
 0x3a7   : > { %v3197_v28 = vpack.c.bf16 %v2740_v53, %v7885_v21 }
 0x3a9   : > { %v3206_v10 = vsel %vm5932_vm6, %v3197_v28, %v3944_v11 }
 0x3aa   : > { %3945 = vst [vmem:[%s5815_s21 + $0xa0] sm:$0x11] %v3206_v10  ;;  %v2713_v42 = vpop.f32.mrf.mxu2 }
 0x3ab   : > { %v2741_v27 = vpop.f32.mrf.mxu3  ;;  %v2752_v36 = vpop.f32.mrf.mxu0 }
 0x3ac   : > { %v2753_v52 = vadd.f32 %v2752_v36, %v7887_v6  ;;  %v2780_v60 = vpop.f32.mrf.mxu1  ;;  %v7896_v27 = vld [vmem:[#allocation117_spill] sm:$0xff]  ;;  %v7897_v36 = vld [vmem:[#allocation110_spill] sm:$0xff] }
 0x3ae   : > { %v2781_v16 = vadd.f32 %v2780_v60, %v2753_v52  ;;  %2975 = vmatmul.bf16.vlgmr.msra.gmra.mxu0 %v7888_v29  ;;  %v7898_v52 = vld [vmem:[#allocation121_spill] sm:$0xff] }
 0x3af   : > { %3003 = vmatmul.bf16.vlgmr.msra.gmra.mxu1 %v7889_v33  ;;  %3031 = vmatmul.bf16.vlgmr.msra.gmra.mxu2 %v7890_v38  ;;  %v7899_v60 = vld [vmem:[#allocation125_spill] sm:$0xff] }
 0x3b0   : > { %3059 = vmatmul.bf16.vlgmr.msra.gmra.mxu3 %v7891_v23 }
 0x3b2   : > { %v2808_v24 = vpop.f32.mrf.mxu2 }
 0x3b3   : > { %v2809_v63 = vadd.f32 %v2808_v24, %v2781_v16  ;;  %v2836_v61 = vpop.f32.mrf.mxu3  ;;  %v2754_v32 = vpop.f32.mrf.mxu0 }
 0x3b4   : > { %v2755_v9 = vadd.f32 %v2754_v32, %v7887_v6  ;;  %v2782_v30 = vpop.f32.mrf.mxu1 }
 0x3b5   : > { %v6871_v2 = vadd.f32 %v2836_v61, %v2809_v63 }
 0x3b6   : > { %v2783_v34 = vadd.f32 %v2782_v30, %v2755_v9 }
 0x3ba   : > { %v2810_v47 = vpop.f32.mrf.mxu2 }
 0x3bb   : > { %v2811_v50 = vadd.f32 %v2810_v47, %v2783_v34  ;;  %v2838_v7 = vpop.f32.mrf.mxu3  ;;  %v2757_v5 = vpop.f32.mrf.mxu0 }
 0x3bc   : > { %v2758_v26 = vadd.f32 %v2757_v5, %v7887_v6  ;;  %v2785_v49 = vpop.f32.mrf.mxu1 }
 0x3bd   : > { %v6874_v19 = vadd.f32 %v2838_v7, %v2811_v50 }
 0x3be   : > { %v2786_v31 = vadd.f32 %v2785_v49, %v2758_v26  ;;  %2980 = vmatmul.bf16.gmra.mxu0 %v7892_v55  ;;  %v7900_v26 = vld [vmem:[#allocation4_spill] sm:$0xff]  ;;  %v7901_v49 = vld [vmem:[#allocation3_spill] sm:$0xff]  ;;  %v7903_v55 = vld [vmem:[#allocation6_spill] sm:$0xff] }
 0x3bf   : > { %3008 = vmatmul.bf16.gmra.mxu1 %v7893_v18  ;;  %3036 = vmatmul.bf16.gmra.mxu2 %v7894_v4 }
 0x3c0   : > { %3064 = vmatmul.bf16.gmra.mxu3 %v7895_v35 }
 0x3c2   : > { %v2813_v40 = vpop.f32.mrf.mxu2 }
 0x3c3   : > { %v2814_v57 = vadd.f32 %v2813_v40, %v2786_v31  ;;  %v2841_v3 = vpop.f32.mrf.mxu3  ;;  %v2759_v12 = vpop.f32.mrf.mxu0  ;;  %v7902_v31 = vld [vmem:[#allocation8_spill] sm:$0xff] }
 0x3c4   : > { %v2760_v14 = vadd.f32 %v2759_v12, %v7887_v6  ;;  %v2787_v1 = vpop.f32.mrf.mxu1 }
 0x3c5   : > { %v2842_v22 = vadd.f32 %v2841_v3, %v2814_v57 }
 0x3c6   : > { %v2788_v13 = vadd.f32 %v2787_v1, %v2760_v14 }
 0x3ca   : > { %v2815_v37 = vpop.f32.mrf.mxu2 }
 0x3cb   : > { %v2816_v59 = vadd.f32 %v2815_v37, %v2788_v13  ;;  %v2843_v53 = vpop.f32.mrf.mxu3  ;;  %v2762_v21 = vpop.f32.mrf.mxu0 }
 0x3cc   : > { %v2763_v28 = vadd.f32 %v2762_v21, %v7887_v6  ;;  %v2790_v11 = vpop.f32.mrf.mxu1 }
 0x3cd   : > { %v6882_v10 = vadd.f32 %v2843_v53, %v2816_v59 }
 0x3ce   : > { %v2791_v42 = vadd.f32 %v2790_v11, %v2763_v28  ;;  %2985 = vmatmul.bf16.gmra.mxu0 %v7896_v27 }
 0x3cf   : > { %3013 = vmatmul.bf16.gmra.mxu1 %v7897_v36  ;;  %3041 = vmatmul.bf16.gmra.mxu2 %v7898_v52 }
 0x3d0   : > { %3069 = vmatmul.bf16.gmra.mxu3 %v7899_v60 }
 0x3d2   : > { %v2818_v16 = vpop.f32.mrf.mxu2 }
 0x3d3   : > { %v2819_v29 = vadd.f32 %v2818_v16, %v2791_v42  ;;  %v2846_v33 = vpop.f32.mrf.mxu3  ;;  %v2764_v38 = vpop.f32.mrf.mxu0 }
 0x3d4   : > { %v2765_v23 = vadd.f32 %v2764_v38, %v7887_v6  ;;  %v2792_v24 = vpop.f32.mrf.mxu1 }
 0x3d5   : > { %v2847_v63 = vadd.f32 %v2846_v33, %v2819_v29 }
 0x3d6   : > { %v2793_v61 = vadd.f32 %v2792_v24, %v2765_v23 }
 0x3da   : > { %v2820_v32 = vpop.f32.mrf.mxu2 }
 0x3db   : > { %v2821_v9 = vadd.f32 %v2820_v32, %v2793_v61  ;;  %v2848_v30 = vpop.f32.mrf.mxu3  ;;  %v2767_v34 = vpop.f32.mrf.mxu0 }
 0x3dc   : > { %v2768_v47 = vadd.f32 %v2767_v34, %v7887_v6  ;;  %v2795_v50 = vpop.f32.mrf.mxu1 }
 0x3dd   : > { %v6890_v7 = vadd.f32 %v2848_v30, %v2821_v9 }
 0x3de   : > { %v2796_v5 = vadd.f32 %v2795_v50, %v2768_v47  ;;  %2990 = vmatmul.bf16.gmra.mxu0 %v7900_v26 }
 0x3df   : > { %3018 = vmatmul.bf16.gmra.mxu1 %v7901_v49  ;;  %3046 = vmatmul.bf16.gmra.mxu2 %v7902_v31 }
 0x3e0   : > { %3074 = vmatmul.bf16.gmra.mxu3 %v7903_v55 }
 0x3e2   : > { %v2823_v18 = vpop.f32.mrf.mxu2 }
 0x3e3   : > { %v2824_v4 = vadd.f32 %v2823_v18, %v2796_v5  ;;  %v2851_v35 = vpop.f32.mrf.mxu3  ;;  %v2769_v40 = vpop.f32.mrf.mxu0 }
 0x3e4   : > { %v2797_v57 = vpop.f32.mrf.mxu1 }
 0x3e5   : > { %v6896_v3 = vadd.f32 %v2851_v35, %v2824_v4 }
 0x3ea   : > { %v2825_v6 = vpop.f32.mrf.mxu2 }
 0x3eb   : > { %v2853_v12 = vpop.f32.mrf.mxu3  ;;  %v2864_v14 = vpop.f32.mrf.mxu0 }
 0x3ec   : > { %v2865_v1 = vadd.f32 %v2864_v14, %v6871_v2  ;;  %v2892_v13 = vpop.f32.mrf.mxu1 }
 0x3ee   : > { %v2893_v37 = vadd.f32 %v2892_v13, %v2865_v1  ;;  %3087 = vmatmul.bf16.vlgmr.msrb.gmra.mxu0 %v6719_v8 }
 0x3ef   : > { %3115 = vmatmul.bf16.vlgmr.msrb.gmra.mxu1 %v6722_v46  ;;  %3143 = vmatmul.bf16.vlgmr.msrb.gmra.mxu2 %v6724_v44 }
 0x3f0   : > { %3171 = vmatmul.bf16.vlgmr.msrb.gmra.mxu3 %v6726_v54 }
 0x3f2   : > { %v2920_v59 = vpop.f32.mrf.mxu2 }
 0x3f3   : > { %v2921_v53 = vadd.f32 %v2920_v59, %v2893_v37  ;;  %v2948_v21 = vpop.f32.mrf.mxu3  ;;  %v2866_v28 = vpop.f32.mrf.mxu0 }
 0x3f4   : > { %v2867_v11 = vadd.f32 %v2866_v28, %v6874_v19  ;;  %v2894_v42 = vpop.f32.mrf.mxu1 }
 0x3f5   : > { %v6904_v27 = vadd.f32 %v2948_v21, %v2921_v53 }
 0x3f6   : > { %v2895_v2 = vadd.f32 %v2894_v42, %v2867_v11 }
 0x3fa   : > { %v2922_v36 = vpop.f32.mrf.mxu2 }
 0x3fb   : > { %v2923_v52 = vadd.f32 %v2922_v36, %v2895_v2  ;;  %v2950_v60 = vpop.f32.mrf.mxu3  ;;  %v2869_v8 = vpop.f32.mrf.mxu0 }
 0x3fc   : > { %v2870_v16 = vadd.f32 %v2869_v8, %v2842_v22  ;;  %v2897_v46 = vpop.f32.mrf.mxu1 }
 0x3fd   : > { %v6906_v29 = vadd.f32 %v2950_v60, %v2923_v52 }
 0x3fe   : > { %v2898_v44 = vadd.f32 %v2897_v46, %v2870_v16  ;;  %3092 = vmatmul.bf16.gmra.mxu0 %v6762_v43 }
 0x3ff   : > { %3120 = vmatmul.bf16.gmra.mxu1 %v6766_v62  ;;  %3148 = vmatmul.bf16.gmra.mxu2 %v6768_v58 }
 0x400   : > { %3176 = vmatmul.bf16.gmra.mxu3 %v6770_v15 }
 0x402   : > { %v2925_v54 = vpop.f32.mrf.mxu2 }
 0x403   : > { %v2926_v19 = vadd.f32 %v2925_v54, %v2898_v44  ;;  %v2953_v33 = vpop.f32.mrf.mxu3  ;;  %v2871_v38 = vpop.f32.mrf.mxu0 }
 0x404   : > { %v2872_v23 = vadd.f32 %v2871_v38, %v6882_v10  ;;  %v2899_v24 = vpop.f32.mrf.mxu1 }
 0x405   : > { %v6913_v22 = vadd.f32 %v2953_v33, %v2926_v19 }
 0x406   : > { %v2900_v61 = vadd.f32 %v2899_v24, %v2872_v23 }
 0x40a   : > { %v2927_v32 = vpop.f32.mrf.mxu2 }
 0x40b   : > { %v2928_v9 = vadd.f32 %v2927_v32, %v2900_v61  ;;  %v2955_v30 = vpop.f32.mrf.mxu3  ;;  %v2874_v43 = vpop.f32.mrf.mxu0 }
 0x40c   : > { %v2875_v34 = vadd.f32 %v2874_v43, %v2847_v63  ;;  %v2902_v62 = vpop.f32.mrf.mxu1 }
 0x40d   : > { %v6915_v47 = vadd.f32 %v2955_v30, %v2928_v9 }
 0x40e   : > { %v2903_v58 = vadd.f32 %v2902_v62, %v2875_v34  ;;  %3097 = vmatmul.bf16.gmra.mxu0 %v6811_v45 }
 0x40f   : > { %3125 = vmatmul.bf16.gmra.mxu1 %v6815_v41  ;;  %3153 = vmatmul.bf16.gmra.mxu2 %v6817_v25 }
 0x410   : > { %3181 = vmatmul.bf16.gmra.mxu3 %v6819_v20 }
 0x412   : > { %v2930_v15 = vpop.f32.mrf.mxu2 }
 0x413   : > { %v2931_v10 = vadd.f32 %v2930_v15, %v2903_v58  ;;  %v2958_v50 = vpop.f32.mrf.mxu3  ;;  %v2876_v5 = vpop.f32.mrf.mxu0 }
 0x414   : > { %v2877_v26 = vadd.f32 %v2876_v5, %v6890_v7  ;;  %v2904_v49 = vpop.f32.mrf.mxu1 }
 0x415   : > { %v6922_v63 = vadd.f32 %v2958_v50, %v2931_v10 }
 0x416   : > { %v2905_v31 = vadd.f32 %v2904_v49, %v2877_v26 }
 0x41a   : > { %v2932_v55 = vpop.f32.mrf.mxu2 }
 0x41b   : > { %v2933_v18 = vadd.f32 %v2932_v55, %v2905_v31  ;;  %v2960_v4 = vpop.f32.mrf.mxu3  ;;  %v2879_v45 = vpop.f32.mrf.mxu0 }
 0x41c   : > { %v2880_v41 = vadd.f32 %v2879_v45, %v6896_v3  ;;  %v2907_v35 = vpop.f32.mrf.mxu1 }
 0x41d   : > { %v6925_v25 = vadd.f32 %v2960_v4, %v2933_v18 }
 0x41e   : > { %v2908_v20 = vadd.f32 %v2907_v35, %v2880_v41  ;;  %3102 = vmatmul.bf16.gmra.mxu0 %v6845_v17 }
 0x41f   : > { %3130 = vmatmul.bf16.gmra.mxu1 %v6848_v39  ;;  %3158 = vmatmul.bf16.gmra.mxu2 %v6850_v48 }
 0x420   : > { %3186 = vmatmul.bf16.gmra.mxu3 %v6852_v51 }
 0x422   : > { %v2935_v7 = vpop.f32.mrf.mxu2 }
 0x423   : > { %v2936_v40 = vadd.f32 %v2935_v7, %v2908_v20  ;;  %v2963_v57 = vpop.f32.mrf.mxu3  ;;  %v2881_v6 = vpop.f32.mrf.mxu0 }
 0x424   : > { %v2909_v12 = vpop.f32.mrf.mxu1 }
 0x425   : > { %v6931_v14 = vadd.f32 %v2963_v57, %v2936_v40 }
 0x42a   : > { %v2937_v3 = vpop.f32.mrf.mxu2 }
 0x42b   : > { %v2965_v1 = vpop.f32.mrf.mxu3  ;;  %v2976_v13 = vpop.f32.mrf.mxu0 }
 0x42c   : > { %v3004_v37 = vpop.f32.mrf.mxu1  ;;  %v2977_v61 = vadd.f32 %v2976_v13, %v5749_v56 }
 0x42e   : > { %v3005_v9 = vadd.f32 %v3004_v37, %v2977_v61 }
 0x432   : > { %v3032_v59 = vpop.f32.mrf.mxu2 }
 0x433   : > { %v3060_v53 = vpop.f32.mrf.mxu3  ;;  %v2978_v17 = vpop.f32.mrf.mxu0  ;;  %v3033_v62 = vadd.f32 %v3032_v59, %v3005_v9 }
 0x434   : > { %v3006_v21 = vpop.f32.mrf.mxu1  ;;  %v2979_v58 = vadd.f32 %v2978_v17, %v5749_v56 }
 0x435   : > { %v3061_v10 = vadd.f32 %v3060_v53, %v3033_v62 }
 0x436   : > { %v3007_v49 = vadd.f32 %v3006_v21, %v2979_v58 }
 0x43a   : > { %v3034_v39 = vpop.f32.mrf.mxu2 }
 0x43b   : > { %v3062_v28 = vpop.f32.mrf.mxu3  ;;  %v2981_v48 = vpop.f32.mrf.mxu0  ;;  %v3035_v55 = vadd.f32 %v3034_v39, %v3007_v49 }
 0x43c   : > { %v3009_v11 = vpop.f32.mrf.mxu1  ;;  %v2982_v18 = vadd.f32 %v2981_v48, %v5749_v56 }
 0x43d   : > { %v3063_v41 = vadd.f32 %v3062_v28, %v3035_v55 }
 0x43e   : > { %v3010_v35 = vadd.f32 %v3009_v11, %v2982_v18 }
 0x442   : > { %v3037_v51 = vpop.f32.mrf.mxu2 }
 0x443   : > { %v3065_v42 = vpop.f32.mrf.mxu3  ;;  %v2983_v2 = vpop.f32.mrf.mxu0  ;;  %v3038_v3 = vadd.f32 %v3037_v51, %v3010_v35 }
 0x444   : > { %v3011_v36 = vpop.f32.mrf.mxu1  ;;  %v2984_v13 = vadd.f32 %v2983_v2, %v5749_v56 }
 0x445   : > { %v3066_v53 = vadd.f32 %v3065_v42, %v3038_v3 }
 0x446   : > { %v3012_v48 = vadd.f32 %v3011_v36, %v2984_v13 }
 0x44a   : > { %v3039_v52 = vpop.f32.mrf.mxu2 }
 0x44b   : > { %v3067_v60 = vpop.f32.mrf.mxu3  ;;  %v2986_v8 = vpop.f32.mrf.mxu0  ;;  %v3040_v9 = vadd.f32 %v3039_v52, %v3012_v48 }
 0x44c   : > { %v3014_v16 = vpop.f32.mrf.mxu1 }
 0x452   : > { %v6933_v46 = vpop.f32.mrf.mxu2 }
 0x453   : > { %v6935_v44 = vpop.f32.mrf.mxu3  ;;  %v6937_v54 = vpop.f32.mrf.mxu0 }
 0x454   : > { %v6939_v19 = vpop.f32.mrf.mxu1 }
 0x45a   : > { %v6941_v33 = vpop.f32.mrf.mxu2 }
 0x45b   : > { %v6943_v38 = vpop.f32.mrf.mxu3  ;;  %v6945_v23 = vpop.f32.mrf.mxu0 }
 0x45c   : > { %v6947_v24 = vpop.f32.mrf.mxu1 }
 0x462   : > { %v6950_v32 = vpop.f32.mrf.mxu2 }
 0x463   : > { %v6952_v30 = vpop.f32.mrf.mxu3  ;;  %v2993_v43 = vpop.f32.mrf.mxu0 }
 0x464   : > { %v3021_v34 = vpop.f32.mrf.mxu1  ;;  %v2987_v43 = vadd.f32 %v2986_v8, %v5749_v56  ;;  %v2989_v8 = vadd.f32 %v6937_v54, %v5749_v56 }
 0x465   : > { %v3068_v34 = vadd.f32 %v3067_v60, %v3040_v9 }
 0x466   : > { %v3015_v62 = vadd.f32 %v3014_v16, %v2987_v43  ;;  %v3017_v18 = vadd.f32 %v6939_v19, %v2989_v8 }
 0x468   : > { %v3043_v36 = vadd.f32 %v6933_v46, %v3015_v62  ;;  %v3045_v46 = vadd.f32 %v6941_v33, %v3017_v18 }
 0x46a   : > { %v3049_v15 = vpop.f32.mrf.mxu2  ;;  %v3071_v60 = vadd.f32 %v6935_v44, %v3043_v36  ;;  %v3073_v44 = vadd.f32 %v6943_v38, %v3045_v46 }
 0x46b   : > { %v3077_v50 = vpop.f32.mrf.mxu3  ;;  %v3088_v5 = vpop.f32.mrf.mxu0 }
 0x46c   : > { %v3116_v26 = vpop.f32.mrf.mxu1  ;;  %v3089_v31 = vadd.f32 %v3088_v5, %v3061_v10 }
 0x46e   : > { %v3117_v4 = vadd.f32 %v3116_v26, %v3089_v31 }
 0x472   : > { %v3144_v45 = vpop.f32.mrf.mxu2 }
 0x473   : > { %v3145_v20 = vadd.f32 %v3144_v45, %v3117_v4  ;;  %v3172_v7 = vpop.f32.mrf.mxu3  ;;  %v3090_v40 = vpop.f32.mrf.mxu0 }
 0x474   : > { %v3118_v57 = vpop.f32.mrf.mxu1  ;;  %v3091_v12 = vadd.f32 %v3090_v40, %v3063_v41 }
 0x475   : > { %v3173_v6 = vadd.f32 %v3172_v7, %v3145_v20 }
 0x476   : > { %v3119_v37 = vadd.f32 %v3118_v57, %v3091_v12 }
 0x477   : > { %v3208_v1 = vpack.c.bf16 %v3173_v6, %v6904_v27 }
 0x479   : > { %3946 = vst [vmem:[%s5815_s21 + $0xa8] sm:$0xff] %v3208_v1 }
 0x47a   : > { %v3146_v59 = vpop.f32.mrf.mxu2 }
 0x47b   : > { %v3147_v17 = vadd.f32 %v3146_v59, %v3119_v37  ;;  %v3174_v21 = vpop.f32.mrf.mxu3  ;;  %v3093_v39 = vpop.f32.mrf.mxu0 }
 0x47c   : > { %v3121_v28 = vpop.f32.mrf.mxu1  ;;  %v3094_v61 = vadd.f32 %v3093_v39, %v3066_v53 }
 0x47d   : > { %v3175_v11 = vadd.f32 %v3174_v21, %v3147_v17 }
 0x47e   : > { %v3122_v51 = vadd.f32 %v3121_v28, %v3094_v61 }
 0x47f   : > { %v3209_v27 = vpack.c.bf16 %v3175_v11, %v6906_v29  ;;  %v3952_v11 = vld [vmem:[%s5815_s21 + $0xd8] sm:$0x11] }
 0x481   : > { %3947 = vst [vmem:[%s5815_s21 + $0xb0] sm:$0xff] %v3209_v27 }
 0x482   : > { %v3149_v2 = vpop.f32.mrf.mxu2 }
 0x483   : > { %v3150_v58 = vadd.f32 %v3149_v2, %v3122_v51  ;;  %v3177_v42 = vpop.f32.mrf.mxu3  ;;  %v3095_v15 = vpop.f32.mrf.mxu0 }
 0x484   : > { %v3123_v10 = vpop.f32.mrf.mxu1  ;;  %v3096_v5 = vadd.f32 %v3095_v15, %v3068_v34 }
 0x485   : > { %v3178_v50 = vadd.f32 %v3177_v42, %v3150_v58 }
 0x486   : > { %v3124_v29 = vadd.f32 %v3123_v10, %v3096_v5 }
 0x487   : > { %v3210_v52 = vpack.c.bf16 %v3178_v50, %v6913_v22  ;;  %v2992_v22 = vadd.f32 %v6945_v23, %v5749_v56 }
 0x489   : > { %3948 = vst [vmem:[%s5815_s21 + $0xb8] sm:$0xff] %v3210_v52  ;;  %v3020_v20 = vadd.f32 %v6947_v24, %v2992_v22 }
 0x48a   : > { %v3151_v26 = vpop.f32.mrf.mxu2 }
 0x48b   : > { %v3152_v16 = vadd.f32 %v3151_v26, %v3124_v29  ;;  %v3179_v49 = vpop.f32.mrf.mxu3  ;;  %v3098_v31 = vpop.f32.mrf.mxu0  ;;  %v3048_v12 = vadd.f32 %v6950_v32, %v3020_v20 }
 0x48c   : > { %v3126_v55 = vpop.f32.mrf.mxu1  ;;  %v3099_v45 = vadd.f32 %v3098_v31, %v3071_v60 }
 0x48d   : > { %v3180_v4 = vadd.f32 %v3179_v49, %v3152_v16  ;;  %v3076_v3 = vadd.f32 %v6952_v30, %v3048_v12 }
 0x48e   : > { %v3127_v41 = vadd.f32 %v3126_v55, %v3099_v45 }
 0x48f   : > { %v3211_v54 = vpack.c.bf16 %v3180_v4, %v6915_v47 }
 0x491   : > { %3949 = vst [vmem:[%s5815_s21 + $0xc0] sm:$0xff] %v3211_v54 }
 0x492   : > { %v3154_v35 = vpop.f32.mrf.mxu2 }
 0x493   : > { %v3155_v7 = vadd.f32 %v3154_v35, %v3127_v41  ;;  %v3182_v40 = vpop.f32.mrf.mxu3  ;;  %v3100_v19 = vpop.f32.mrf.mxu0 }
 0x494   : > { %v3128_v57 = vpop.f32.mrf.mxu1  ;;  %v3101_v33 = vadd.f32 %v3100_v19, %v3073_v44 }
 0x495   : > { %v3183_v6 = vadd.f32 %v3182_v40, %v3155_v7 }
 0x496   : > { %v3129_v47 = vadd.f32 %v3128_v57, %v3101_v33 }
 0x497   : > { %v3212_v56 = vpack.c.bf16 %v3183_v6, %v6922_v63 }
 0x499   : > { %3950 = vst [vmem:[%s5815_s21 + $0xc8] sm:$0xff] %v3212_v56 }
 0x49a   : > { %v3156_v23 = vpop.f32.mrf.mxu2 }
 0x49b   : > { %v3157_v1 = vadd.f32 %v3156_v23, %v3129_v47  ;;  %v3184_v38 = vpop.f32.mrf.mxu3  ;;  %v3103_v24 = vpop.f32.mrf.mxu0 }
 0x49c   : > { %v3131_v13 = vpop.f32.mrf.mxu1  ;;  %v3104_v59 = vadd.f32 %v3103_v24, %v3076_v3 }
 0x49d   : > { %v3185_v37 = vadd.f32 %v3184_v38, %v3157_v1 }
 0x49e   : > { %v3132_v17 = vadd.f32 %v3131_v13, %v3104_v59 }
 0x49f   : > { %v3213_v53 = vpack.c.bf16 %v3185_v37, %v6925_v25 }
 0x4a1   : > { %3951 = vst [vmem:[%s5815_s21 + $0xd0] sm:$0xff] %v3213_v53 }
 0x4a2   : > { %v3159_v32 = vpop.f32.mrf.mxu2 }
 0x4a3   : > { %v3160_v21 = vadd.f32 %v3159_v32, %v3132_v17  ;;  %v3187_v63 = vpop.f32.mrf.mxu3  ;;  %v3105_v39 = vpop.f32.mrf.mxu0 }
 0x4a4   : > { %v3133_v28 = vpop.f32.mrf.mxu1 }
 0x4a5   : > { %v3188_v48 = vadd.f32 %v3187_v63, %v3160_v21 }
 0x4a7   : > { %v3214_v30 = vpack.c.bf16 %v3188_v48, %v6931_v14 }
 0x4a9   : > { %v3223_v61 = vsel %vm5932_vm6, %v3214_v30, %v3952_v11 }
 0x4aa   : > { %3953 = vst [vmem:[%s5815_s21 + $0xd8] sm:$0x11] %v3223_v61  ;;  %v3161_v9 = vpop.f32.mrf.mxu2 }
 0x4ab   : > { %v3189_v43 = vpop.f32.mrf.mxu3 }
 0x4ac PF: > { %s14_s15 = sadd.s32 1, %s4100_s15  }
 0x4ad   : > { %p11_p4 = scmp.ge.s32.totalorder %s14_s15, 4  }
 0x4af   :  { %13 = sbr.rel (!%p11_p4) target bundleno = 1 (0x1), region = 74 }

</bundles_post_ra>
